<compile_context>
chip_gen: v5e
topology: v5e:2x2
jax: 0.10.0
libtpu: 0.0.40
codegen_flags: <defaults>
</compile_context>

<pallas_src>
import math
from functools import lru_cache

import jax
import jax.numpy as jnp
from jax import lax
from jax.experimental import pallas as pl
from jax.experimental.pallas import tpu as pltpu

_INV_SQRT2 = 1.0 / math.sqrt(2.0)


def _round_up(x, m):
    return (x + m - 1) // m * m


def _cdiv(a, b):
    return -(-a // b)


def _gelu(h, exact):
    if exact:
        # nn.GELU default (approximate='none'); bit-parity with PyTorch.
        return 0.5 * h * (1.0 + lax.erf(h * _INV_SQRT2))
    # Cheaper tanh form for EUP-bound cases (e.g. f32-only EUP on v5e).
    return jax.nn.gelu(h, approximate=True)


def _spec(shape, index_map, mode=None):
    if mode is None:
        return pl.BlockSpec(shape, index_map)
    return pl.BlockSpec(shape, index_map, pipeline_mode=mode)


@lru_cache(maxsize=1)
def _default_vmem_limit_bytes():
    """3/4 of physical VMEM (per-generation): ~96 MiB v5e/v6e, ~48 MiB v7x."""
    try:
        cap = int(pltpu.get_tpu_info().vmem_capacity_bytes)
    except Exception:
        cap = 64 * 1024 * 1024
    return max(32 * 1024 * 1024, (cap * 3) // 4)


@lru_cache(maxsize=1)
def _single_buffer_supported():
    """One-time isolated capability probe for pl.Buffered(1).

    The probe (not the real kernel) owns the try/except, so genuine lowering or
    runtime failures of the MLP kernel are never masked.
    """
    if not hasattr(pl, "Buffered"):
        return False

    def _copy(x_ref, o_ref):
        o_ref[...] = x_ref[...]

    try:
        fn = pl.pallas_call(
            _copy,
            out_shape=jax.ShapeDtypeStruct((8, 128), jnp.float32),
            grid=(1,),
            in_specs=[pl.BlockSpec((8, 128), lambda i: (0, 0),
                                   pipeline_mode=pl.Buffered(1))],
            out_specs=pl.BlockSpec((8, 128), lambda i: (0, 0)),
        )
        jax.block_until_ready(fn(jnp.zeros((8, 128), jnp.float32)))
        return True
    except Exception:
        return False


def _choose_tm(m, tm_target):
    """Sublane-aligned token tile; keeps the token-tile count even when >1 so
    the v7x megacore 'parallel' axis splits evenly across the two TCs."""
    tm = max(16, _round_up(min(tm_target, m), 16))
    n_m = _cdiv(m, tm)
    if n_m > 1 and n_m % 2 == 1:
        n_m += 1
        tm = max(16, _round_up(_cdiv(m, n_m), 16))
    return tm


def prepare_mlp_params(w1, b1, w2, b2, *, compute_dtype=jnp.float32, lane=128):
    """Pad feature axes to lane multiples, transpose ONCE into natural MXU layout
    and cast ONCE (store these; do not redo per forward call).

    Inputs use the PyTorch nn.Linear layout: w1 [mlp, hidden], w2 [hidden, mlp].
    Stored: w1p [h_pad, mlp_pad], w2p [mlp_pad, h_pad] (padding rows/cols = 0).
    """
    mlp_dim, hidden = w1.shape
    assert w2.shape == (hidden, mlp_dim)
    h_pad = _round_up(hidden, lane)
    mlp_pad = _round_up(mlp_dim, lane)
    w1p = jnp.zeros((h_pad, mlp_pad), compute_dtype).at[:hidden, :mlp_dim].set(
        w1.T.astype(compute_dtype))
    w2p = jnp.zeros((mlp_pad, h_pad), compute_dtype).at[:mlp_dim, :hidden].set(
        w2.T.astype(compute_dtype))
    # Biases stay f32: they are added to the f32 accumulators.
    b1p = jnp.zeros((1, mlp_pad), jnp.float32).at[:, :mlp_dim].set(
        b1.astype(jnp.float32)[None, :])
    b2p = jnp.zeros((1, h_pad), jnp.float32).at[:, :hidden].set(
        b2.astype(jnp.float32)[None, :])
    return dict(w1=w1p, b1=b1p, w2=w2p, b2=b2p, hidden=hidden, mlp_dim=mlp_dim)


def pad_activations(x, params, *, tm=512):
    """Pad [tokens, features] ONCE (at Swin stage entry) into the kernel-resident
    layout: tokens -> multiple of the token tile, features -> h_pad lane width,
    cast to the params' compute dtype. Keep activations in this layout across the
    block; slice back to [:tokens, :hidden] only when leaving the Pallas region.
    Correctness of the hidden padding is guaranteed because w1p's padded input
    rows are zero."""
    compute_dtype = params["w1"].dtype
    h_pad = params["w1"].shape[0]
    hidden = params["hidden"]
    m, f = x.shape
    assert f in (hidden, h_pad), "feature dim mismatch"
    tm = _choose_tm(m, tm)
    m_pad = _round_up(m, tm)
    if x.shape == (m_pad, h_pad) and x.dtype == compute_dtype:
        return x
    out = jnp.zeros((m_pad, h_pad), compute_dtype)
    return out.at[:m, :f].set(x.astype(compute_dtype))


@lru_cache(maxsize=None)
def _build_mlp_call(m_pad, h_pad, mlp_pad, tm, mlp_chunk, dtype_name,
                    gelu_exact, vmem_limit, single_buffer):
    compute_dtype = jnp.dtype(dtype_name)
    n_m = m_pad // tm
    n_k = mlp_pad // mlp_chunk
    resident = pl.Buffered(1) if single_buffer else None
    itemsize = compute_dtype.itemsize

    # Advisory cost estimate (accounts for weight re-reads in the chunked path).
    weight_reads = n_m if n_k > 1 else 1
    cost = pl.CostEstimate(
        flops=int(4 * m_pad * h_pad * mlp_pad),            # 2 matmuls, 2*M*N*K each
        transcendentals=int(m_pad * mlp_pad),               # one erf/tanh per GELU
        bytes_accessed=int(2 * m_pad * h_pad * itemsize     # x read + out write
                           + weight_reads * 2 * h_pad * mlp_pad * itemsize
                           + (mlp_pad + h_pad) * 4),
    )

    if n_k == 1:
        # Fast path: W1 + W2 resident in VMEM, no accumulator scratch needed.
        def kernel(x_ref, w1_ref, b1_ref, w2_ref, b2_ref, o_ref):
            h = jnp.dot(x_ref[...], w1_ref[...],
                        preferred_element_type=jnp.float32)
            h = _gelu(h + b1_ref[...], gelu_exact)
            o_ref[...] = (jnp.dot(h.astype(w2_ref.dtype), w2_ref[...],
                                  preferred_element_type=jnp.float32)
                          + b2_ref[...]).astype(o_ref.dtype)   # mlp_drop: identity

        grid_spec = pltpu.PrefetchScalarGridSpec(
            num_scalar_prefetch=0,
            grid=(n_m,),
            in_specs=[
                _spec((tm, h_pad), lambda i: (i, 0)),
                _spec((h_pad, mlp_pad), lambda i: (0, 0), resident),
                _spec((1, mlp_pad), lambda i: (0, 0), resident),
                _spec((mlp_pad, h_pad), lambda i: (0, 0), resident),
                _spec((1, h_pad), lambda i: (0, 0), resident),
            ],
            out_specs=pl.BlockSpec((tm, h_pad), lambda i: (i, 0)),
        )
        dims = ("parallel",)
    else:
        # Chunked-mlp fallback (weights too big to stay resident): f32 VMEM
        # accumulator with pl.when init/finalize, reduction axis innermost.
        def kernel(x_ref, w1_ref, b1_ref, w2_ref, b2_ref, o_ref, acc_ref):
            j = pl.program_id(1)

            @pl.when(j == 0)
            def _init():
                acc_ref[...] = jnp.zeros_like(acc_ref)

            h = jnp.dot(x_ref[...], w1_ref[...],
                        preferred_element_type=jnp.float32)
            h = _gelu(h + b1_ref[...], gelu_exact)
            acc_ref[...] += jnp.dot(h.astype(w2_ref.dtype), w2_ref[...],
                                    preferred_element_type=jnp.float32)

            @pl.when(j == pl.num_programs(1) - 1)
            def _finalize():
                o_ref[...] = (acc_ref[...] + b2_ref[...]).astype(o_ref.dtype)

        grid_spec = pltpu.PrefetchScalarGridSpec(
            num_scalar_prefetch=0,
            grid=(n_m, n_k),
            in_specs=[
                _spec((tm, h_pad), lambda i, j: (i, 0)),
                _spec((h_pad, mlp_chunk), lambda i, j: (0, j)),
                _spec((1, mlp_chunk), lambda i, j: (0, j)),
                _spec((mlp_chunk, h_pad), lambda i, j: (j, 0)),
                _spec((1, h_pad), lambda i, j: (0, 0), resident),
            ],
            out_specs=pl.BlockSpec((tm, h_pad), lambda i, j: (i, 0)),
            scratch_shapes=[pltpu.VMEM((tm, h_pad), jnp.float32)],
        )
        dims = ("parallel", "arbitrary")

    return pl.pallas_call(
        kernel,
        out_shape=jax.ShapeDtypeStruct((m_pad, h_pad), compute_dtype),
        grid_spec=grid_spec,
        compiler_params=pltpu.CompilerParams(
            dimension_semantics=dims,
            vmem_limit_bytes=int(vmem_limit)),
        cost_estimate=cost,
    )


def mlp_forward(x, params, *, tm=512, mlp_chunk=None, gelu_exact=True):
    """x: [tokens(, padded), h_pad or hidden]; params from prepare_mlp_params.

    Recommended: pass x already produced by pad_activations() (pad once per Swin
    stage) — then no per-call pad/slice happens and the padded layout is returned.
    mlp_chunk=None keeps W1+W2 resident in VMEM (the fast path); set it (multiple
    of 128 dividing mlp_pad, >=256 on v6e/v7x) only when they cannot fit.
    """
    w1p = params["w1"]
    compute_dtype = w1p.dtype
    h_pad, mlp_pad = w1p.shape
    hidden = params["hidden"]

    m, f = x.shape
    assert f in (hidden, h_pad), "feature dim mismatch"
    tm_eff = _choose_tm(m, tm)
    if f != h_pad or x.dtype != compute_dtype or m % tm_eff != 0:
        # Compatibility fallback: per-call pad. Prefer pad_activations() once at
        # stage entry and keep the padded layout between layers.
        x = pad_activations(x, params, tm=tm)
        m = x.shape[0]
        tm_eff = _choose_tm(m, tm)
    m_pad = m

    if mlp_chunk is None:
        mlp_chunk = mlp_pad                         # weights fully resident
    assert mlp_chunk % 128 == 0 and mlp_pad % mlp_chunk == 0

    call = _build_mlp_call(
        m_pad, h_pad, mlp_pad, tm_eff, mlp_chunk,
        jnp.dtype(compute_dtype).name, bool(gelu_exact),
        _default_vmem_limit_bytes(), _single_buffer_supported())
    return call(x, params["w1"], params["b1"], params["w2"], params["b2"])


if __name__ == "__main__":
    # Swin stage-1 sized (but small) MLP: C=96, exp_rate=4, window 7x7 -> 49 tokens.
    hidden_dim = 96
    exp_rate = 4
    mlp_dim = hidden_dim * exp_rate                  # 384
    num_windows, win_tokens = 4, 49                  # 196 tokens (ragged)

    key = jax.random.PRNGKey(0)
    kx, k1, k2, k3, k4 = jax.random.split(key, 5)

    x = jax.random.normal(kx, (num_windows, win_tokens, hidden_dim), jnp.float32)

    # nn.Linear-style init: uniform(-1/sqrt(fan_in), 1/sqrt(fan_in))
    bound1 = 1.0 / math.sqrt(hidden_dim)
    w1 = jax.random.uniform(k1, (mlp_dim, hidden_dim), jnp.float32, -bound1, bound1)
    b1 = jax.random.uniform(k2, (mlp_dim,), jnp.float32, -bound1, bound1)
    bound2 = 1.0 / math.sqrt(mlp_dim)
    w2 = jax.random.uniform(k3, (hidden_dim, mlp_dim), jnp.float32, -bound2, bound2)
    b2 = jax.random.uniform(k4, (hidden_dim,), jnp.float32, -bound2, bound2)

    x2d = x.reshape(-1, hidden_dim)                  # [196, 96]
    m = x2d.shape[0]

    # Pure-JAX reference (exact GELU, same semantics as nn.GELU default + eval dropout).
    h_ref = x2d @ w1.T + b1
    h_ref = 0.5 * h_ref * (1.0 + lax.erf(h_ref * _INV_SQRT2))
    ref = h_ref @ w2.T + b2

    # --- 1) Recommended path: bf16 operands, f32 MXU accumulation, resident weights,
    #        activations padded ONCE, even token-tile count (grid = (2,)) -----------
    params_bf16 = prepare_mlp_params(w1, b1, w2, b2, compute_dtype=jnp.bfloat16)
    x_bf16_pad = pad_activations(x2d, params_bf16, tm=128)        # [256, 128] bf16
    out_bf16 = mlp_forward(x_bf16_pad, params_bf16, tm=128)       # fused fast path
    jax.block_until_ready(out_bf16)

    xb = x2d.astype(jnp.bfloat16)
    hb = jnp.dot(xb, w1.astype(jnp.bfloat16).T,
                 preferred_element_type=jnp.float32) + b1
    hb = 0.5 * hb * (1.0 + lax.erf(hb * _INV_SQRT2))
    refb = jnp.dot(hb.astype(jnp.bfloat16), w2.astype(jnp.bfloat16).T,
                   preferred_element_type=jnp.float32) + b2
    assert jnp.allclose(out_bf16[:m, :hidden_dim].astype(jnp.float32), refb,
                        atol=1e-2, rtol=2e-2), "bf16 mismatch vs ref"

    # --- 2) f32 resident weights, compatibility path (un-padded input) -------------
    params_f32 = prepare_mlp_params(w1, b1, w2, b2, compute_dtype=jnp.float32)
    out_f32 = mlp_forward(x2d, params_f32, tm=128)
    jax.block_until_ready(out_f32)
    assert jnp.allclose(out_f32[:m, :hidden_dim], ref, atol=1e-4, rtol=1e-4), \
        "f32 mismatch vs ref"

    # --- 3) Chunked-mlp accumulator path (only for weights too big to stay resident)
    x_f32_pad = pad_activations(x2d, params_f32, tm=128)
    out_chunk = mlp_forward(x_f32_pad, params_f32, tm=128, mlp_chunk=128)  # grid (2,3)
    jax.block_until_ready(out_chunk)
    assert jnp.allclose(out_chunk[:m, :hidden_dim], ref, atol=1e-4, rtol=1e-4), \
        "chunked f32 mismatch vs ref"

    print("KERNEL_OK")
</pallas_src>

<mosaic_0001>
module attributes {stable_mosaic.version = 11 : i64} {
  func.func @_copy(%arg0: i32, %arg1: memref<8x128xf32, #tpu.memory_space<vmem>>, %arg2: memref<8x128xf32, #tpu.memory_space<vmem>>) attributes {dimension_semantics = [#tpu.dimension_semantics<arbitrary>], iteration_bounds = array<i64: 1>, scalar_prefetch = 0 : i64, scratch_operands = 0 : i64, tpu.core_type = #tpu.core_type<tc>, window_params = [{pipeline_mode = #tpu.pipeline_mode<synchronous>, transform_indices = @transform_0, window_bounds = array<i64: 8, 128>}, {pipeline_mode = #tpu.pipeline_mode<synchronous>, transform_indices = @transform_1, window_bounds = array<i64: 8, 128>}]} {
    %c0 = arith.constant 0 : index
    %c0_0 = arith.constant 0 : index
    %0 = vector.load %arg1[%c0, %c0_0] : memref<8x128xf32, #tpu.memory_space<vmem>>, vector<8x128xf32>
    %c0_1 = arith.constant 0 : index
    %c0_2 = arith.constant 0 : index
    %1 = vector.load %arg2[%c0_1, %c0_2] : memref<8x128xf32, #tpu.memory_space<vmem>>, vector<8x128xf32>
    tpu.vector_store %arg2[%c0_1, %c0_2], %0 {strides = array<i32>} : memref<8x128xf32, #tpu.memory_space<vmem>>, vector<8x128xf32>,
    return
  }
  func.func @transform_0(%arg0: i32) -> (i32, i32) {
    %c0_i32 = arith.constant 0 : i32
    %c0_i32_0 = arith.constant 0 : i32
    %c0_i32_1 = arith.constant 0 : i32
    return %c0_i32, %c0_i32_0 : i32, i32
  }
  func.func @transform_1(%arg0: i32) -> (i32, i32) {
    %c0_i32 = arith.constant 0 : i32
    %c0_i32_0 = arith.constant 0 : i32
    %c0_i32_1 = arith.constant 0 : i32
    return %c0_i32, %c0_i32_0 : i32, i32
  }
}

module attributes {stable_mosaic.version = 11 : i64} {
  func.func @kernel(%arg0: i32, %arg1: memref<128x128xbf16, #tpu.memory_space<vmem>>, %arg2: memref<128x384xbf16, #tpu.memory_space<vmem>>, %arg3: memref<1x384xf32, #tpu.memory_space<vmem>>, %arg4: memref<384x128xbf16, #tpu.memory_space<vmem>>, %arg5: memref<1x128xf32, #tpu.memory_space<vmem>>, %arg6: memref<128x128xbf16, #tpu.memory_space<vmem>>) attributes {dimension_semantics = [#tpu.dimension_semantics<parallel>], iteration_bounds = array<i64: 2>, scalar_prefetch = 0 : i64, scratch_operands = 0 : i64, tpu.core_type = #tpu.core_type<tc>, window_params = [{transform_indices = @transform_0, window_bounds = array<i64: 128, 128>}, {pipeline_mode = #tpu.pipeline_mode<synchronous>, transform_indices = @transform_1, window_bounds = array<i64: 128, 384>}, {pipeline_mode = #tpu.pipeline_mode<synchronous>, transform_indices = @transform_2, window_bounds = array<i64: 1, 384>}, {pipeline_mode = #tpu.pipeline_mode<synchronous>, transform_indices = @transform_3, window_bounds = array<i64: 384, 128>}, {pipeline_mode = #tpu.pipeline_mode<synchronous>, transform_indices = @transform_4, window_bounds = array<i64: 1, 128>}, {transform_indices = @transform_5, window_bounds = array<i64: 128, 128>}]} {
    %c0 = arith.constant 0 : index
    %c0_0 = arith.constant 0 : index
    %0 = vector.load %arg1[%c0, %c0_0] : memref<128x128xbf16, #tpu.memory_space<vmem>>, vector<128x128xbf16>
    %c0_1 = arith.constant 0 : index
    %c0_2 = arith.constant 0 : index
    %1 = vector.load %arg2[%c0_1, %c0_2] : memref<128x384xbf16, #tpu.memory_space<vmem>>, vector<128x384xbf16>
    %cst = arith.constant dense<0.000000e+00> : vector<128x384xf32>
    %2 = tpu.matmul %0, %1, %cst {dimension_numbers = #tpu.dot_dimension_numbers<[1], [0], [0], [1], [0, 0, 1, 1], [], []>} : vector<128x128xbf16>, vector<128x384xbf16>, vector<128x384xf32> -> vector<128x384xf32>
    %c0_3 = arith.constant 0 : index
    %c0_4 = arith.constant 0 : index
    %3 = vector.load %arg3[%c0_3, %c0_4] : memref<1x384xf32, #tpu.memory_space<vmem>>, vector<1x384xf32>
    %4 = vector.broadcast %3 : vector<1x384xf32> to vector<128x384xf32>
    %5 = arith.addf %2, %4 : vector<128x384xf32>
    %cst_5 = arith.constant 5.000000e-01 : f32
    %6 = vector.broadcast %cst_5 : f32 to vector<128x384xf32>
    %7 = arith.mulf %6, %5 : vector<128x384xf32>
    %cst_6 = arith.constant 0.707106769 : f32
    %8 = vector.broadcast %cst_6 : f32 to vector<128x384xf32>
    %9 = arith.mulf %5, %8 : vector<128x384xf32>
    %10 = math.erf %9 : vector<128x384xf32>
    %cst_7 = arith.constant 1.000000e+00 : f32
    %11 = vector.broadcast %cst_7 : f32 to vector<128x384xf32>
    %12 = arith.addf %11, %10 : vector<128x384xf32>
    %13 = arith.mulf %7, %12 : vector<128x384xf32>
    %14 = arith.truncf %13 : vector<128x384xf32> to vector<128x384xbf16>
    %c0_8 = arith.constant 0 : index
    %c0_9 = arith.constant 0 : index
    %15 = vector.load %arg4[%c0_8, %c0_9] : memref<384x128xbf16, #tpu.memory_space<vmem>>, vector<384x128xbf16>
    %cst_10 = arith.constant dense<0.000000e+00> : vector<128x128xf32>
    %16 = tpu.matmul %14, %15, %cst_10 {dimension_numbers = #tpu.dot_dimension_numbers<[1], [0], [0], [1], [0, 0, 1, 1], [], []>} : vector<128x384xbf16>, vector<384x128xbf16>, vector<128x128xf32> -> vector<128x128xf32>
    %c0_11 = arith.constant 0 : index
    %c0_12 = arith.constant 0 : index
    %17 = vector.load %arg5[%c0_11, %c0_12] : memref<1x128xf32, #tpu.memory_space<vmem>>, vector<1x128xf32>
    %18 = vector.broadcast %17 : vector<1x128xf32> to vector<128x128xf32>
    %19 = arith.addf %16, %18 : vector<128x128xf32>
    %20 = arith.truncf %19 : vector<128x128xf32> to vector<128x128xbf16>
    %c0_13 = arith.constant 0 : index
    %c0_14 = arith.constant 0 : index
    %21 = vector.load %arg6[%c0_13, %c0_14] : memref<128x128xbf16, #tpu.memory_space<vmem>>, vector<128x128xbf16>
    tpu.vector_store %arg6[%c0_13, %c0_14], %20 {strides = array<i32>} : memref<128x128xbf16, #tpu.memory_space<vmem>>, vector<128x128xbf16>,
    return
  }
  func.func @transform_0(%arg0: i32) -> (i32, i32) {
    %c0_i32 = arith.constant 0 : i32
    %c0_i32_0 = arith.constant 0 : i32
    return %arg0, %c0_i32 : i32, i32
  }
  func.func @transform_1(%arg0: i32) -> (i32, i32) {
    %c0_i32 = arith.constant 0 : i32
    %c0_i32_0 = arith.constant 0 : i32
    %c0_i32_1 = arith.constant 0 : i32
    return %c0_i32, %c0_i32_0 : i32, i32
  }
  func.func @transform_2(%arg0: i32) -> (i32, i32) {
    %c0_i32 = arith.constant 0 : i32
    %c0_i32_0 = arith.constant 0 : i32
    %c0_i32_1 = arith.constant 0 : i32
    return %c0_i32, %c0_i32_0 : i32, i32
  }
  func.func @transform_3(%arg0: i32) -> (i32, i32) {
    %c0_i32 = arith.constant 0 : i32
    %c0_i32_0 = arith.constant 0 : i32
    %c0_i32_1 = arith.constant 0 : i32
    return %c0_i32, %c0_i32_0 : i32, i32
  }
  func.func @transform_4(%arg0: i32) -> (i32, i32) {
    %c0_i32 = arith.constant 0 : i32
    %c0_i32_0 = arith.constant 0 : i32
    %c0_i32_1 = arith.constant 0 : i32
    return %c0_i32, %c0_i32_0 : i32, i32
  }
  func.func @transform_5(%arg0: i32) -> (i32, i32) {
    %c0_i32 = arith.constant 0 : i32
    %c0_i32_0 = arith.constant 0 : i32
    return %arg0, %c0_i32 : i32, i32
  }
}

</mosaic_0001>

<bundles_post_ra>
// kernel: tpu_custom_call.1
= control target key start
LH: loop header
LB: loop body
LE: loop exit
PB: predicated region body
PF: predicated region fallthrough
CT: control target
= control target key end

     0   :  { %6 = vsyncpa [#allocation3], 0  ;;  %s114_s0 = inlined_call_operand.hbm [shape: f32[8,128], index: 0, kind: input, shape index: {}]   ;;  %s115_s1 = inlined_call_operand.hbm [shape: f32[8,128], index: 1, kind: output, shape index: {}]  }
   0x1   :  { %7 = vsyncpa [#allocation4], 0  ;;  %s13_s8 = sshll.u32 %s114_s0, 4  ;;  %s96_s9 = smov [#allocation2]   ;;  %s14_s8 = int_to_ptr.hbm [resolvable:$true] %s13_s8 }
   0x2   :  { %s15_s10 = sshll.u32 %s96_s9, 4  ;;  %s16_s10 = int_to_ptr.vmem [resolvable:$true] %s15_s10 }
   0x3   :  { %18 = dma.hbm_to_vmem [thread:$0]  %s14_s8, 128, %s16_s10, [#allocation3]  }
   0x4   :  { %92 = dma.done.wait [#allocation3], 128  }
   0x5   :  { %93 = vsyncadd [#allocation3], 4294967168  ;;  %s97_s11 = smov [#allocation5]   ;;  %s32_s15 = sshll.u32 %s115_s1, 4  ;;  %v23_v0 = vld [vmem:[#allocation2] sm:$0xff]  ;;  %s33_s15 = int_to_ptr.hbm [resolvable:$true] %s32_s15 }
   0x6   :  { %s30_s12 = sshll.u32 %s97_s11, 4  ;;  %24 = vst [vmem:[#allocation5] sm:$0xff] %v23_v0  ;;  %s31_s12 = int_to_ptr.vmem [resolvable:$true] %s30_s12 }
   0x7   :  { %35 = dma.vmem_to_hbm [thread:$0]  %s31_s12, 128, %s33_s15, [#allocation4]  }
   0x8   :  { %94 = dma.done.wait [#allocation4], 128  }
   0x9   :  { %95 = vsyncadd [#allocation4], 4294967168 }
   0xa   :  { %40 = vsyncpa [#allocation3], 1 }
   0xb   :  { %41 = vsyncpa [#allocation4], 1 }

// kernel: tpu_custom_call.1
= control target key start
LH: loop header
LB: loop body
LE: loop exit
PB: predicated region body
PF: predicated region fallthrough
CT: control target
= control target key end

     0   :  { %10 = vsyncpa [#allocation3], 0  ;;  %s6486_s0 = inlined_call_operand.hbm [shape: bf16[256,128], index: 0, kind: input, shape index: {}]   ;;  %s6487_s1 = inlined_call_operand.hbm [shape: bf16[128,384], index: 1, kind: input, shape index: {}]   ;;  %s6488_s2 = inlined_call_operand.hbm [shape: f32[1,384], index: 2, kind: input, shape index: {}]   ;;  %s6489_s3 = inlined_call_operand.hbm [shape: bf16[384,128], index: 3, kind: input, shape index: {}]   ;;  %s6490_s4 = inlined_call_operand.vmem [shape: f32[1,128], index: 4, kind: input, shape index: {}]   ;;  %s6491_s5 = inlined_call_operand.hbm [shape: bf16[256,128], index: 5, kind: output, shape index: {}]  }
   0x1   :  { %12 = vsyncpa [#allocation3 + $0x1], 0 }
   0x2   :  { %13 = vsyncpa [#allocation6], 0 }
   0x3   :  { %14 = vsyncpa [#allocation9], 0 }
   0x4   :  { %15 = vsyncpa [#allocation4], 0 }
   0x5   :  { %17 = vsyncpa [#allocation4 + $0x1], 0  ;;  %s4131_s18 = smov 0   ;;  %s4133_s19 = smov 0  }
   0x6   :  { %s4135_s20 = smov 0   ;;  %s4137_s21 = smov 0  }
   0x7 LB: > { %s4152_s22 = sadd.s32 4294967295, %s4090_s21   ;;  %s3303_s23 = sadd.s32 4294967294, %s4090_s21   ;;  %s4090_s21 = sphi %s4137_s21, %s6725_s21   ;;  %s4086_s20 = sphi %s4135_s20, %s6724_s20   ;;  %s4082_s19 = sphi %s4133_s19, %s6723_s19   ;;  %s4078_s18 = sphi %s4131_s18, %s6722_s18  }
   0x8   : > { %p43_p0 = scmp.ne.s32.totalorder %s4082_s19, %s4078_s18  ;;  %p44_p1 = scmp.eq.s32.totalorder %s4152_s22, 0 }
   0x9   : > { %p151_p2 = scmp.eq.s32.totalorder %s4152_s22, 1  ;;  %p157_p3 = scmp.eq.s32.totalorder %s3303_s23, 1 }
   0xa   : > { %p4161_p4 = por %p44_p1, %p43_p0  ;;  %p3304_p5 = scmp.ge.s32.totalorder %s4090_s21, 1 }
   0xb   : > { %p4166_p6 = por %p157_p3, %p43_p0  ;;  %p164_p7 = scmp.lt.s32.totalorder %s4090_s21, 3 }
   0xc   : > { %s175_s28 = sshll.u32 %s6487_s1, 4  ;;  %s4092_s30 = smov [#allocation5]   ;;  %s176_s28 = int_to_ptr.hbm [resolvable:$true] %s175_s28 }
   0xd   : > { %p4174_p8 = pnand %p3304_p5, %p164_p7  ;;  %s177_s6 = sshll.u32 %s4092_s30, 4  ;;  %s178_s6 = int_to_ptr.vmem [resolvable:$true] %s177_s6 }
   0xe   : > { %s190_s10 = sshll.u32 %s6488_s2, 4  ;;  %s4093_s11 = smov 192   ;;  %s191_s10 = int_to_ptr.hbm [resolvable:$true] %s190_s10 }
   0xf   : > { %p3732_p9 = pneg %p4174_p8  ;;  %s4094_s12 = smov 12  }
  0x10   : > { %s4095_s13 = smov [#allocation7]   ;;  %s201_s17 = sshll.u32 %s6489_s3, 4  ;;  %s202_s17 = int_to_ptr.hbm [resolvable:$true] %s201_s17 }
  0x11   : > { %p4182_p10 = pnand %p3732_p9, %p44_p1  ;;  %s192_s14 = sshll.u32 %s4095_s13, 4  ;;  %s193_s14 = int_to_ptr.vmem [resolvable:$true] %s192_s14 }
  0x12   : > { %s4096_s23 = smov [#allocation8]   ;;  %s6492_s27 = smov 64  }
  0x13   : > { %3735 = dma.hbm_to_vmem [thread:$0]  (!%p4182_p10), %s176_s28, 3072, %s178_s6, [#allocation6], %s4093_s11, %s4093_s11, %s4094_s12  }
  0x14   : > { %3738 = dma.hbm_to_vmem [thread:$0]  (!%p4182_p10), %s191_s10, 48, %s193_s14, [#allocation6]  }
  0x15   : > { %s203_s26 = sshll.u32 %s4096_s23, 4  ;;  %s4098_s28 = smov 4   ;;  %s204_s26 = int_to_ptr.vmem [resolvable:$true] %s203_s26 }
  0x16   : > { %3741 = dma.hbm_to_vmem [thread:$0]  (!%p4182_p10), %s202_s17, 3072, %s204_s26, [#allocation9], %s6492_s27, %s6492_s27, %s4098_s28  }
  0x17   : > { %s4203_s30 = sadd.s32 1, %s4090_s21   ;;  %s30_s8 = sadd.s32 1, %s4086_s20 }
  0x18   : > { %s27_s6 = ssub.s32 %s4090_s21, %s4203_s30  ;;  %p37_p13 = scmp.ne.s32.totalorder %s4086_s20, %s4082_s19 }
  0x19   : > { %p28_p12 = scmp.eq.s32.totalorder %s27_s6, 0  ;;  %p38_p0 = scmp.eq.s32.totalorder %s4090_s21, 0 }
  0x1a   : > { %p4216_p3 = por %p151_p2, %p37_p13  ;;  %p3753_p5 = scmp.lt.s32.totalorder %s4090_s21, 2 }
  0x1b   : > { %s4212_s9 = scalar_select %p28_p12, %s4086_s20, %s30_s8  }
  0x1c   : > { %s220_s7 = sand.u32 1, %s4086_s20   ;;  %s3595_s11 = sshll.u32 %s4090_s21, 6 }
  0x1d   : > { %p39_p7 = por %p38_p0, %p37_p13  ;;  %s3309_s12 = sshll.u32 %s220_s7, 6 }
  0x1e   : > { %s229_s15 = scalar_lea.hbm %s6486_s0, %s3595_s11  ;;  %s224_s17 = scalar_lea.vmem [#allocation2], %s3309_s12 }
  0x1f   : > { %s230_s16 = sshll.u32 %s229_s15, 4  ;;  %s232_s23 = sshll.u32 %s224_s17, 4  ;;  %s231_s16 = int_to_ptr.hbm [resolvable:$true] %s230_s16  ;;  %s233_s23 = int_to_ptr.vmem [resolvable:$true] %s232_s23 }
  0x20   : > { %p4226_p9 = pnand %p3753_p5, %p39_p7  ;;  %s221_s6 = scalar_lea.sflag [#allocation3], %s220_s7 }
  0x21   : > { %s3986_s8 = sshra.s32 %s231_s16, 4  ;;  %s3993_s12 = scalar_lea.hbm %s6486_s0, 128  ;;  %s3987_s8 = int_to_ptr.hbm [resolvable:$true] %s3986_s8 }
  0x22   : > { %s3988_s27 = scalar_lea.hbm %s3987_s8, 64  ;;  %p3990_p10 = pneg %p4226_p9 }
  0x23   : > { %p3989_p2 = scmp.ne.s32.totalorder %s3987_s8, %s3988_s27  ;;  %p3994_p0 = scmp.lt.s32.totalorder %s3987_s8, %s6486_s0 }
  0x24   : > { %p3995_p5 = scmp.lt.s32.totalorder %s3993_s12, %s3988_s27 }
  0x25   : > { %p3991_p12 = pnand %p3990_p10, %p3989_p2 }
  0x26   : > { %p3996_p7 = por %p3995_p5, %p3994_p0 }
  0x27   : > { %p3992_p13 = pneg %p3991_p12 }
  0x29   : > { %p3997_p11 = pnand %p3996_p7, %p3992_p13 }
  0x2b   : > { %4000 = shalt.err (!%p3997_p11)
}
  0x2c   : > { %s6524_s7 = smov 64   ;;  %244 = sbr.rel (%p4174_p8) target bundleno = 910 (0x38e), region = 40 }
  0x2d   : > { %3745 = dma.hbm_to_vmem [thread:$0]  (!%p4226_p9), %s231_s16, 1024, %s233_s23, %s221_s6, %s6524_s7, %s6524_s7, %s4098_s28  }
  0x31   : > { %s4246_s17 = sand.u32 1, %s4082_s19  }
  0x32   : > { %s3313_s27 = sshll.u32 %s4246_s17, 6  ;;  %s247_s8 = scalar_lea.sflag [#allocation3], %s4246_s17 }
  0x33   : > { %s4252_s11 = scalar_lea.vmem [#allocation2], %s3313_s27 }
  0x34   : > { %4061 = dma.done.wait (%p4161_p4), %s247_s8, 1024  }
  0x35   : > { %4063 = vsyncadd (%p4161_p4), %s247_s8, 4294966272 }
  0x36   : > { %4065 = dma.done.wait (%p44_p1), [#allocation6], 3120  }
  0x37   : > { %4067 = vsyncadd (%p44_p1), [#allocation6], 4294964176 }
  0x38   : > { %4069 = dma.done.wait (%p44_p1), [#allocation9], 3072  }
  0x39   : > { %4071 = vsyncadd (%p44_p1), [#allocation9], 4294964224  ;;  %v3436_v0 = vld [vmem:[#allocation5 + $0xa8] sm:$0xf]  ;;  %v3626_v1 = vld [vmem:[#allocation5 + $0xb0] sm:$0xf0] }
  0x3a   : > { %v3424_v2 = vld [vmem:[#allocation5 + $0x90] sm:$0xf]  ;;  %v3437_v3 = vor.u32 %v3626_v1, %v3436_v0  ;;  %v3623_v4 = vld [vmem:[#allocation5 + $0x98] sm:$0xf0]  ;;  %v3625_v5 = vld [vmem:[#allocation5 + $0xac] sm:$0xf] }
  0x3b   : > { %v3438_v6 = vld [vmem:[#allocation5 + $0xb4] sm:$0xf0]  ;;  %v3622_v8 = vld [vmem:[#allocation5 + $0x94] sm:$0xf]  ;;  %v3425_v9 = vor.u32 %v3623_v4, %v3424_v2  ;;  %v3426_v10 = vld [vmem:[#allocation5 + $0x9c] sm:$0xf0] }
  0x3c   : > { %v3441_v7 = vor.u32 %v3625_v5, %v3438_v6  ;;  %527 = vmatpush.bf16.msra.mxu0 %v3437_v3  ;;  %3700 = vmatpush.bf16.msra.mxu2 %v3437_v3  ;;  %v3412_v11 = vld [vmem:[#allocation5 + $0x78] sm:$0xf]  ;;  %v3620_v12 = vld [vmem:[#allocation5 + $0x80] sm:$0xf0]  ;;  %v3429_v13 = vor.u32 %v3622_v8, %v3426_v10  ;;  %v3619_v14 = vld [vmem:[#allocation5 + $0x7c] sm:$0xf] }
  0x3d   : > { %v3414_v15 = vld [vmem:[#allocation5 + $0x84] sm:$0xf0]  ;;  %v3413_v16 = vor.u32 %v3620_v12, %v3412_v11  ;;  %v3400_v17 = vld [vmem:[#allocation5 + $0x60] sm:$0xf]  ;;  %v3617_v18 = vld [vmem:[#allocation5 + $0x68] sm:$0xf0] }
  0x3e   : > { %576 = vmatpush.bf16.msra.mxu1 %v3441_v7  ;;  %3708 = vmatpush.bf16.msra.mxu3 %v3441_v7  ;;  %v3417_v19 = vor.u32 %v3619_v14, %v3414_v15  ;;  %v3616_v20 = vld [vmem:[#allocation5 + $0x64] sm:$0xf]  ;;  %v3402_v21 = vld [vmem:[#allocation5 + $0x6c] sm:$0xf0]  ;;  %v3401_v22 = vor.u32 %v3617_v18, %v3400_v17  ;;  %v3388_v23 = vld [vmem:[#allocation5 + $0x48] sm:$0xf] }
  0x3f   : > { %v3614_v24 = vld [vmem:[#allocation5 + $0x50] sm:$0xf0]  ;;  %v3405_v25 = vor.u32 %v3616_v20, %v3402_v21  ;;  %v3613_v26 = vld [vmem:[#allocation5 + $0x4c] sm:$0xf]  ;;  %v3390_v27 = vld [vmem:[#allocation5 + $0x54] sm:$0xf0] }
  0x40   : > { %528 = vmatpush.bf16.msra.mxu0 %v3425_v9  ;;  %3701 = vmatpush.bf16.msra.mxu2 %v3425_v9  ;;  %v3389_v28 = vor.u32 %v3614_v24, %v3388_v23  ;;  %v3376_v29 = vld [vmem:[#allocation5 + $0x30] sm:$0xf]  ;;  %v3611_v30 = vld [vmem:[#allocation5 + $0x38] sm:$0xf0]  ;;  %v3393_v31 = vor.u32 %v3613_v26, %v3390_v27  ;;  %v3610_v32 = vld [vmem:[#allocation5 + $0x34] sm:$0xf] }
  0x41   : > { %v3378_v33 = vld [vmem:[#allocation5 + $0x3c] sm:$0xf0]  ;;  %v3377_v34 = vor.u32 %v3611_v30, %v3376_v29  ;;  %v3364_v35 = vld [vmem:[#allocation5 + $0x18] sm:$0xf]  ;;  %v3608_v36 = vld [vmem:[#allocation5 + $0x20] sm:$0xf0] }
  0x42   : > { %577 = vmatpush.bf16.msra.mxu1 %v3429_v13  ;;  %3709 = vmatpush.bf16.msra.mxu3 %v3429_v13  ;;  %v3381_v37 = vor.u32 %v3610_v32, %v3378_v33  ;;  %v3607_v38 = vld [vmem:[#allocation5 + $0x1c] sm:$0xf]  ;;  %v3366_v39 = vld [vmem:[#allocation5 + $0x24] sm:$0xf0]  ;;  %v3365_v40 = vor.u32 %v3608_v36, %v3364_v35  ;;  %v3352_v41 = vld [vmem:[#allocation5] sm:$0xf] }
  0x43   : > { %v3605_v42 = vld [vmem:[#allocation5 + $0x8] sm:$0xf0]  ;;  %v3369_v43 = vor.u32 %v3607_v38, %v3366_v39  ;;  %v3444_v44 = vld [vmem:[#allocation5 + $0xb0] sm:$0xf]  ;;  %v3627_v45 = vld [vmem:[#allocation5 + $0xb8] sm:$0xf0] }
  0x44   : > { %529 = vmatpush.bf16.msra.mxu0 %v3413_v16  ;;  %3702 = vmatpush.bf16.msra.mxu2 %v3413_v16  ;;  %v3604_v46 = vld [vmem:[#allocation5 + $0x4] sm:$0xf]  ;;  %v3354_v47 = vld [vmem:[#allocation5 + $0xc] sm:$0xf0]  ;;  %v3353_v48 = vor.u32 %v3605_v42, %v3352_v41  ;;  %v3445_v49 = vor.u32 %v3627_v45, %v3444_v44  ;;  %v3432_v51 = vld [vmem:[#allocation5 + $0x98] sm:$0xf] }
  0x45   : > { %v3357_v50 = vor.u32 %v3604_v46, %v3354_v47  ;;  %v3624_v52 = vld [vmem:[#allocation5 + $0xa0] sm:$0xf0]  ;;  %v3420_v56 = vld [vmem:[#allocation5 + $0x80] sm:$0xf]  ;;  %v3621_v57 = vld [vmem:[#allocation5 + $0x88] sm:$0xf0] }
  0x46   : > { %578 = vmatpush.bf16.msra.mxu1 %v3417_v19  ;;  %3710 = vmatpush.bf16.msra.mxu3 %v3417_v19  ;;  %v3596_v53 = vld [vmem:[%s4252_s11] sm:$0xff]  ;;  %v3433_v55 = vor.u32 %v3624_v52, %v3432_v51  ;;  %v3421_v58 = vor.u32 %v3621_v57, %v3420_v56  ;;  %v3408_v59 = vld [vmem:[#allocation5 + $0x68] sm:$0xf]  ;;  %v3618_v60 = vld [vmem:[#allocation5 + $0x70] sm:$0xf0]  ;;  %s6425_s28 = scalar_lea.vmem [#allocation10], %s3313_s27 }
  0x47   : > { %v4268_v54 = vld [vmem:[%s4252_s11 + $0x20] sm:$0xff]  ;;  %v3409_v61 = vor.u32 %v3618_v60, %v3408_v59  ;;  %v3396_v62 = vld [vmem:[#allocation5 + $0x50] sm:$0xf]  ;;  %v3615_v63 = vld [vmem:[#allocation5 + $0x58] sm:$0xf0]  ;;  %s3652_s16 = sshll.u32 %s4152_s22, 6 }
  0x48   : > { %530 = vmatpush.bf16.msra.mxu0 %v3401_v22  ;;  %3703 = vmatpush.bf16.msra.mxu2 %v3401_v22  ;;  %v3397_v0 = vor.u32 %v3615_v63, %v3396_v62  ;;  %v3384_v1 = vld [vmem:[#allocation5 + $0x38] sm:$0xf]  ;;  %v3612_v2 = vld [vmem:[#allocation5 + $0x40] sm:$0xf0]  ;;  %v3597_v3 = vld [vmem:[%s4252_s11 + $0x8] sm:$0xff]  ;;  %s3197_s6 = scalar_lea.hbm %s6491_s5, %s3652_s16  ;;  %s3198_s13 = sshll.u32 %s6425_s28, 4  ;;  %s3199_s13 = int_to_ptr.vmem [resolvable:$true] %s3198_s13 }
  0x49   : > { %v4274_v4 = vld [vmem:[%s4252_s11 + $0x28] sm:$0xff]  ;;  %v3385_v5 = vor.u32 %v3612_v2, %v3384_v1  ;;  %v3372_v6 = vld [vmem:[#allocation5 + $0x20] sm:$0xf]  ;;  %v3606_v10 = vld [vmem:[#allocation5 + $0x10] sm:$0xf0]  ;;  %s3200_s12 = sshll.u32 %s3197_s6, 4  ;;  %s3201_s12 = int_to_ptr.hbm [resolvable:$true] %s3200_s12 }
  0x4a   : > { %579 = vmatpush.bf16.msra.mxu1 %v3405_v25  ;;  %3711 = vmatpush.bf16.msra.mxu3 %v3405_v25  ;;  %v3609_v7 = vld [vmem:[#allocation5 + $0x28] sm:$0xf0]  ;;  %v3360_v9 = vld [vmem:[#allocation5 + $0x8] sm:$0xf]  ;;  %v3598_v12 = vld [vmem:[%s4252_s11 + $0x10] sm:$0xff]  ;;  %s3186_s22 = scalar_lea.sflag [#allocation4], %s4246_s17 }
  0x4b   : > { %v3373_v8 = vor.u32 %v3609_v7, %v3372_v6  ;;  %v3361_v11 = vor.u32 %v3606_v10, %v3360_v9  ;;  %v4280_v13 = vld [vmem:[%s4252_s11 + $0x30] sm:$0xff]  ;;  %v3599_v14 = vld [vmem:[%s4252_s11 + $0x18] sm:$0xff]  ;;  %v4290_v16 = vld [vmem:[#allocation7] sm:$0x7]  ;;  %s4030_s14 = sshra.s32 %s3201_s12, 4  ;;  %s4036_s8 = scalar_lea.hbm %s6491_s5, 128  ;;  %s4031_s14 = int_to_ptr.hbm [resolvable:$true] %s4030_s14 }
  0x4c   : > { %531 = vmatpush.bf16.msra.mxu0 %v3389_v28  ;;  %3704 = vmatpush.bf16.msra.mxu2 %v3389_v28  ;;  %v4286_v15 = vld [vmem:[%s4252_s11 + $0x38] sm:$0xff]  ;;  %v4293_v17 = vperm.slane %v4290_v16, 1  ;;  %v4296_v18 = vperm.slane %v4290_v16, 0  ;;  %s4032_s15 = scalar_lea.hbm %s4031_s14, 64  ;;  %p4037_p11 = scmp.lt.s32.totalorder %s4031_s14, %s6491_s5 }
  0x4d   : > { %v3635_v10 = vld [vmem:[#allocation8 + $0x38] sm:$0xff]  ;;  %p4033_p1 = scmp.ne.s32.totalorder %s4031_s14, %s4032_s15  ;;  %p4038_p9 = scmp.lt.s32.totalorder %s4036_s8, %s4032_s15 }
  0x4e   : > { %580 = vmatpush.bf16.msra.mxu1 %v3393_v31  ;;  %3712 = vmatpush.bf16.msra.mxu3 %v3393_v31 }
  0x4f   : > { %p4034_p4 = pnand %p4033_p1, %p4216_p3  ;;  %p4039_p2 = por %p4038_p9, %p4037_p11 }
  0x50   : > { %532 = vmatpush.bf16.msra.mxu0 %v3377_v34  ;;  %3705 = vmatpush.bf16.msra.mxu2 %v3377_v34 }
  0x51   : > { %p4035_p8 = pneg %p4034_p4 }
  0x52   : > { %581 = vmatpush.bf16.msra.mxu1 %v3381_v37  ;;  %3713 = vmatpush.bf16.msra.mxu3 %v3381_v37 }
  0x53   : > { %p4040_p10 = pnand %p4039_p2, %p4035_p8 }
  0x54   : > { %533 = vmatpush.bf16.msra.mxu0 %v3365_v40  ;;  %3706 = vmatpush.bf16.msra.mxu2 %v3365_v40 }
  0x56   : > { %582 = vmatpush.bf16.msra.mxu1 %v3369_v43  ;;  %3714 = vmatpush.bf16.msra.mxu3 %v3369_v43 }
  0x58   : > { %534 = vmatpush.bf16.msra.mxu0 %v3353_v48  ;;  %3707 = vmatpush.bf16.msra.mxu2 %v3353_v48 }
  0x5a   : > { %583 = vmatpush.bf16.msra.mxu1 %v3357_v50  ;;  %3715 = vmatpush.bf16.msra.mxu3 %v3357_v50 }
  0x5b   : > { %535 = vmatmul.bf16.vlgmr.msra.gmra.mxu0 %v3596_v53  ;;  %555 = vmatmul.bf16.vlgmr.msra.gmra.mxu2 %v4268_v54 }
  0x5c   : > { %625 = vmatpush.bf16.msrb.mxu2 %v3445_v49 }
  0x5d   : > { %584 = vmatmul.bf16.vlgmr.msra.gmra.mxu1 %v3596_v53  ;;  %604 = vmatmul.bf16.vlgmr.msra.gmra.mxu3 %v4268_v54 }
  0x5e   : > { %3006 = vmatpush.bf16.msrb.mxu3 %v3635_v10 }
  0x60   : > { %626 = vmatpush.bf16.msrb.mxu2 %v3433_v55 }
  0x64   : > { %627 = vmatpush.bf16.msrb.mxu2 %v3421_v58 }
  0x68   : > { %628 = vmatpush.bf16.msrb.mxu2 %v3409_v61 }
  0x6b   : > { %540 = vmatmul.bf16.gmra.mxu0 %v3597_v3  ;;  %560 = vmatmul.bf16.gmra.mxu2 %v4274_v4 }
  0x6c   : > { %629 = vmatpush.bf16.msrb.mxu2 %v3397_v0 }
  0x6d   : > { %589 = vmatmul.bf16.gmra.mxu1 %v3597_v3  ;;  %609 = vmatmul.bf16.gmra.mxu3 %v4274_v4 }
  0x70   : > { %630 = vmatpush.bf16.msrb.mxu2 %v3385_v5 }
  0x74   : > { %631 = vmatpush.bf16.msrb.mxu2 %v3373_v8 }
  0x78   : > { %632 = vmatpush.bf16.msrb.mxu2 %v3361_v11 }
  0x7b   : > { %545 = vmatmul.bf16.gmra.mxu0 %v3598_v12  ;;  %565 = vmatmul.bf16.gmra.mxu2 %v4280_v13 }
  0x7d   : > { %594 = vmatmul.bf16.gmra.mxu1 %v3598_v12  ;;  %614 = vmatmul.bf16.gmra.mxu3 %v4280_v13 }
  0x8b   : > { %550 = vmatmul.bf16.gmra.mxu0 %v3599_v14  ;;  %570 = vmatmul.bf16.gmra.mxu2 %v4286_v15 }
  0x8d   : > { %599 = vmatmul.bf16.gmra.mxu1 %v3599_v14  ;;  %619 = vmatmul.bf16.gmra.mxu3 %v4286_v15 }
  0x9b   : > { %633 = vmatmul.bf16.vlgmr.msrb.gmra.mxu2 %v3596_v53 }
  0xab   : > { %638 = vmatmul.bf16.gmra.mxu2 %v3597_v3 }
  0xbb   : > { %643 = vmatmul.bf16.gmra.mxu2 %v3598_v12 }
  0xcb   : > { %648 = vmatmul.bf16.gmra.mxu2 %v3599_v14 }
  0xd8   : > { %v536_v19 = vpop.f32.mrf.mxu0 }
  0xd9   : > { %v4299_v20 = vadd.f32 %v536_v19, %v4296_v18 }
  0xda   : > { %v585_v21 = vpop.f32.mrf.mxu1 }
  0xdb   : > { %v4302_v22 = vadd.f32 %v585_v21, %v4293_v17  ;;  %v4305_v23 = vmul.f32 0.70710677, %v4299_v20  ;;  %653 = vmatmul.bf16.gmra.mxu2 %v4268_v54 }
  0xdd   : > { %v4309_v24 = vmul.f32 0.70710677, %v4302_v22  ;;  %v770_v25 = vmul.f32 %v4305_v23, %v4305_v23 }
  0xde   : > { %v556_v40 = vpop.f32.mrf.mxu2 }
  0xdf   : > { %v810_v26 = vmul.f32 %v4309_v24, %v4309_v24  ;;  %v4315_v27 = vmin.f32 %v770_v25, 16.0  ;;  %v4336_v46 = vadd.f32 %v556_v40, %v4296_v18 }
  0xe0   : > { %v538_v29 = vpop.f32.mrf.mxu0 }
  0xe1   : > { %v4317_v28 = vmin.f32 %v810_v26, 16.0  ;;  %v783_v30 = vmul.f32 3.8918573e-05, %v4315_v27  ;;  %v4321_v31 = vadd.f32 %v538_v29, %v4296_v18  ;;  %v772_v50 = vmul.f32 2.1237322e-06, %v4315_v27 }
  0xe2   : > { %v587_v43 = vpop.f32.mrf.mxu1  ;;  %v4345_v52 = vmul.f32 0.70710677, %v4336_v46 }
  0xe3   : > { %v823_v32 = vmul.f32 3.8918573e-05, %v4317_v28  ;;  %v784_v33 = vadd.f32 0.001143296, %v783_v30  ;;  %v4325_v34 = vmul.f32 0.70710677, %v4321_v31  ;;  %v4340_v48 = vadd.f32 %v587_v43, %v4293_v17 }
  0xe4   : > { %v812_v56 = vmul.f32 2.1237322e-06, %v4317_v28  ;;  %v773_v58 = vadd.f32 0.00028619796, %v772_v50  ;;  %v1730_v60 = vmul.f32 %v4345_v52, %v4345_v52  ;;  %v3634_v30 = vld [vmem:[#allocation8 + $0x30] sm:$0xff] }
  0xe5   : > { %v824_v35 = vadd.f32 0.001143296, %v823_v32  ;;  %v785_v36 = vmul.f32 %v784_v33, %v4315_v27  ;;  %v890_v37 = vmul.f32 %v4325_v34, %v4325_v34  ;;  %v4348_v54 = vmul.f32 0.70710677, %v4340_v48  ;;  %3007 = vmatpush.bf16.msrb.mxu3 %v3634_v30 }
  0xe6   : > { %v813_v0 = vadd.f32 0.00028619796, %v812_v56  ;;  %v774_v1 = vmul.f32 %v773_v58, %v4315_v27  ;;  %v4359_v3 = vmin.f32 %v1730_v60, 16.0  ;;  %v3643_v56 = vld [vmem:[#allocation8 + $0x78] sm:$0xff] }
  0xe7   : > { %v825_v38 = vmul.f32 %v824_v35, %v4317_v28  ;;  %v786_v39 = vadd.f32 0.014752088, %v785_v36  ;;  %v4331_v41 = vmin.f32 %v890_v37, 16.0  ;;  %v930_v62 = vmul.f32 %v4348_v54, %v4348_v54  ;;  %v558_v36 = vpop.f32.mrf.mxu2  ;;  %3055 = vmatpush.bf16.msrb.mxu0 %v3643_v56 }
  0xe8   : > { %6525 = vst [vmem:[#allocation15_spill] sm:$0xff] %v4359_v3  ;;  %v814_v7 = vmul.f32 %v813_v0, %v4317_v28  ;;  %v775_v8 = vadd.f32 0.0036580483, %v774_v1  ;;  %v1732_v11 = vmul.f32 2.1237322e-06, %v4359_v3 }
  0xe9   : > { %v826_v42 = vadd.f32 0.014752088, %v825_v38  ;;  %v787_v44 = vmul.f32 %v786_v39, %v4315_v27  ;;  %v903_v47 = vmul.f32 3.8918573e-05, %v4331_v41  ;;  %v4362_v5 = vmin.f32 %v930_v62, 16.0 }
  0xea   : > { %v815_v21 = vadd.f32 0.0036580483, %v814_v7  ;;  %v776_v25 = vmul.f32 %v775_v8, %v4315_v27  ;;  %v892_v29 = vmul.f32 2.1237322e-06, %v4331_v41  ;;  %v1733_v32 = vadd.f32 0.00028619796, %v1732_v11 }
  0xeb   : > { %v827_v45 = vmul.f32 %v826_v42, %v4317_v28  ;;  %658 = vmatmul.bf16.gmra.mxu2 %v4274_v4  ;;  %v788_v49 = vadd.f32 0.112945676, %v787_v44  ;;  %v904_v53 = vadd.f32 0.001143296, %v903_v47  ;;  %v943_v14 = vmul.f32 3.8918573e-05, %v4362_v5 }
  0xec   : > { %v777_v37 = vadd.f32 0.05243302, %v776_v25  ;;  %v893_v38 = vadd.f32 0.00028619796, %v892_v29  ;;  %v932_v39 = vmul.f32 2.1237322e-06, %v4362_v5  ;;  %v1734_v40 = vmul.f32 %v1733_v32, %v4359_v3 }
  0xed   : > { %v828_v51 = vadd.f32 0.112945676, %v827_v45  ;;  %v789_v55 = vmul.f32 %v788_v49, %v4315_v27  ;;  %v905_v57 = vmul.f32 %v904_v53, %v4331_v41  ;;  %v944_v35 = vadd.f32 0.001143296, %v943_v14  ;;  %v3633_v7 = vld [vmem:[#allocation8 + $0x28] sm:$0xff]  ;;  %v3642_v11 = vld [vmem:[#allocation8 + $0x70] sm:$0xff] }
  0xee   : > { %v4383_v42 = vadd.f32 %v558_v36, %v4296_v18  ;;  %v778_v47 = vmul.f32 %v777_v37, %v4315_v27  ;;  %v894_v49 = vmul.f32 %v893_v38, %v4331_v41  ;;  %v933_v50 = vadd.f32 0.00028619796, %v932_v39  ;;  %3008 = vmatpush.bf16.msrb.mxu3 %v3633_v7  ;;  %3056 = vmatpush.bf16.msrb.mxu0 %v3642_v11 }
  0xef   : > { %v829_v59 = vmul.f32 %v828_v51, %v4317_v28  ;;  %v906_v61 = vadd.f32 0.014752088, %v905_v57  ;;  %v790_v63 = vadd.f32 0.4994258, %v789_v55  ;;  %v945_v44 = vmul.f32 %v944_v35, %v4362_v5  ;;  %v3632_v35 = vld [vmem:[#allocation8 + $0x20] sm:$0xff]  ;;  %v561_v56 = vpop.f32.mrf.mxu2 }
  0xf0   : > { %v1735_v53 = vadd.f32 0.0036580483, %v1734_v40  ;;  %v4391_v55 = vmul.f32 0.70710677, %v4383_v42  ;;  %v934_v0 = vmul.f32 %v933_v50, %v4362_v5  ;;  %v4421_v37 = vmul.f32 0.5, %v4299_v20  ;;  %v3641_v40 = vld [vmem:[#allocation8 + $0x68] sm:$0xff] }
  0xf1   : > { %v830_v2 = vadd.f32 0.4994258, %v829_v59  ;;  %v907_v4 = vmul.f32 %v906_v61, %v4331_v41  ;;  %v791_v6 = vmul.f32 %v790_v63, %v4315_v27  ;;  %v946_v59 = vadd.f32 0.014752088, %v945_v44 }
  0xf2   : > { %v779_v61 = vadd.f32 0.18741608, %v778_v47  ;;  %v895_v63 = vadd.f32 0.0036580483, %v894_v49  ;;  %v935_v29 = vadd.f32 0.0036580483, %v934_v0  ;;  %3009 = vmatpush.bf16.msrb.mxu3 %v3632_v35  ;;  %3057 = vmatpush.bf16.msrb.mxu0 %v3641_v40  ;;  %v4463_v11 = vadd.f32 %v561_v56, %v4296_v18 }
  0xf3   : > { %v831_v9 = vmul.f32 %v830_v2, %v4317_v28  ;;  %v908_v12 = vadd.f32 0.112945676, %v907_v4  ;;  %v4370_v19 = vadd.f32 1.0, %v791_v6  ;;  %v1736_v2 = vmul.f32 %v1735_v53, %v4359_v3  ;;  %v541_v6 = vpop.f32.mrf.mxu0 }
  0xf4   : > { %v1850_v4 = vmul.f32 %v4391_v55, %v4391_v55  ;;  %v4409_v10 = vadd.f32 %v541_v6, %v4296_v18  ;;  %v780_v14 = vmul.f32 %v779_v61, %v4315_v27  ;;  %v896_v25 = vmul.f32 %v895_v63, %v4331_v41  ;;  %v3640_v61 = vld [vmem:[#allocation8 + $0x60] sm:$0xff] }
  0xf5   : > { %v4373_v26 = vadd.f32 1.0, %v831_v9  ;;  %v909_v33 = vmul.f32 %v908_v12, %v4331_v41  ;;  %3800 = vrcp.f32 %v4370_v19  ;;  %v947_v9 = vmul.f32 %v946_v59, %v4362_v5 }
  0xf6   : > { %v1737_v32 = vadd.f32 0.05243302, %v1736_v2  ;;  %v4425_v38 = vmul.f32 0.5, %v4336_v46  ;;  %v936_v47 = vmul.f32 %v935_v29, %v4362_v5  ;;  %v802_v49 = vand.u32 2147483647, %v4370_v19  ;;  %3058 = vmatpush.bf16.msrb.mxu0 %v3640_v61 }
  0xf7   : > { %3802 = vrcp.f32 %v4373_v26  ;;  %v910_v43 = vadd.f32 0.4994258, %v909_v33  ;;  %v4414_v33 = vmin.f32 %v1850_v4, 16.0  ;;  %v948_v36 = vadd.f32 0.112945676, %v947_v9 }
  0xf8   : > { %6527 = vst [vmem:[#allocation17_spill] sm:$0xff] %v4425_v38  ;;  %vm798_vm0 = vweird.f32 %v4370_v19  ;;  %v804_v59 = vand.u32 2147483648, %v4370_v19  ;;  %vm838_vm2 = vweird.f32 %v4373_v26  ;;  %v937_v2 = vadd.f32 0.05243302, %v936_v47 }
  0xf9   : > { %v911_v58 = vmul.f32 %v910_v43, %v4331_v41  ;;  %6526 = vst [vmem:[#allocation16_spill] sm:$0xff] %v4414_v33  ;;  %v781_v43 = vadd.f32 1.1283791, %v780_v14  ;;  %v1852_v46 = vmul.f32 2.1237322e-06, %v4414_v33  ;;  %v949_v50 = vmul.f32 %v948_v36, %v4362_v5 }
  0xfa   : > { %vm4457_vm5 = vcmp.eq.f32.partialorder %v802_v49, 8.507059e+37  ;;  %v805_v29 = vor.u32 1.1754944e-38, %v804_v59  ;;  %v4495_v47 = vmul.f32 0.70710677, %v4463_v11 }
  0xfb   : > { %663 = vmatmul.bf16.gmra.mxu2 %v4280_v13  ;;  %v816_v13 = vmul.f32 %v815_v21, %v4317_v28  ;;  %v4388_v51 = vpop.eup %3800  ;;  %v4405_v8 = vadd.f32 1.0, %v911_v58  ;;  %v3631_v58 = vld [vmem:[#allocation8 + $0x18] sm:$0xff]  ;;  %v1853_v9 = vadd.f32 0.00028619796, %v1852_v46  ;;  %v950_v14 = vadd.f32 0.4994258, %v949_v50  ;;  %v543_v46 = vpop.f32.mrf.mxu0 }
  0xfc   : > { %v794_v62 = vmul.f32 %v4388_v51, %v4370_v19  ;;  %vm799_vm1 = vweird.f32 %v4388_v51  ;;  %3010 = vmatpush.bf16.msrb.mxu3 %v3631_v58  ;;  %v782_v50 = vmul.f32 %v781_v43, %v4305_v23  ;;  %v4507_v58 = vmul.f32 0.5, %v4383_v42 }
  0xfd   : > { %v817_v45 = vadd.f32 0.05243302, %v816_v13  ;;  %v4393_v57 = vpop.eup %3802  ;;  %3804 = vrcp.f32 %v4405_v8  ;;  %v4418_v13 = vmul.f32 0.70710677, %v4409_v10  ;;  %vm4453_vm4 = vmor %vm798_vm0, %vm799_vm1  ;;  %v1970_v43 = vmul.f32 %v4495_v47, %v4495_v47 }
  0xfe   : > { %v834_v1 = vmul.f32 %v4393_v57, %v4373_v26  ;;  %v795_v21 = vsub.f32 1.0, %v794_v62  ;;  %vm839_vm3 = vweird.f32 %v4393_v57  ;;  %6536 = vst [vmem:[#allocation18_spill] sm:$0xff] %v4507_v58  ;;  %vm918_vm8 = vweird.f32 %v4405_v8 }
  0xff   : > { %v818_v60 = vmul.f32 %v817_v45, %v4317_v28  ;;  %v897_v45 = vadd.f32 0.05243302, %v896_v25  ;;  %v1010_v53 = vmul.f32 %v4418_v13, %v4418_v13  ;;  %vm4469_vm6 = vmor %vm838_vm2, %vm839_vm3  ;;  %v3630_v25 = vld [vmem:[#allocation8 + $0x10] sm:$0xff] }
 0x100   : > { %v835_v30 = vsub.f32 1.0, %v834_v1  ;;  %v796_v44 = vmul.f32 %v4388_v51, %v795_v21  ;;  %v844_v1 = vand.u32 2147483648, %v4373_v26  ;;  %3011 = vmatpush.bf16.msrb.mxu3 %v3630_v25 }
 0x101   : > { %v819_v12 = vadd.f32 0.18741608, %v818_v60  ;;  %v842_v60 = vand.u32 2147483647, %v4373_v26  ;;  %v4473_v21 = vmin.f32 %v1010_v53, 16.0 }
 0x102   : > { %v836_v20 = vmul.f32 %v4393_v57, %v835_v30  ;;  %v797_v63 = vadd.f32 %v4388_v51, %v796_v44  ;;  %v845_v36 = vor.u32 1.1754944e-38, %v844_v1  ;;  %v1854_v44 = vmul.f32 %v1853_v9, %v4414_v33  ;;  %v563_v9 = vpop.f32.mrf.mxu2 }
 0x103   : > { %v820_v27 = vmul.f32 %v819_v12, %v4317_v28  ;;  %v1738_v28 = vmul.f32 %v1737_v32, %v4359_v3  ;;  %v4445_v62 = vpop.eup %3804  ;;  %vm4475_vm7 = vcmp.eq.f32.partialorder %v842_v60, 8.507059e+37  ;;  %v898_v32 = vmul.f32 %v897_v45, %v4331_v41 }
 0x104   : > { %v837_v7 = vadd.f32 %v4393_v57, %v836_v20  ;;  %v914_v35 = vmul.f32 %v4445_v62, %v4405_v8  ;;  %v801_v26 = vsel %vm4453_vm4, %v4388_v51, %v797_v63  ;;  %v4498_v51 = vmul.f32 0.5, %v4302_v22 }
 0x105   : > { %v821_v0 = vadd.f32 1.1283791, %v820_v27  ;;  %v1739_v12 = vadd.f32 0.18741608, %v1738_v28  ;;  %v1012_v27 = vmul.f32 2.1237322e-06, %v4473_v21  ;;  %v951_v28 = vmul.f32 %v950_v14, %v4362_v5 }
 0x106   : > { %v841_v40 = vsel %vm4469_vm6, %v4393_v57, %v837_v7  ;;  %v4502_v20 = vmul.f32 0.5, %v4321_v31  ;;  %v3639_v57 = vld [vmem:[#allocation8 + $0x58] sm:$0xff]  ;;  %v899_v53 = vadd.f32 0.18741608, %v898_v32  ;;  %v915_v56 = vsub.f32 1.0, %v914_v35  ;;  %v3629_v14 = vld [vmem:[#allocation8 + $0x8] sm:$0xff] }
 0x107   : > { %v1740_v49 = vmul.f32 %v1739_v12, %v4359_v3  ;;  %v806_v22 = vsel %vm4457_vm5, %v805_v29, %v801_v26  ;;  %v822_v59 = vmul.f32 %v821_v0, %v4309_v24  ;;  %v846_v31 = vsel %vm4475_vm7, %v845_v36, %v841_v40  ;;  %3059 = vmatpush.bf16.msrb.mxu0 %v3639_v57  ;;  %v3638_v32 = vld [vmem:[#allocation8 + $0x50] sm:$0xff]  ;;  %v546_v57 = vpop.f32.mrf.mxu0 }
 0x108   : > { %v1855_v61 = vadd.f32 0.0036580483, %v1854_v44  ;;  %v1013_v63 = vadd.f32 0.00028619796, %v1012_v27  ;;  %v4521_v4 = vadd.f32 1.0, %v951_v28  ;;  %v4524_v24 = vadd.f32 %v543_v46, %v4296_v18  ;;  %3012 = vmatpush.bf16.msrb.mxu3 %v3629_v14 }
 0x109   : > { %v1741_v1 = vadd.f32 1.1283791, %v1740_v49  ;;  %v807_v0 = vmul.f32 %v806_v22, %v782_v50  ;;  %v900_v6 = vmul.f32 %v899_v53, %v4331_v41  ;;  %v916_v7 = vmul.f32 %v4445_v62, %v915_v56  ;;  %v3628_v50 = vld [vmem:[#allocation8] sm:$0xff] }
 0x10a   : > { %v847_v19 = vmul.f32 %v846_v31, %v822_v59  ;;  %vm919_vm9 = vweird.f32 %v4445_v62  ;;  %v924_v12 = vand.u32 2147483648, %v4405_v8  ;;  %v1856_v25 = vmul.f32 %v1855_v61, %v4414_v33 }
 0x10b   : > { %668 = vmatmul.bf16.gmra.mxu2 %v4286_v15  ;;  %v590_v15 = vpop.f32.mrf.mxu1  ;;  %v1014_v29 = vmul.f32 %v1013_v63, %v4473_v21  ;;  %v4536_v41 = vmin.f32 %v1970_v43, 16.0  ;;  %3806 = vrcp.f32 %v4521_v4  ;;  %v4540_v35 = vmul.f32 0.70710677, %v4524_v24  ;;  %3060 = vmatpush.bf16.msrb.mxu0 %v3638_v32  ;;  %vm4555_vm10 = vmor %vm918_vm8, %vm919_vm9 }
 0x10c   : > { %v4428_v39 = vadd.f32 %v590_v15, %v4293_v17  ;;  %v938_v15 = vmul.f32 %v937_v2, %v4362_v5  ;;  %v4519_v2 = vmul.f32 0.5, %v4340_v48  ;;  %v3446_v36 = vclamps-f32 %v807_v0, 1.0  ;;  %3013 = vmatpush.bf16.msrb.mxu3 %v3628_v50  ;;  %v3636_v50 = vld [vmem:[#allocation8 + $0x40] sm:$0xff] }
 0x10d   : > { %6537 = vst [vmem:[#allocation19_spill] sm:$0xff] %v4536_v41  ;;  %v922_v27 = vand.u32 2147483647, %v4405_v8  ;;  %v3447_v44 = vclamps-f32 %v847_v19, 1.0  ;;  %v901_v49 = vadd.f32 1.1283791, %v900_v6  ;;  %v4560_v53 = vmul.f32 %v1741_v1, %v4345_v52 }
 0x10e   : > { %v4492_v45 = vmul.f32 0.70710677, %v4428_v39  ;;  %v939_v60 = vadd.f32 0.18741608, %v938_v15  ;;  %v917_v15 = vadd.f32 %v4445_v62, %v916_v7  ;;  %v1857_v56 = vadd.f32 0.05243302, %v1856_v25 }
 0x10f   : > { %6540 = vst [vmem:[#allocation20_spill] sm:$0xff] %v4560_v53  ;;  %v1015_v22 = vadd.f32 0.0036580483, %v1014_v29  ;;  %v1972_v59 = vmul.f32 2.1237322e-06, %v4536_v41  ;;  %v925_v31 = vor.u32 1.1754944e-38, %v924_v12  ;;  %v902_v0 = vmul.f32 %v901_v49, %v4325_v34 }
 0x110   : > { %v1050_v23 = vmul.f32 %v4492_v45, %v4492_v45  ;;  %v940_v48 = vmul.f32 %v939_v60, %v4362_v5  ;;  %v4546_v5 = vadd.f32 %v563_v9, %v4296_v18  ;;  %v1130_v60 = vmul.f32 %v4540_v35, %v4540_v35  ;;  %v3637_v9 = vld [vmem:[#allocation8 + $0x48] sm:$0xff] }
 0x111   : > { %v2690_v63 = vadd.f32 1.0, %v3446_v36  ;;  %v921_v52 = vsel %vm4555_vm10, %v4445_v62, %v917_v15  ;;  %vm923_vm11 = vcmp.eq.f32.partialorder %v922_v27, 8.507059e+37  ;;  %v2691_v1 = vadd.f32 1.0, %v3447_v44  ;;  %3061 = vmatpush.bf16.msrb.mxu0 %v3637_v9 }
 0x112   : > { %v4534_v30 = vmin.f32 %v1050_v23, 16.0  ;;  %v941_v46 = vadd.f32 1.1283791, %v940_v48  ;;  %v4569_v61 = vmul.f32 0.70710677, %v4546_v5  ;;  %v4578_v6 = vmul.f32 0.5, %v4409_v10 }
 0x113   : > { %v592_v42 = vpop.f32.mrf.mxu1  ;;  %v4581_v7 = vmul.f32 0.5, %v4463_v11  ;;  %v1858_v62 = vmul.f32 %v1857_v56, %v4414_v33  ;;  %v1016_v12 = vmul.f32 %v1015_v22, %v4473_v21  ;;  %v1973_v48 = vadd.f32 0.00028619796, %v1972_v59  ;;  %v566_v11 = vpop.f32.mrf.mxu2 }
 0x114   : > { %v4543_v26 = vadd.f32 %v592_v42, %v4293_v17  ;;  %v1052_v40 = vmul.f32 2.1237322e-06, %v4534_v30  ;;  %v4574_v42 = vpop.eup %3806  ;;  %6541 = vst [vmem:[#allocation21_spill] sm:$0xff] %v4578_v6  ;;  %v4584_v19 = vmul.f32 %v941_v46, %v4348_v54  ;;  %v926_v14 = vsel %vm923_vm11, %v925_v31, %v921_v52  ;;  %v548_v22 = vpop.f32.mrf.mxu0 }
 0x115   : > { %6542 = vst [vmem:[#allocation22_spill] sm:$0xff] %v4581_v7  ;;  %v4588_v25 = vmin.f32 %v1130_v60, 16.0  ;;  %v2090_v10 = vmul.f32 %v4569_v61, %v4569_v61  ;;  %v4595_v29 = vmul.f32 %v2690_v63, %v4421_v37  ;;  %v954_v54 = vmul.f32 %v4574_v42, %v4521_v4  ;;  %3062 = vmatpush.bf16.msrb.mxu0 %v3636_v50 }
 0x116   : > { %v4566_v8 = vmul.f32 0.70710677, %v4543_v26  ;;  %v1053_v23 = vadd.f32 0.00028619796, %v1052_v40  ;;  %v4601_v36 = vadd.f32 %v546_v57, %v4296_v18  ;;  %v4604_v15 = vmul.f32 0.5, %v4428_v39 }
 0x117   : > { %v4607_v27 = vmul.f32 0.5, %v4524_v24  ;;  %v1132_v40 = vmul.f32 2.1237322e-06, %v4588_v25  ;;  %v927_v37 = vmul.f32 %v926_v14, %v902_v0  ;;  %v962_v49 = vand.u32 2147483647, %v4521_v4 }
 0x118   : > { %v1170_v34 = vmul.f32 %v4566_v8, %v4566_v8  ;;  %v1054_v32 = vmul.f32 %v1053_v23, %v4534_v30  ;;  %6543 = vst [vmem:[#allocation23_spill] sm:$0xff] %v4604_v15  ;;  %v1017_v28 = vadd.f32 0.05243302, %v1016_v12  ;;  %v1974_v46 = vmul.f32 %v1973_v48, %v4536_v41 }
 0x119   : > { %6544 = vst [vmem:[#allocation24_spill] sm:$0xff] %v4607_v27  ;;  %v1859_v57 = vadd.f32 0.18741608, %v1858_v62  ;;  %v4617_v39 = vmin.f32 %v2090_v10, 16.0  ;;  %v4620_v24 = vadd.f32 %v566_v11, %v4296_v18  ;;  %v955_v59 = vsub.f32 1.0, %v954_v54 }
 0x11a   : > { %v4615_v56 = vmin.f32 %v1170_v34, 16.0  ;;  %v964_v31 = vand.u32 2147483648, %v4521_v4  ;;  %v1055_v60 = vadd.f32 0.0036580483, %v1054_v32  ;;  %v4624_v63 = vmul.f32 0.70710677, %v4601_v36 }
 0x11b   : > { %v595_v43 = vpop.f32.mrf.mxu1  ;;  %6545 = vst [vmem:[#allocation25_spill] sm:$0xff] %v4617_v39  ;;  %v4627_v52 = vmul.f32 %v2691_v1, %v4498_v51  ;;  %v1133_v23 = vadd.f32 0.00028619796, %v1132_v40  ;;  %vm958_vm12 = vweird.f32 %v4521_v4  ;;  %v1018_v9 = vmul.f32 %v1017_v28, %v4473_v21 }
 0x11c   : > { %v4611_v44 = vadd.f32 %v595_v43, %v4293_v17  ;;  %v1172_v43 = vmul.f32 2.1237322e-06, %v4615_v56  ;;  %v1975_v62 = vadd.f32 0.0036580483, %v1974_v46  ;;  %v4636_v12 = vadd.f32 %v548_v22, %v4296_v18 }
 0x11d   : > { %v3449_v14 = vclamps-f32 %v927_v37, 1.0  ;;  %v1860_v34 = vmul.f32 %v1859_v57, %v4414_v33  ;;  %v2092_v51 = vmul.f32 2.1237322e-06, %v4617_v39  ;;  %v4641_v1 = vmul.f32 0.70710677, %v4620_v24  ;;  %v568_v57 = vpop.f32.mrf.mxu2 }
 0x11e   : > { %v4631_v0 = vmul.f32 0.70710677, %v4611_v44  ;;  %v956_v10 = vmul.f32 %v4574_v42, %v955_v59  ;;  %vm4644_vm13 = vcmp.eq.f32.partialorder %v962_v49, 8.507059e+37  ;;  %v965_v54 = vor.u32 1.1754944e-38, %v964_v31 }
 0x11f   : > { %v1056_v32 = vmul.f32 %v1055_v60, %v4534_v30  ;;  %v1250_v40 = vmul.f32 %v4624_v63, %v4624_v63  ;;  %v1134_v37 = vmul.f32 %v1133_v23, %v4588_v25  ;;  %v1173_v28 = vadd.f32 0.00028619796, %v1172_v43 }
 0x120   : > { %v1290_v46 = vmul.f32 %v4631_v0, %v4631_v0  ;;  %vm959_vm14 = vweird.f32 %v4574_v42  ;;  %v1019_v49 = vadd.f32 0.18741608, %v1018_v9  ;;  %v1976_v22 = vmul.f32 %v1975_v62, %v4536_v41 }
 0x121   : > { %v4660_v59 = vmul.f32 0.70710677, %v4636_v12  ;;  %v2693_v31 = vadd.f32 1.0, %v3449_v14  ;;  %v1861_v60 = vadd.f32 1.1283791, %v1860_v34  ;;  %v2210_v23 = vmul.f32 %v4641_v1, %v4641_v1  ;;  %vm4672_vm15 = vmor %vm958_vm12, %vm959_vm14 }
 0x122   : > { %v2093_v7 = vadd.f32 0.00028619796, %v2092_v51  ;;  %v957_v43 = vadd.f32 %v4574_v42, %v956_v10  ;;  %v1057_v58 = vadd.f32 0.05243302, %v1056_v32  ;;  %v4668_v38 = vadd.f32 %v568_v57, %v4296_v18 }
 0x123   : > { %v597_v48 = vpop.f32.mrf.mxu1  ;;  %v1135_v62 = vadd.f32 0.0036580483, %v1134_v37  ;;  %v1174_v14 = vmul.f32 %v1173_v28, %v4615_v56  ;;  %v4677_v34 = vmin.f32 %v1290_v46, 16.0  ;;  %v1020_v10 = vmul.f32 %v1019_v49, %v4473_v21 }
 0x124   : > { %v4655_v50 = vadd.f32 %v597_v48, %v4293_v17  ;;  %v4665_v48 = vmin.f32 %v1250_v40, 16.0  ;;  %v1977_v32 = vadd.f32 0.05243302, %v1976_v22  ;;  %v1370_v4 = vmul.f32 %v4660_v59, %v4660_v59 }
 0x125   : > { %v4687_v57 = vmul.f32 0.5, %v4543_v26  ;;  %v2094_v37 = vmul.f32 %v2093_v7, %v4617_v39  ;;  %v1292_v28 = vmul.f32 2.1237322e-06, %v4677_v34  ;;  %v4691_v46 = vmin.f32 %v2210_v23, 16.0 }
 0x126   : > { %v4680_v51 = vmul.f32 0.70710677, %v4655_v50  ;;  %v1252_v40 = vmul.f32 2.1237322e-06, %v4665_v48  ;;  %v4694_v53 = vmul.f32 %v2693_v31, %v4502_v20  ;;  %v961_v49 = vsel %vm4672_vm15, %v4574_v42, %v957_v43 }
 0x127   : > { %6550 = vst [vmem:[#allocation26_spill] sm:$0xff] %v4687_v57  ;;  %v4700_v22 = vmul.f32 %v1861_v60, %v4391_v55  ;;  %v4703_v33 = vmul.f32 0.70710677, %v4668_v38  ;;  %v1058_v26 = vmul.f32 %v1057_v58, %v4534_v30  ;;  %v1136_v7 = vmul.f32 %v1135_v62, %v4588_v25  ;;  %v551_v58 = vpop.f32.mrf.mxu0 }
 0x128   : > { %6551 = vst [vmem:[#allocation27_spill] sm:$0xff] %v4691_v46  ;;  %v1175_v3 = vadd.f32 0.0036580483, %v1174_v14  ;;  %v1410_v23 = vmul.f32 %v4680_v51, %v4680_v51  ;;  %v1021_v20 = vadd.f32 1.1283791, %v1020_v10  ;;  %v1978_v31 = vmul.f32 %v1977_v32, %v4536_v41 }
 0x129   : > { %6552 = vst [vmem:[#allocation28_spill] sm:$0xff] %v4700_v22  ;;  %v1253_v57 = vadd.f32 0.00028619796, %v1252_v40  ;;  %v4710_v9 = vmin.f32 %v1370_v4, 16.0  ;;  %v966_v55 = vsel %vm4644_vm13, %v965_v54, %v961_v49  ;;  %v2095_v42 = vadd.f32 0.0036580483, %v2094_v37  ;;  %v571_v22 = vpop.f32.mrf.mxu2 }
 0x12a   : > { %v1293_v60 = vadd.f32 0.00028619796, %v1292_v28  ;;  %v2212_v43 = vmul.f32 2.1237322e-06, %v4691_v46  ;;  %v4716_v62 = vmul.f32 0.5, %v4546_v5  ;;  %v2330_v10 = vmul.f32 %v4703_v33, %v4703_v33 }
 0x12b   : > { %v1372_v14 = vmul.f32 2.1237322e-06, %v4710_v9  ;;  %v4722_v32 = vadd.f32 %v551_v58, %v4296_v18  ;;  %v1059_v40 = vadd.f32 0.18741608, %v1058_v26  ;;  %v1137_v4 = vadd.f32 0.05243302, %v1136_v7  ;;  %v600_v37 = vpop.f32.mrf.mxu1 }
 0x12c   : > { %6553 = vst [vmem:[#allocation29_spill] sm:$0xff] %v4716_v62  ;;  %v1176_v11 = vmul.f32 %v1175_v3, %v4615_v56  ;;  %v4725_v54 = vmin.f32 %v1410_v23, 16.0  ;;  %v967_v28 = vmul.f32 %v966_v55, %v4584_v19  ;;  %v1979_v49 = vadd.f32 0.18741608, %v1978_v31 }
 0x12d   : > { %v1254_v5 = vmul.f32 %v1253_v57, %v4665_v48  ;;  %v4730_v62 = vadd.f32 %v600_v37, %v4293_v17  ;;  %v2096_v15 = vmul.f32 %v2095_v42, %v4617_v39  ;;  %v1294_v58 = vmul.f32 %v1293_v60, %v4677_v34 }
 0x12e   : > { %v2213_v26 = vadd.f32 0.00028619796, %v2212_v43  ;;  %v1412_v7 = vmul.f32 2.1237322e-06, %v4725_v54  ;;  %v4736_v3 = vmul.f32 %v1021_v20, %v4418_v13  ;;  %v1373_v23 = vadd.f32 0.00028619796, %v1372_v14 }
 0x12f   : > { %v4738_v27 = vmin.f32 %v2330_v10, 16.0  ;;  %v4741_v19 = vmul.f32 0.70710677, %v4722_v32  ;;  %v1060_v57 = vmul.f32 %v1059_v40, %v4534_v30  ;;  %v1138_v31 = vmul.f32 %v1137_v4, %v4588_v25 }
 0x130   : > { %6554 = vst [vmem:[#allocation30_spill] sm:$0xff] %v4736_v3  ;;  %v1177_v55 = vadd.f32 0.05243302, %v1176_v11  ;;  %v4746_v42 = vadd.f32 %v571_v22, %v4296_v18  ;;  %v3450_v60 = vclamps-f32 %v967_v28, 1.0  ;;  %v1980_v43 = vmul.f32 %v1979_v49, %v4536_v41 }
 0x131   : > { %6555 = vst [vmem:[#allocation31_spill] sm:$0xff] %v4738_v27  ;;  %v1255_v37 = vadd.f32 0.0036580483, %v1254_v5  ;;  %v4750_v13 = vmul.f32 0.70710677, %v4730_v62  ;;  %v2214_v10 = vmul.f32 %v2213_v26, %v4691_v46  ;;  %v4754_v40 = vmul.f32 0.5, %v4601_v36 }
 0x132   : > { %6556 = vst [vmem:[#allocation32_spill] sm:$0xff] %v4741_v19  ;;  %v2097_v20 = vadd.f32 0.05243302, %v2096_v15  ;;  %v1295_v14 = vadd.f32 0.0036580483, %v1294_v58  ;;  %v1374_v4 = vmul.f32 %v1373_v23, %v4710_v9  ;;  %v1490_v11 = vmul.f32 %v4741_v19, %v4741_v19  ;;  %v553_v23 = vpop.f32.mrf.mxu0 }
 0x133   : > { %6557 = vst [vmem:[#allocation33_spill] sm:$0xff] %v4750_v13  ;;  %v1413_v6 = vadd.f32 0.00028619796, %v1412_v7  ;;  %v2332_v22 = vmul.f32 2.1237322e-06, %v4738_v27  ;;  %v1178_v5 = vmul.f32 %v1177_v55, %v4615_v56  ;;  %v2694_v58 = vadd.f32 1.0, %v3450_v60 }
 0x134   : > { %6558 = vst [vmem:[#allocation34_spill] sm:$0xff] %v4754_v40  ;;  %v1061_v28 = vadd.f32 1.1283791, %v1060_v57  ;;  %v1139_v49 = vadd.f32 0.18741608, %v1138_v31  ;;  %v1256_v7 = vmul.f32 %v1255_v37, %v4665_v48  ;;  %v1530_v36 = vmul.f32 %v4750_v13, %v4750_v13 }
 0x135   : > { %v4762_v15 = vmul.f32 0.70710677, %v4746_v42  ;;  %v1981_v26 = vadd.f32 1.1283791, %v1980_v43  ;;  %v2098_v41 = vmul.f32 %v2097_v20, %v4617_v39  ;;  %v1296_v40 = vmul.f32 %v1295_v14, %v4677_v34 }
 0x136   : > { %v2215_v3 = vadd.f32 0.0036580483, %v2214_v10  ;;  %v1414_v57 = vmul.f32 %v1413_v6, %v4725_v54  ;;  %v1375_v31 = vadd.f32 0.0036580483, %v1374_v4  ;;  %v2333_v55 = vadd.f32 0.00028619796, %v2332_v22 }
 0x137   : > { %v4770_v19 = vmin.f32 %v1490_v11, 16.0  ;;  %v2786_v60 = vpack.c.bf16 %v4694_v53, %v4595_v29  ;;  %v1140_v43 = vmul.f32 %v1139_v49, %v4588_v25  ;;  %v1179_v37 = vadd.f32 0.18741608, %v1178_v5 }
 0x138   : > { %v2450_v13 = vmul.f32 %v4762_v15, %v4762_v15  ;;  %v4778_v20 = vadd.f32 %v553_v23, %v4296_v18  ;;  %v1257_v14 = vadd.f32 0.05243302, %v1256_v7  ;;  %v4781_v10 = vmul.f32 0.5, %v4611_v44 }
 0x139   : > { %v1492_v6 = vmul.f32 2.1237322e-06, %v4770_v19  ;;  %v4784_v4 = vmin.f32 %v1530_v36, 16.0  ;;  %3014 = vmatmul.bf16.vlgmr.msrb.gmra.mxu3 %v2786_v60  ;;  %v2742_v53 = vmul.f32 %v2694_v58, %v4519_v2  ;;  %v2099_v29 = vadd.f32 0.18741608, %v2098_v41  ;;  %v573_v2 = vpop.f32.mrf.mxu2 }
 0x13a   : > { %6559 = vst [vmem:[#allocation35_spill] sm:$0xff] %v4781_v10  ;;  %v2216_v22 = vmul.f32 %v2215_v3, %v4691_v46  ;;  %v1415_v11 = vadd.f32 0.0036580483, %v1414_v57  ;;  %v1297_v49 = vadd.f32 0.05243302, %v1296_v40  ;;  %v1376_v5 = vmul.f32 %v1375_v31, %v4710_v9 }
 0x13b   : > { %v2334_v23 = vmul.f32 %v2333_v55, %v4738_v27  ;;  %v1532_v7 = vmul.f32 2.1237322e-06, %v4784_v4  ;;  %v4792_v44 = vmul.f32 %v1061_v28, %v4492_v45  ;;  %v1141_v10 = vadd.f32 1.1283791, %v1140_v43 }
 0x13c   : > { %v4794_v36 = vmin.f32 %v2450_v13, 16.0  ;;  %v4797_v60 = vmul.f32 0.70710677, %v4778_v20  ;;  %v4800_v41 = vmul.f32 %v1981_v26, %v4495_v47  ;;  %v1180_v3 = vmul.f32 %v1179_v37, %v4615_v56 }
 0x13d   : > { %6560 = vst [vmem:[#allocation36_spill] sm:$0xff] %v4792_v44  ;;  %v1258_v40 = vmul.f32 %v1257_v14, %v4665_v48  ;;  %v1493_v58 = vadd.f32 0.00028619796, %v1492_v6  ;;  %v2100_v57 = vmul.f32 %v2099_v29, %v4617_v39  ;;  %v2217_v31 = vadd.f32 0.05243302, %v2216_v22  ;;  %v3651_v6 = vld [vmem:[#allocation8 + $0xb8] sm:$0xff] }
 0x13e   : > { %6561 = vst [vmem:[#allocation37_spill] sm:$0xff] %v4794_v36  ;;  %v1416_v45 = vmul.f32 %v1415_v11, %v4725_v54  ;;  %v2787_v13 = vpack.c.bf16 %v2742_v53, %v4627_v52  ;;  %v1298_v28 = vmul.f32 %v1297_v49, %v4677_v34  ;;  %v1377_v55 = vadd.f32 0.05243302, %v1376_v5  ;;  %3104 = vmatpush.bf16.msrb.mxu1 %v3651_v6 }
 0x13f   : > { %6562 = vst [vmem:[#allocation38_spill] sm:$0xff] %v4800_v41  ;;  %v2335_v43 = vadd.f32 0.0036580483, %v2334_v23  ;;  %v1533_v44 = vadd.f32 0.00028619796, %v1532_v7  ;;  %v4809_v47 = vmul.f32 %v1141_v10, %v4540_v35  ;;  %v4812_v26 = vmul.f32 0.5, %v4620_v24  ;;  %v602_v10 = vpop.f32.mrf.mxu1 }
 0x140   : > { %v2452_v37 = vmul.f32 2.1237322e-06, %v4794_v36  ;;  %v1610_v14 = vmul.f32 %v4797_v60, %v4797_v60  ;;  %3063 = vmatmul.bf16.vlgmr.msrb.gmra.mxu0 %v2787_v13  ;;  %v1259_v29 = vadd.f32 0.18741608, %v1258_v40  ;;  %v4818_v52 = vmul.f32 0.5, %v4636_v12 }
 0x141   : > { %6563 = vst [vmem:[#allocation39_spill] sm:$0xff] %v4812_v26  ;;  %v4821_v53 = vmul.f32 0.5, %v4655_v50  ;;  %v1494_v35 = vmul.f32 %v1493_v58, %v4770_v19  ;;  %v1181_v22 = vadd.f32 1.1283791, %v1180_v3  ;;  %v2101_v24 = vadd.f32 1.1283791, %v2100_v57 }
 0x142   : > { %v2218_v11 = vmul.f32 %v2217_v31, %v4691_v46  ;;  %v1417_v49 = vadd.f32 0.05243302, %v1416_v45  ;;  %v1299_v5 = vadd.f32 0.18741608, %v1298_v28  ;;  %v1378_v23 = vmul.f32 %v1377_v55, %v4710_v9  ;;  %v3650_v58 = vld [vmem:[#allocation8 + $0xb0] sm:$0xff] }
 0x143   : > { %6564 = vst [vmem:[#allocation40_spill] sm:$0xff] %v4821_v53  ;;  %v2336_v7 = vmul.f32 %v2335_v43, %v4738_v27  ;;  %v1534_v12 = vmul.f32 %v1533_v44, %v4784_v4  ;;  %v2453_v40 = vadd.f32 0.00028619796, %v2452_v37  ;;  %v4828_v13 = vmin.f32 %v1610_v14, 16.0  ;;  %3105 = vmatpush.bf16.msrb.mxu1 %v3650_v58 }
 0x144   : > { %v4831_v50 = vadd.f32 %v602_v10, %v4293_v17  ;;  %v4834_v3 = vadd.f32 %v573_v2, %v4296_v18  ;;  %v1260_v57 = vmul.f32 %v1259_v29, %v4665_v48  ;;  %v4838_v31 = vmul.f32 0.5, %v4668_v38  ;;  %v634_v18 = vpop.f32.mrf.mxu2 }
 0x145   : > { %v1495_v45 = vadd.f32 0.0036580483, %v1494_v35  ;;  %v4841_v28 = vperm.slane %v4290_v16, 2  ;;  %v4844_v44 = vmul.f32 %v1181_v22, %v4566_v8  ;;  %v2219_v55 = vadd.f32 0.18741608, %v2218_v11 }
 0x146   : > { %6565 = vst [vmem:[#allocation41_spill] sm:$0xff] %v4838_v31  ;;  %v1418_v43 = vmul.f32 %v1417_v49, %v4725_v54  ;;  %v1612_v37 = vmul.f32 2.1237322e-06, %v4828_v13  ;;  %v4849_v2 = vmul.f32 %v2101_v24, %v4569_v61  ;;  %v1300_v38 = vmul.f32 %v1299_v5, %v4677_v34 }
 0x147   : > { %v2337_v14 = vadd.f32 0.05243302, %v2336_v7  ;;  %v1535_v6 = vadd.f32 0.0036580483, %v1534_v12  ;;  %v1379_v29 = vadd.f32 0.18741608, %v1378_v23  ;;  %v2454_v16 = vmul.f32 %v2453_v40, %v4794_v36  ;;  %v605_v7 = vpop.f32.mrf.mxu3 }
 0x148   : > { %6566 = vst [vmem:[#allocation42_spill] sm:$0xff] %v4849_v2  ;;  %v4854_v8 = vmul.f32 0.70710677, %v4831_v50  ;;  %v4857_v35 = vmul.f32 0.70710677, %v4834_v3  ;;  %v4860_v22 = vmul.f32 0.5, %v4722_v32  ;;  %v1496_v61 = vmul.f32 %v1495_v45, %v4770_v19 }
 0x149   : > { %v1261_v10 = vadd.f32 1.1283791, %v1260_v57  ;;  %v4864_v24 = vadd.f32 %v634_v18, %v4841_v28  ;;  %v2220_v11 = vmul.f32 %v2219_v55, %v4691_v46  ;;  %v1419_v49 = vadd.f32 0.18741608, %v1418_v43 }
 0x14a   : > { %6567 = vst [vmem:[#allocation43_spill] sm:$0xff] %v4860_v22  ;;  %v4868_v5 = vmul.f32 0.5, %v4730_v62  ;;  %v1613_v23 = vadd.f32 0.00028619796, %v1612_v37  ;;  %v1301_v12 = vadd.f32 1.1283791, %v1300_v38  ;;  %v2338_v40 = vmul.f32 %v2337_v14, %v4738_v27 }
 0x14b   : > { %v1536_v58 = vmul.f32 %v1535_v6, %v4784_v4  ;;  %v4873_v32 = vadd.f32 %v605_v7, %v4293_v17  ;;  %v1380_v57 = vmul.f32 %v1379_v29, %v4710_v9  ;;  %v2455_v45 = vadd.f32 0.0036580483, %v2454_v16 }
 0x14c   : > { %6568 = vst [vmem:[#allocation44_spill] sm:$0xff] %v4868_v5  ;;  %v1650_v55 = vmul.f32 %v4854_v8, %v4854_v8  ;;  %v2570_v62 = vmul.f32 %v4857_v35, %v4857_v35  ;;  %v4881_v43 = vmul.f32 %v1261_v10, %v4624_v63  ;;  %v1497_v37 = vadd.f32 0.05243302, %v1496_v61 }
 0x14d   : > { %v4884_v18 = vmul.f32 0.70710677, %v4864_v24  ;;  %v1023_v38 = vmul.f32 3.8918573e-05, %v4473_v21  ;;  %v2221_v14 = vadd.f32 1.1283791, %v2220_v11  ;;  %v1420_v6 = vmul.f32 %v1419_v49, %v4725_v54 }
 0x14e   : > { %v4889_v29 = vmul.f32 0.5, %v4746_v42  ;;  %v1614_v16 = vmul.f32 %v1613_v23, %v4828_v13  ;;  %v4893_v7 = vmul.f32 %v1301_v12, %v4631_v0  ;;  %v2339_v31 = vadd.f32 0.18741608, %v2338_v40 }
 0x14f   : > { %v1537_v63 = vadd.f32 0.05243302, %v1536_v58  ;;  %v4896_v10 = vmul.f32 0.70710677, %v4873_v32  ;;  %v1381_v61 = vadd.f32 1.1283791, %v1380_v57  ;;  %v2456_v26 = vmul.f32 %v2455_v45, %v4794_v36  ;;  %v636_v45 = vpop.f32.mrf.mxu2 }
 0x150   : > { %6569 = vst [vmem:[#allocation45_spill] sm:$0xff] %v4889_v29  ;;  %v4899_v2 = vmin.f32 %v1650_v55, 16.0  ;;  %v4901_v11 = vmin.f32 %v2570_v62, 16.0  ;;  %v1498_v42 = vmul.f32 %v1497_v37, %v4770_v19  ;;  %v4905_v49 = vmul.f32 0.5, %v4778_v20 }
 0x151   : > { %v850_v0 = vmul.f32 %v4884_v18, %v4884_v18  ;;  %v1024_v23 = vadd.f32 0.001143296, %v1023_v38  ;;  %v4910_v12 = vmul.f32 %v2221_v14, %v4641_v1  ;;  %v1421_v40 = vadd.f32 1.1283791, %v1420_v6 }
 0x152   : > { %6570 = vst [vmem:[#allocation46_spill] sm:$0xff] %v4901_v11  ;;  %v1615_v58 = vadd.f32 0.0036580483, %v1614_v16  ;;  %v1652_v57 = vmul.f32 2.1237322e-06, %v4899_v2  ;;  %v2340_v55 = vmul.f32 %v2339_v31, %v4738_v27  ;;  %v1538_v62 = vmul.f32 %v1537_v63, %v4784_v4 }
 0x153   : > { %6571 = vst [vmem:[#allocation47_spill] sm:$0xff] %v4905_v49  ;;  %v1770_v20 = vmul.f32 %v4896_v10, %v4896_v10  ;;  %v1025_v37 = vmul.f32 %v1024_v23, %v4473_v21  ;;  %v4919_v29 = vmul.f32 %v1381_v61, %v4660_v59  ;;  %v2457_v38 = vadd.f32 0.05243302, %v2456_v26 }
 0x154   : > { %6572 = vst [vmem:[#allocation48_spill] sm:$0xff] %v4910_v12  ;;  %v4922_v1 = vmul.f32 0.5, %v4831_v50  ;;  %v2572_v14 = vmul.f32 2.1237322e-06, %v4901_v11  ;;  %v1499_v6 = vadd.f32 0.18741608, %v1498_v42  ;;  %v4928_v31 = vadd.f32 %v636_v45, %v4841_v28 }
 0x155   : > { %v4925_v16 = vmin.f32 %v850_v0, 16.0  ;;  %v1026_v63 = vadd.f32 0.014752088, %v1025_v37  ;;  %v4931_v12 = vmul.f32 %v1421_v40, %v4680_v51  ;;  %v1616_v23 = vmul.f32 %v1615_v58, %v4828_v13 }
 0x156   : > { %6573 = vst [vmem:[#allocation49_spill] sm:$0xff] %v4922_v1  ;;  %v1653_v59 = vadd.f32 0.00028619796, %v1652_v57  ;;  %v1143_v26 = vmul.f32 3.8918573e-05, %v4588_v25  ;;  %v4935_v27 = vmin.f32 %v1770_v20, 16.0  ;;  %v2458_v0 = vmul.f32 %v2457_v38, %v4794_v36 }
 0x157   : > { %6574 = vst [vmem:[#allocation50_spill] sm:$0xff] %v4931_v12  ;;  %v2341_v61 = vadd.f32 1.1283791, %v2340_v55  ;;  %v1539_v50 = vadd.f32 0.18741608, %v1538_v62  ;;  %v1027_v42 = vmul.f32 %v1026_v63, %v4473_v21  ;;  %v1500_v51 = vmul.f32 %v1499_v6, %v4770_v19  ;;  %v607_v6 = vpop.f32.mrf.mxu3 }
 0x158   : > { %v2573_v41 = vadd.f32 0.00028619796, %v2572_v14  ;;  %v1144_v45 = vadd.f32 0.001143296, %v1143_v26  ;;  %v1063_v37 = vmul.f32 3.8918573e-05, %v4534_v30  ;;  %v1654_v62 = vmul.f32 %v1653_v59, %v4899_v2 }
 0x159   : > { %v863_v40 = vmul.f32 3.8918573e-05, %v4925_v16  ;;  %v4943_v58 = vmul.f32 0.70710677, %v4928_v31  ;;  %v1028_v57 = vadd.f32 0.112945676, %v1027_v42  ;;  %v1540_v38 = vmul.f32 %v1539_v50, %v4784_v4 }
 0x15a   : > { %v1617_v55 = vadd.f32 0.05243302, %v1616_v23  ;;  %v1145_v20 = vmul.f32 %v1144_v45, %v4588_v25  ;;  %v1064_v63 = vadd.f32 0.001143296, %v1063_v37  ;;  %v4949_v14 = vmul.f32 0.5, %v4834_v3 }
 0x15b   : > { %v1772_v26 = vmul.f32 2.1237322e-06, %v4935_v27  ;;  %v1029_v46 = vmul.f32 %v1028_v57, %v4473_v21  ;;  %v2459_v39 = vadd.f32 0.18741608, %v2458_v0  ;;  %v2574_v1 = vmul.f32 %v2573_v41, %v4901_v11 }
 0x15c   : > { %6575 = vst [vmem:[#allocation51_spill] sm:$0xff] %v4949_v14  ;;  %v1146_v42 = vadd.f32 0.014752088, %v1145_v20  ;;  %v1065_v23 = vmul.f32 %v1064_v63, %v4534_v30  ;;  %v4956_v59 = vmul.f32 %v2341_v61, %v4703_v33  ;;  %v1501_v45 = vadd.f32 1.1283791, %v1500_v51 }
 0x15d   : > { %v864_v37 = vadd.f32 0.001143296, %v863_v40  ;;  %v970_v3 = vmul.f32 %v4943_v58, %v4943_v58  ;;  %v1618_v50 = vmul.f32 %v1617_v55, %v4828_v13  ;;  %v1655_v14 = vadd.f32 0.0036580483, %v1654_v62 }
 0x15e   : > { %6576 = vst [vmem:[#allocation52_spill] sm:$0xff] %v4956_v59  ;;  %v4962_v5 = vadd.f32 %v607_v6, %v4293_v17  ;;  %v1030_v0 = vadd.f32 0.4994258, %v1029_v46  ;;  %v1541_v57 = vadd.f32 1.1283791, %v1540_v38  ;;  %v1147_v20 = vmul.f32 %v1146_v42, %v4588_v25 }
 0x15f   : > { %v1773_v41 = vadd.f32 0.00028619796, %v1772_v26  ;;  %v1066_v63 = vadd.f32 0.014752088, %v1065_v23  ;;  %v2460_v33 = vmul.f32 %v2459_v39, %v4794_v36  ;;  %v2575_v61 = vadd.f32 0.0036580483, %v2574_v1 }
 0x160   : > { %v1031_v51 = vmul.f32 %v1030_v0, %v4473_v21  ;;  %v1183_v40 = vmul.f32 3.8918573e-05, %v4615_v56  ;;  %v865_v59 = vmul.f32 %v864_v37, %v4925_v16  ;;  %v4969_v55 = vmin.f32 %v970_v3, 16.0  ;;  %v6577_v37 = vld [vmem:[#allocation32_spill] sm:$0xff]  ;;  %v6579_v0 = vld [vmem:[#allocation33_spill] sm:$0xff] }
 0x161   : > { %v1148_v62 = vadd.f32 0.112945676, %v1147_v20  ;;  %v1067_v6 = vmul.f32 %v1066_v63, %v4534_v30  ;;  %v1619_v46 = vadd.f32 0.18741608, %v1618_v50  ;;  %v1656_v38 = vmul.f32 %v1655_v14, %v4899_v2 }
 0x162   : > { %v4974_v26 = vmul.f32 0.70710677, %v4962_v5  ;;  %v4976_v42 = vadd.f32 1.0, %v1031_v51  ;;  %v1774_v39 = vmul.f32 %v1773_v41, %v4935_v27  ;;  %v1184_v23 = vadd.f32 0.001143296, %v1183_v40 }
 0x163   : > { %v1149_v21 = vmul.f32 %v1148_v62, %v4588_v25  ;;  %v1068_v1 = vadd.f32 0.112945676, %v1067_v6  ;;  %v4981_v3 = vmul.f32 %v1501_v45, %v6577_v37  ;;  %v4984_v20 = vmul.f32 %v1541_v57, %v6579_v0 }
 0x164   : > { %v2461_v50 = vadd.f32 1.1283791, %v2460_v33  ;;  %v4987_v14 = vmul.f32 0.5, %v4873_v32  ;;  %v2576_v63 = vmul.f32 %v2575_v61, %v4901_v11  ;;  %v866_v51 = vadd.f32 0.014752088, %v865_v59 }
 0x165   : > { %6578 = vst [vmem:[#allocation32_spill] sm:$0xff] %v4981_v3  ;;  %v983_v36 = vmul.f32 3.8918573e-05, %v4969_v55  ;;  %3808 = vrcp.f32 %v4976_v42  ;;  %v1620_v41 = vmul.f32 %v1619_v46, %v4828_v13  ;;  %v1657_v40 = vadd.f32 0.05243302, %v1656_v38 }
 0x166   : > { %6580 = vst [vmem:[#allocation33_spill] sm:$0xff] %v4984_v20  ;;  %v1890_v45 = vmul.f32 %v4974_v26, %v4974_v26  ;;  %v1150_v62 = vadd.f32 0.4994258, %v1149_v21  ;;  %v1775_v57 = vadd.f32 0.0036580483, %v1774_v39  ;;  %v1069_v32 = vmul.f32 %v1068_v1, %v4534_v30 }
 0x167   : > { %6581 = vst [vmem:[#allocation53_spill] sm:$0xff] %v4987_v14  ;;  %v852_v33 = vmul.f32 2.1237322e-06, %v4925_v16  ;;  %v1185_v6 = vmul.f32 %v1184_v23, %v4615_v56  ;;  %v4999_v59 = vmul.f32 %v2461_v50, %v4762_v15  ;;  %v5002_v61 = vmul.f32 0.5, %v4864_v24 }
 0x168   : > { %v1151_v46 = vmul.f32 %v1150_v62, %v4588_v25  ;;  %v1263_v38 = vmul.f32 3.8918573e-05, %v4665_v48  ;;  %v2577_v37 = vadd.f32 0.05243302, %v2576_v63  ;;  %v867_v21 = vmul.f32 %v866_v51, %v4925_v16 }
 0x169   : > { %6582 = vst [vmem:[#allocation54_spill] sm:$0xff] %v4999_v59  ;;  %v5008_v39 = vmul.f32 0.5, %v4928_v31  ;;  %v984_v0 = vadd.f32 0.001143296, %v983_v36  ;;  %v5010_v1 = vadd.f32 1.1283791, %v1620_v41  ;;  %v1658_v23 = vmul.f32 %v1657_v40, %v4899_v2 }
 0x16a   : > { %6583 = vst [vmem:[#allocation55_spill] sm:$0xff] %v5002_v61  ;;  %v5013_v15 = vmin.f32 %v1890_v45, 16.0  ;;  %v5015_v50 = vadd.f32 1.0, %v1151_v46  ;;  %v1776_v25 = vmul.f32 %v1775_v57, %v4935_v27  ;;  %v853_v62 = vadd.f32 0.00028619796, %v852_v33 }
 0x16b   : > { %6584 = vst [vmem:[#allocation56_spill] sm:$0xff] %v5008_v39  ;;  %v3809_v24 = vpop.eup %3808  ;;  %v1070_v59 = vadd.f32 0.4994258, %v1069_v32  ;;  %v1186_v63 = vadd.f32 0.014752088, %v1185_v6  ;;  %v2578_v41 = vmul.f32 %v2577_v37, %v4901_v11  ;;  %v985_v45 = vmul.f32 %v984_v0, %v4969_v55 }
 0x16c   : > { %v1892_v51 = vmul.f32 2.1237322e-06, %v5013_v15  ;;  %v1034_v31 = vmul.f32 %v3809_v24, %v4976_v42  ;;  %3810 = vrcp.f32 %v5015_v50  ;;  %v1264_v36 = vadd.f32 0.001143296, %v1263_v38 }
 0x16d   : > { %v868_v40 = vadd.f32 0.112945676, %v867_v21  ;;  %v1044_v46 = vand.u32 2147483648, %v4976_v42  ;;  %vm1038_vm0 = vweird.f32 %v4976_v42  ;;  %vm1039_vm1 = vweird.f32 %v3809_v24 }
 0x16e   : > { %v1035_v14 = vsub.f32 1.0, %v1034_v31  ;;  %v1042_v57 = vand.u32 2147483647, %v4976_v42  ;;  %v5026_v33 = vadd.f32 0.18741608, %v1658_v23  ;;  %v854_v32 = vmul.f32 %v853_v62, %v4925_v16  ;;  %vm5035_vm2 = vmor %vm1038_vm0, %vm1039_vm1 }
 0x16f   : > { %v1071_v6 = vmul.f32 %v1070_v59, %v4534_v30  ;;  %v1187_v38 = vmul.f32 %v1186_v63, %v4615_v56  ;;  %v1777_v37 = vadd.f32 0.05243302, %v1776_v25  ;;  %v1893_v21 = vadd.f32 0.00028619796, %v1892_v51 }
 0x170   : > { %v1036_v20 = vmul.f32 %v3809_v24, %v1035_v14  ;;  %v1265_v0 = vmul.f32 %v1264_v36, %v4665_v48  ;;  %v5032_v49 = vadd.f32 0.18741608, %v2578_v41  ;;  %v972_v31 = vmul.f32 2.1237322e-06, %v4969_v55 }
 0x171   : > { %v1045_v42 = vor.u32 1.1754944e-38, %v1044_v46  ;;  %v5039_v23 = vadd.f32 1.0, %v1071_v6  ;;  %v869_v30 = vmul.f32 %v868_v40, %v4925_v16  ;;  %v986_v59 = vadd.f32 0.014752088, %v985_v45 }
 0x172   : > { %v3811_v62 = vpop.eup %3810  ;;  %v1037_v25 = vadd.f32 %v3809_v24, %v1036_v20  ;;  %vm1043_vm3 = vcmp.eq.f32.partialorder %v1042_v57, 8.507059e+37  ;;  %v855_v14 = vadd.f32 0.0036580483, %v854_v32  ;;  %v1188_v51 = vadd.f32 0.112945676, %v1187_v38  ;;  %v6587_v57 = vld [vmem:[#allocation30_spill] sm:$0xff] }
 0x173   : > { %v1154_v63 = vmul.f32 %v3811_v62, %v5015_v50  ;;  %3812 = vrcp.f32 %v5039_v23  ;;  %vm1158_vm4 = vweird.f32 %v5015_v50  ;;  %v1164_v41 = vand.u32 2147483648, %v5015_v50 }
 0x174   : > { %v1041_v36 = vsel %vm5035_vm2, %v3809_v24, %v1037_v25  ;;  %v1266_v46 = vadd.f32 0.014752088, %v1265_v0  ;;  %vm1159_vm5 = vweird.f32 %v3811_v62  ;;  %v1162_v20 = vand.u32 2147483647, %v5015_v50 }
 0x175   : > { %v1046_v6 = vsel %vm1043_vm3, %v1045_v42, %v1041_v36  ;;  %v1155_v39 = vsub.f32 1.0, %v1154_v63  ;;  %v870_v40 = vadd.f32 0.4994258, %v869_v30  ;;  %v987_v45 = vmul.f32 %v986_v59, %v4969_v55  ;;  %vm5058_vm6 = vmor %vm1158_vm4, %vm1159_vm5 }
 0x176   : > { %v1047_v32 = vmul.f32 %v1046_v6, %v6587_v57  ;;  %v1383_v38 = vmul.f32 3.8918573e-05, %v4710_v9  ;;  %v1778_v22 = vmul.f32 %v1777_v37, %v4935_v27  ;;  %v1894_v24 = vmul.f32 %v1893_v21, %v5013_v15 }
 0x177   : > { %v1156_v25 = vmul.f32 %v3811_v62, %v1155_v39  ;;  %v1189_v3 = vmul.f32 %v1188_v51, %v4615_v56  ;;  %v856_v0 = vmul.f32 %v855_v14, %v4925_v16  ;;  %v973_v42 = vadd.f32 0.00028619796, %v972_v31  ;;  %v3649_v31 = vld [vmem:[#allocation8 + $0xa8] sm:$0xff] }
 0x178   : > { %v1165_v59 = vor.u32 1.1754944e-38, %v1164_v41  ;;  %v1267_v63 = vmul.f32 %v1266_v46, %v4665_v48  ;;  %v3452_v6 = vclamps-f32 %v1047_v32, 1.0  ;;  %vm1163_vm7 = vcmp.eq.f32.partialorder %v1162_v20, 8.507059e+37  ;;  %3106 = vmatpush.bf16.msrb.mxu1 %v3649_v31 }
 0x179   : > { %v3813_v36 = vpop.eup %3812  ;;  %v1157_v37 = vadd.f32 %v3811_v62, %v1156_v25  ;;  %v1190_v21 = vadd.f32 0.4994258, %v1189_v3  ;;  %v871_v39 = vmul.f32 %v870_v40, %v4925_v16  ;;  %v988_v51 = vadd.f32 0.112945676, %v987_v45 }
 0x17a   : > { %v1074_v14 = vmul.f32 %v3813_v36, %v5039_v23  ;;  %v1384_v57 = vadd.f32 0.001143296, %v1383_v38  ;;  %vm1078_vm8 = vweird.f32 %v5039_v23  ;;  %v1084_v41 = vand.u32 2147483648, %v5039_v23 }
 0x17b   : > { %v1161_v50 = vsel %vm5058_vm6, %v3811_v62, %v1157_v37  ;;  %v1191_v46 = vmul.f32 %v1190_v21, %v4615_v56  ;;  %vm1079_vm9 = vweird.f32 %v3813_v36  ;;  %v1268_v3 = vadd.f32 0.112945676, %v1267_v63  ;;  %v6592_v21 = vld [vmem:[#allocation21_spill] sm:$0xff] }
 0x17c   : > { %v1166_v32 = vsel %vm1163_vm7, %v1165_v59, %v1161_v50  ;;  %v1075_v25 = vsub.f32 1.0, %v1074_v14  ;;  %v2696_v40 = vadd.f32 1.0, %v3452_v6  ;;  %v1082_v45 = vand.u32 2147483647, %v5039_v23  ;;  %vm5079_vm10 = vmor %vm1078_vm8, %vm1079_vm9  ;;  %v6593_v50 = vld [vmem:[#allocation24_spill] sm:$0xff] }
 0x17d   : > { %v1167_v20 = vmul.f32 %v1166_v32, %v4809_v47  ;;  %v5072_v38 = vadd.f32 1.0, %v1191_v46  ;;  %v1779_v30 = vadd.f32 0.18741608, %v1778_v22  ;;  %v1895_v62 = vadd.f32 0.0036580483, %v1894_v24  ;;  %v3648_v47 = vld [vmem:[#allocation8 + $0xa0] sm:$0xff] }
 0x17e   : > { %v974_v37 = vmul.f32 %v973_v42, %v4969_v55  ;;  %v1076_v53 = vmul.f32 %v3813_v36, %v1075_v25  ;;  %v857_v61 = vadd.f32 0.05243302, %v856_v0  ;;  %v5075_v12 = vadd.f32 1.0, %v871_v39  ;;  %3107 = vmatpush.bf16.msrb.mxu1 %v3648_v47 }
 0x17f   : > { %v3455_v56 = vclamps-f32 %v1167_v20, 1.0  ;;  %3814 = vrcp.f32 %v5072_v38  ;;  %v1085_v6 = vor.u32 1.1754944e-38, %v1084_v41  ;;  %v1269_v22 = vmul.f32 %v1268_v3, %v4665_v48 }
 0x180   : > { %v1077_v63 = vadd.f32 %v3813_v36, %v1076_v53  ;;  %v1385_v24 = vmul.f32 %v1384_v57, %v4710_v9  ;;  %v989_v0 = vmul.f32 %v988_v51, %v4969_v55  ;;  %v2744_v39 = vmul.f32 %v2696_v40, %v6592_v21 }
 0x181   : > { %v2699_v42 = vadd.f32 1.0, %v3455_v56  ;;  %vm1083_vm11 = vcmp.eq.f32.partialorder %v1082_v45, 8.507059e+37  ;;  %v5090_v23 = vmul.f32 %v5010_v1, %v4797_v60  ;;  %v1896_v14 = vmul.f32 %v1895_v62, %v5013_v15  ;;  %v6594_v62 = vld [vmem:[#allocation36_spill] sm:$0xff] }
 0x182   : > { %v975_v31 = vadd.f32 0.0036580483, %v974_v37  ;;  %v1081_v53 = vsel %vm5079_vm10, %v3813_v36, %v1077_v63  ;;  %v1660_v57 = vmul.f32 %v5026_v33, %v4899_v2  ;;  %v2580_v51 = vmul.f32 %v5032_v49, %v4901_v11 }
 0x183   : > { %3816 = vrcp.f32 %v5075_v12  ;;  %v2747_v41 = vmul.f32 %v2699_v42, %v6593_v50  ;;  %v1086_v46 = vsel %vm1083_vm11, %v1085_v6, %v1081_v53  ;;  %v1270_v32 = vadd.f32 0.4994258, %v1269_v22  ;;  %v6599_v50 = vld [vmem:[#allocation26_spill] sm:$0xff] }
 0x184   : > { %v1386_v60 = vadd.f32 0.014752088, %v1385_v24  ;;  %v1303_v1 = vmul.f32 3.8918573e-05, %v4677_v34  ;;  %v1780_v3 = vmul.f32 %v1779_v30, %v4935_v27  ;;  %v858_v36 = vmul.f32 %v857_v61, %v4925_v16 }
 0x185   : > { %v3815_v25 = vpop.eup %3814  ;;  %v990_v20 = vadd.f32 0.4994258, %v989_v0  ;;  %v2789_v40 = vpack.c.bf16 %v2747_v41, %v2744_v39  ;;  %v1897_v33 = vadd.f32 0.05243302, %v1896_v14  ;;  %v976_v45 = vmul.f32 %v975_v31, %v4969_v55 }
 0x186   : > { %v1194_v49 = vmul.f32 %v3815_v25, %v5072_v38  ;;  %vm1198_vm12 = vweird.f32 %v5072_v38  ;;  %v1087_v37 = vmul.f32 %v1086_v46, %v6594_v62  ;;  %v1202_v56 = vand.u32 2147483647, %v5072_v38  ;;  %v610_v46 = vpop.f32.mrf.mxu3 }
 0x187   : > { %3019 = vmatmul.bf16.gmra.mxu3 %v2789_v40  ;;  %v1204_v59 = vand.u32 2147483648, %v5072_v38  ;;  %v1271_v30 = vmul.f32 %v1270_v32, %v4665_v48  ;;  %vm1199_vm13 = vweird.f32 %v3815_v25  ;;  %v1387_v61 = vmul.f32 %v1386_v60, %v4710_v9 }
 0x188   : > { %v1195_v47 = vsub.f32 1.0, %v1194_v49  ;;  %v1304_v63 = vadd.f32 0.001143296, %v1303_v1  ;;  %v1661_v22 = vadd.f32 1.1283791, %v1660_v57  ;;  %v991_v0 = vmul.f32 %v990_v20, %v4969_v55  ;;  %vm5120_vm14 = vmor %vm1198_vm12, %vm1199_vm13 }
 0x189   : > { %v5112_v6 = vpop.eup %3816  ;;  %v2581_v24 = vadd.f32 1.1283791, %v2580_v51  ;;  %v5115_v42 = vadd.f32 1.0, %v1271_v30  ;;  %v1781_v21 = vadd.f32 1.1283791, %v1780_v3  ;;  %v3453_v48 = vclamps-f32 %v1087_v37, 1.0 }
 0x18a   : > { %v1196_v39 = vmul.f32 %v3815_v25, %v1195_v47  ;;  %v1388_v14 = vadd.f32 0.112945676, %v1387_v61  ;;  %v1305_v31 = vmul.f32 %v1304_v63, %v4677_v34  ;;  %v859_v53 = vadd.f32 0.18741608, %v858_v36 }
 0x18b   : > { %v1205_v41 = vor.u32 1.1754944e-38, %v1204_v59  ;;  %3818 = vrcp.f32 %v5115_v42  ;;  %v1898_v57 = vmul.f32 %v1897_v33, %v5013_v15  ;;  %v977_v51 = vadd.f32 0.05243302, %v976_v45 }
 0x18c   : > { %v1197_v32 = vadd.f32 %v3815_v25, %v1196_v39  ;;  %vm1203_vm15 = vcmp.eq.f32.partialorder %v1202_v56, 8.507059e+37  ;;  %v874_v60 = vmul.f32 %v5112_v6, %v5075_v12  ;;  %v5128_v1 = vadd.f32 1.0, %v991_v0 }
 0x18d   : > { %v5131_v38 = vadd.f32 %v610_v46, %v4293_v17  ;;  %v1389_v3 = vmul.f32 %v1388_v14, %v4710_v9  ;;  %v5135_v36 = vmul.f32 %v1661_v22, %v4854_v8  ;;  %v5138_v20 = vmul.f32 %v2581_v24, %v4857_v35  ;;  %v6598_v22 = vld [vmem:[#allocation23_spill] sm:$0xff] }
 0x18e   : > { %v1201_v40 = vsel %vm5120_vm14, %v3815_v25, %v1197_v32  ;;  %v1306_v33 = vadd.f32 0.014752088, %v1305_v31  ;;  %v5143_v45 = vmul.f32 %v1781_v21, %v4896_v10  ;;  %v5146_v49 = vmul.f32 0.5, %v4962_v5 }
 0x18f   : > { %6597 = vst [vmem:[#allocation30_spill] sm:$0xff] %v5138_v20  ;;  %v1206_v62 = vsel %vm1203_vm15, %v1205_v41, %v1201_v40  ;;  %v2697_v37 = vadd.f32 1.0, %v3453_v48  ;;  %v860_v56 = vmul.f32 %v859_v53, %v4925_v16  ;;  %v1899_v59 = vadd.f32 0.18741608, %v1898_v57 }
 0x190   : > { %v1207_v8 = vmul.f32 %v1206_v62, %v4844_v44  ;;  %v1390_v30 = vadd.f32 0.4994258, %v1389_v3  ;;  %v875_v47 = vsub.f32 1.0, %v874_v60  ;;  %v978_v61 = vmul.f32 %v977_v51, %v4969_v55 }
 0x191   : > { %v3819_v35 = vpop.eup %3818  ;;  %3820 = vrcp.f32 %v5128_v1  ;;  %v5153_v10 = vmul.f32 0.70710677, %v5131_v38  ;;  %v1307_v16 = vmul.f32 %v1306_v33, %v4677_v34  ;;  %v2745_v24 = vmul.f32 %v2697_v37, %v6598_v22 }
 0x192   : > { %v3456_v25 = vclamps-f32 %v1207_v8, 1.0  ;;  %v1274_v5 = vmul.f32 %v3819_v35, %v5115_v42  ;;  %v1391_v63 = vmul.f32 %v1390_v30, %v4710_v9  ;;  %vm1278_vm0 = vweird.f32 %v5115_v42 }
 0x193   : > { %v1282_v44 = vand.u32 2147483647, %v5115_v42  ;;  %v1284_v0 = vand.u32 2147483648, %v5115_v42  ;;  %vm1279_vm1 = vweird.f32 %v3819_v35  ;;  %v861_v31 = vadd.f32 1.1283791, %v860_v56 }
 0x194   : > { %v2700_v21 = vadd.f32 1.0, %v3456_v25  ;;  %v1275_v39 = vsub.f32 1.0, %v1274_v5  ;;  %v5162_v14 = vadd.f32 1.0, %v1391_v63  ;;  %v884_v53 = vand.u32 2147483648, %v5075_v12  ;;  %vm5177_vm2 = vmor %vm1278_vm0, %vm1279_vm1 }
 0x195   : > { %v979_v48 = vadd.f32 0.18741608, %v978_v61  ;;  %v2010_v9 = vmul.f32 %v5153_v10, %v5153_v10  ;;  %v1308_v51 = vadd.f32 0.112945676, %v1307_v16  ;;  %v876_v32 = vmul.f32 %v5112_v6, %v875_v47 }
 0x196   : > { %v2748_v41 = vmul.f32 %v2700_v21, %v6599_v50  ;;  %v1276_v57 = vmul.f32 %v3819_v35, %v1275_v39  ;;  %3822 = vrcp.f32 %v5162_v14  ;;  %v5173_v60 = vmul.f32 %v1899_v59, %v5013_v15 }
 0x197   : > { %v5169_v46 = vpop.eup %3820  ;;  %v1285_v40 = vor.u32 1.1754944e-38, %v1284_v0  ;;  %v1423_v33 = vmul.f32 3.8918573e-05, %v4725_v54  ;;  %vm1283_vm3 = vcmp.eq.f32.partialorder %v1282_v44, 8.507059e+37  ;;  %v1503_v56 = vmul.f32 3.8918573e-05, %v4770_v19  ;;  %v639_v0 = vpop.f32.mrf.mxu2 }
 0x198   : > { %v2790_v62 = vpack.c.bf16 %v2748_v41, %v2745_v24  ;;  %v1277_v37 = vadd.f32 %v3819_v35, %v1276_v57  ;;  %v5184_v8 = vmul.f32 %v861_v31, %v4884_v18  ;;  %vm878_vm4 = vweird.f32 %v5075_v12 }
 0x199   : > { %v882_v59 = vand.u32 2147483647, %v5075_v12  ;;  %v980_v42 = vmul.f32 %v979_v48, %v4969_v55  ;;  %v885_v30 = vor.u32 1.1754944e-38, %v884_v53  ;;  %v5189_v47 = vmin.f32 %v2010_v9, 16.0 }
 0x19a   : > { %3068 = vmatmul.bf16.gmra.mxu0 %v2790_v62  ;;  %v1281_v61 = vsel %vm5177_vm2, %v3819_v35, %v1277_v37  ;;  %v1309_v25 = vmul.f32 %v1308_v51, %v4677_v34  ;;  %v877_v5 = vadd.f32 %v5112_v6, %v876_v32  ;;  %vm879_vm5 = vweird.f32 %v5112_v6 }
 0x19b   : > { %v1286_v18 = vsel %vm1283_vm3, %v1285_v40, %v1281_v61  ;;  %v1424_v63 = vadd.f32 0.001143296, %v1423_v33  ;;  %v994_v22 = vmul.f32 %v5169_v46, %v5128_v1  ;;  %v2012_v55 = vmul.f32 2.1237322e-06, %v5189_v47  ;;  %vm5221_vm9 = vmor %vm878_vm4, %vm879_vm5 }
 0x19c   : > { %v3823_v16 = vpop.eup %3822  ;;  %v1310_v24 = vadd.f32 0.4994258, %v1309_v25  ;;  %v1504_v44 = vadd.f32 0.001143296, %v1503_v56  ;;  %v1287_v21 = vmul.f32 %v1286_v18, %v4881_v43  ;;  %vm1398_vm6 = vweird.f32 %v5162_v14 }
 0x19d   : > { %v1394_v35 = vmul.f32 %v3823_v16, %v5162_v14  ;;  %v1425_v39 = vmul.f32 %v1424_v63, %v4725_v54  ;;  %vm5203_vm7 = vcmp.eq.f32.partialorder %v882_v59, 8.507059e+37  ;;  %v1402_v53 = vand.u32 2147483647, %v5162_v14 }
 0x19e   : > { %v1404_v48 = vand.u32 2147483648, %v5162_v14  ;;  %v1311_v9 = vmul.f32 %v1310_v24, %v4677_v34  ;;  %v1505_v50 = vmul.f32 %v1504_v44, %v4770_v19  ;;  %vm1399_vm8 = vweird.f32 %v3823_v16 }
 0x19f   : > { %v1395_v41 = vsub.f32 1.0, %v1394_v35  ;;  %v1426_v43 = vadd.f32 0.014752088, %v1425_v39  ;;  %v1623_v57 = vmul.f32 3.8918573e-05, %v4828_v13  ;;  %v5213_v32 = vadd.f32 %v639_v0, %v4841_v28  ;;  %vm5233_vm10 = vmor %vm1398_vm6, %vm1399_vm8 }
 0x1a0   : > { %v2013_v51 = vadd.f32 0.00028619796, %v2012_v55  ;;  %v5215_v3 = vadd.f32 1.0, %v1311_v9  ;;  %v1506_v40 = vadd.f32 0.014752088, %v1505_v50  ;;  %v3458_v33 = vclamps-f32 %v1287_v21, 1.0 }
 0x1a1   : > { %v1396_v62 = vmul.f32 %v3823_v16, %v1395_v41  ;;  %v1427_v37 = vmul.f32 %v1426_v43, %v4725_v54  ;;  %v1624_v56 = vadd.f32 0.001143296, %v1623_v57  ;;  %v881_v59 = vsel %vm5221_vm9, %v5112_v6, %v877_v5  ;;  %v612_v5 = vpop.f32.mrf.mxu3 }
 0x1a2   : > { %v5229_v61 = vadd.f32 1.1283791, %v980_v42  ;;  %v1405_v12 = vor.u32 1.1754944e-38, %v1404_v48  ;;  %3824 = vrcp.f32 %v5215_v3  ;;  %v995_v18 = vsub.f32 1.0, %v994_v22 }
 0x1a3   : > { %v1397_v63 = vadd.f32 %v3823_v16, %v1396_v62  ;;  %vm1403_vm11 = vcmp.eq.f32.partialorder %v1402_v53, 8.507059e+37  ;;  %v1428_v55 = vadd.f32 0.112945676, %v1427_v37  ;;  %v2014_v24 = vmul.f32 %v2013_v51, %v5189_v47  ;;  %v6608_v62 = vld [vmem:[#allocation34_spill] sm:$0xff] }
 0x1a4   : > { %v5240_v44 = vmul.f32 0.70710677, %v5213_v32  ;;  %v1507_v6 = vmul.f32 %v1506_v40, %v4770_v19  ;;  %v1625_v14 = vmul.f32 %v1624_v56, %v4828_v13  ;;  %v1002_v42 = vand.u32 2147483647, %v5128_v1  ;;  %v3647_v40 = vld [vmem:[#allocation8 + $0x98] sm:$0xff] }
 0x1a5   : > { %v1401_v0 = vsel %vm5233_vm10, %v3823_v16, %v1397_v63  ;;  %v2702_v21 = vadd.f32 1.0, %v3458_v33  ;;  %v1429_v22 = vmul.f32 %v1428_v55, %v4725_v54  ;;  %vm998_vm12 = vweird.f32 %v5128_v1  ;;  %3108 = vmatpush.bf16.msrb.mxu1 %v3647_v40 }
 0x1a6   : > { %vm999_vm13 = vweird.f32 %v5169_v46  ;;  %v1406_v35 = vsel %vm1403_vm11, %v1405_v12, %v1401_v0  ;;  %v1508_v39 = vadd.f32 0.112945676, %v1507_v6  ;;  %v1626_v53 = vadd.f32 0.014752088, %v1625_v14 }
 0x1a7   : > { %v886_v48 = vsel %vm5203_vm7, %v885_v30, %v881_v59  ;;  %v996_v9 = vmul.f32 %v5169_v46, %v995_v18  ;;  %v1407_v50 = vmul.f32 %v1406_v35, %v4919_v29  ;;  %v1430_v41 = vadd.f32 0.4994258, %v1429_v22  ;;  %v641_v59 = vpop.f32.mrf.mxu2  ;;  %vm5294_vm1 = vmor %vm998_vm12, %vm999_vm13 }
 0x1a8   : > { %v3825_v43 = vpop.eup %3824  ;;  %v2015_v16 = vadd.f32 0.0036580483, %v2014_v24  ;;  %v1090_v57 = vmul.f32 %v5240_v44, %v5240_v44  ;;  %v5257_v51 = vadd.f32 %v612_v5, %v4293_v17  ;;  %v1509_v34 = vmul.f32 %v1508_v39, %v4770_v19 }
 0x1a9   : > { %v3461_v33 = vclamps-f32 %v1407_v50, 1.0  ;;  %v2750_v31 = vmul.f32 %v2702_v21, %v6608_v62  ;;  %v1314_v30 = vmul.f32 %v3825_v43, %v5215_v3  ;;  %v1431_v37 = vmul.f32 %v1430_v41, %v4725_v54  ;;  %v3646_v21 = vld [vmem:[#allocation8 + $0x90] sm:$0xff] }
 0x1aa   : > { %vm1318_vm14 = vweird.f32 %v5215_v3  ;;  %vm1319_vm15 = vweird.f32 %v3825_v43  ;;  %v1324_v29 = vand.u32 2147483648, %v5215_v3  ;;  %v1627_v56 = vmul.f32 %v1626_v53, %v4828_v13  ;;  %3109 = vmatpush.bf16.msrb.mxu1 %v3646_v21 }
 0x1ab   : > { %v2705_v25 = vadd.f32 1.0, %v3461_v33  ;;  %v1315_v12 = vsub.f32 1.0, %v1314_v30  ;;  %v5266_v18 = vadd.f32 1.0, %v1431_v37  ;;  %v1510_v63 = vadd.f32 0.4994258, %v1509_v34  ;;  %vm5286_vm0 = vmor %vm1318_vm14, %vm1319_vm15 }
 0x1ac   : > { %v997_v55 = vadd.f32 %v5169_v46, %v996_v9  ;;  %v2016_v24 = vmul.f32 %v2015_v16, %v5189_v47  ;;  %v5271_v54 = vmul.f32 0.70710677, %v5257_v51  ;;  %v1322_v6 = vand.u32 2147483647, %v5215_v3 }
 0x1ad   : > { %v5274_v14 = vmin.f32 %v1090_v57, 16.0  ;;  %v2753_v5 = vmul.f32 %v2705_v25, %v4818_v52  ;;  %v1316_v0 = vmul.f32 %v3825_v43, %v1315_v12  ;;  %3826 = vrcp.f32 %v5266_v18 }
 0x1ae   : > { %v887_v22 = vmul.f32 %v886_v48, %v5184_v8  ;;  %v1004_v35 = vand.u32 2147483648, %v5128_v1  ;;  %v5281_v39 = vadd.f32 %v641_v59, %v4841_v28  ;;  %v1325_v9 = vor.u32 1.1754944e-38, %v1324_v29 }
 0x1af   : > { %v2792_v8 = vpack.c.bf16 %v2753_v5, %v2750_v31  ;;  %v1317_v48 = vadd.f32 %v3825_v43, %v1316_v0  ;;  %v1511_v50 = vmul.f32 %v1510_v63, %v4770_v19  ;;  %v1628_v41 = vadd.f32 0.112945676, %v1627_v56 }
 0x1b0   : > { %v1901_v3 = vadd.f32 1.1283791, %v5173_v60  ;;  %v1001_v16 = vsel %vm5294_vm1, %v5169_v46, %v997_v55  ;;  %v2017_v57 = vadd.f32 0.05243302, %v2016_v24  ;;  %vm1323_vm2 = vcmp.eq.f32.partialorder %v1322_v6, 8.507059e+37 }
 0x1b1   : > { %v1092_v40 = vmul.f32 2.1237322e-06, %v5274_v14  ;;  %v2130_v34 = vmul.f32 %v5271_v54, %v5271_v54  ;;  %3024 = vmatmul.bf16.gmra.mxu3 %v2792_v8  ;;  %v1321_v33 = vsel %vm5286_vm0, %v3825_v43, %v1317_v48  ;;  %v5308_v62 = vadd.f32 1.0, %v1511_v50 }
 0x1b2   : > { %v3448_v19 = vclamps-f32 %v887_v22, 1.0  ;;  %v982_v60 = vmul.f32 %v5229_v61, %v4943_v58  ;;  %vm1003_vm3 = vcmp.eq.f32.partialorder %v1002_v42, 8.507059e+37  ;;  %v1005_v46 = vor.u32 1.1754944e-38, %v1004_v35 }
 0x1b3   : > { %v3827_v31 = vpop.eup %3826  ;;  %v5315_v30 = vmul.f32 0.70710677, %v5281_v39  ;;  %v1326_v37 = vsel %vm1323_vm2, %v1325_v9, %v1321_v33  ;;  %v1629_v29 = vmul.f32 %v1628_v41, %v4828_v13  ;;  %v1543_v56 = vmul.f32 3.8918573e-05, %v4784_v4 }
 0x1b4   : > { %v1006_v43 = vsel %vm1003_vm3, %v1005_v46, %v1001_v16  ;;  %v2018_v59 = vmul.f32 %v2017_v57, %v5189_v47  ;;  %v1434_v25 = vmul.f32 %v3827_v31, %v5266_v18  ;;  %3828 = vrcp.f32 %v5308_v62  ;;  %v6616_v46 = vld [vmem:[#allocation50_spill] sm:$0xff] }
 0x1b5   : > { %v1093_v58 = vadd.f32 0.00028619796, %v1092_v40  ;;  %v5322_v1 = vmin.f32 %v2130_v34, 16.0  ;;  %vm1438_vm4 = vweird.f32 %v5266_v18  ;;  %v1444_v61 = vand.u32 2147483648, %v5266_v18 }
 0x1b6   : > { %v1327_v42 = vmul.f32 %v1326_v37, %v4893_v7  ;;  %v1435_v12 = vsub.f32 1.0, %v1434_v25  ;;  %vm1439_vm5 = vweird.f32 %v3827_v31  ;;  %v1442_v63 = vand.u32 2147483647, %v5266_v18 }
 0x1b7   : > { %v2132_v55 = vmul.f32 2.1237322e-06, %v5322_v1  ;;  %v1210_v24 = vmul.f32 %v5315_v30, %v5315_v30  ;;  %v1630_v6 = vadd.f32 0.4994258, %v1629_v29  ;;  %v1544_v5 = vadd.f32 0.001143296, %v1543_v56  ;;  %vm5339_vm6 = vmor %vm1438_vm4, %vm1439_vm5 }
 0x1b8   : > { %v2692_v0 = vadd.f32 1.0, %v3448_v19  ;;  %v5332_v21 = vmul.f32 %v1901_v3, %v4974_v26  ;;  %v5335_v22 = vmul.f32 0.5, %v5131_v38  ;;  %v1436_v35 = vmul.f32 %v3827_v31, %v1435_v12  ;;  %v6617_v56 = vld [vmem:[#allocation55_spill] sm:$0xff] }
 0x1b9   : > { %v1007_v7 = vmul.f32 %v1006_v43, %v982_v60  ;;  %v2019_v53 = vadd.f32 0.18741608, %v2018_v59  ;;  %v1445_v52 = vor.u32 1.1754944e-38, %v1444_v61  ;;  %v1631_v8 = vmul.f32 %v1630_v6, %v4828_v13  ;;  %v615_v61 = vpop.f32.mrf.mxu3 }
 0x1ba   : > { %6613 = vst [vmem:[#allocation21_spill] sm:$0xff] %v5335_v22  ;;  %v3829_v48 = vpop.eup %3828  ;;  %v1094_v50 = vmul.f32 %v1093_v58, %v5274_v14  ;;  %v3459_v26 = vclamps-f32 %v1327_v42, 1.0  ;;  %v1437_v41 = vadd.f32 %v3827_v31, %v1436_v35  ;;  %vm1443_vm7 = vcmp.eq.f32.partialorder %v1442_v63, 8.507059e+37 }
 0x1bb   : > { %v2133_v38 = vadd.f32 0.00028619796, %v2132_v55  ;;  %v5345_v3 = vmin.f32 %v1210_v24, 16.0  ;;  %v1514_v16 = vmul.f32 %v3829_v48, %v5308_v62  ;;  %v1545_v18 = vmul.f32 %v1544_v5, %v4784_v4 }
 0x1bc   : > { %v1441_v57 = vsel %vm5339_vm6, %v3827_v31, %v1437_v41  ;;  %vm1518_vm8 = vweird.f32 %v5308_v62  ;;  %v1524_v13 = vand.u32 2147483648, %v5308_v62  ;;  %v5353_v40 = vadd.f32 1.0, %v1631_v8  ;;  %v6623_v41 = vld [vmem:[#allocation40_spill] sm:$0xff] }
 0x1bd   : > { %v1446_v34 = vsel %vm1443_vm7, %v1445_v52, %v1441_v57  ;;  %v1515_v33 = vsub.f32 1.0, %v1514_v16  ;;  %vm1519_vm9 = vweird.f32 %v3829_v48  ;;  %v1522_v19 = vand.u32 2147483647, %v5308_v62 }
 0x1be   : > { %v3451_v60 = vclamps-f32 %v1007_v7, 1.0  ;;  %v1447_v37 = vmul.f32 %v1446_v34, %v6616_v46  ;;  %v2703_v29 = vadd.f32 1.0, %v3459_v26  ;;  %3830 = vrcp.f32 %v5353_v40  ;;  %vm5365_vm10 = vmor %vm1518_vm8, %vm1519_vm9 }
 0x1bf   : > { %v5359_v43 = vmul.f32 %v2692_v0, %v6617_v56  ;;  %v2020_v31 = vmul.f32 %v2019_v53, %v5189_v47  ;;  %v1095_v59 = vadd.f32 0.0036580483, %v1094_v50  ;;  %v1516_v25 = vmul.f32 %v3829_v48, %v1515_v33  ;;  %v6621_v53 = vld [vmem:[#allocation35_spill] sm:$0xff] }
 0x1c0   : > { %v2134_v58 = vmul.f32 %v2133_v38, %v5322_v1  ;;  %v3462_v42 = vclamps-f32 %v1447_v37, 1.0  ;;  %v1525_v63 = vor.u32 1.1754944e-38, %v1524_v13  ;;  %v1546_v55 = vadd.f32 0.014752088, %v1545_v18  ;;  %v6625_v37 = vld [vmem:[#allocation32_spill] sm:$0xff] }
 0x1c1   : > { %v1212_v24 = vmul.f32 2.1237322e-06, %v5345_v3  ;;  %v5371_v6 = vadd.f32 %v615_v61, %v4293_v17  ;;  %v1517_v5 = vadd.f32 %v3829_v48, %v1516_v25  ;;  %vm1523_vm11 = vcmp.eq.f32.partialorder %v1522_v19, 8.507059e+37  ;;  %v644_v19 = vpop.f32.mrf.mxu2 }
 0x1c2   : > { %v2695_v0 = vadd.f32 1.0, %v3451_v60  ;;  %v5374_v35 = vmul.f32 0.5, %v5213_v32  ;;  %v2706_v7 = vadd.f32 1.0, %v3462_v42  ;;  %v2751_v62 = vmul.f32 %v2703_v29, %v6621_v53  ;;  %v6624_v60 = vld [vmem:[#allocation15_spill] sm:$0xff] }
 0x1c3   : > { %v5377_v9 = vadd.f32 1.1283791, %v2020_v31  ;;  %v1096_v52 = vmul.f32 %v1095_v59, %v5274_v14  ;;  %v5381_v8 = vmul.f32 0.5, %v5257_v51  ;;  %v1521_v50 = vsel %vm5365_vm10, %v3829_v48, %v1517_v5  ;;  %v6626_v59 = vld [vmem:[#allocation56_spill] sm:$0xff] }
 0x1c4   : > { %6620 = vst [vmem:[#allocation24_spill] sm:$0xff] %v5374_v35  ;;  %v3831_v26 = vpop.eup %3830  ;;  %v2754_v38 = vmul.f32 %v2706_v7, %v6623_v41  ;;  %v1526_v16 = vsel %vm1523_vm11, %v1525_v63, %v1521_v50  ;;  %v1547_v32 = vmul.f32 %v1546_v55, %v4784_v4  ;;  %v1663_v18 = vmul.f32 3.8918573e-05, %v4899_v2  ;;  %v6629_v41 = vld [vmem:[#allocation16_spill] sm:$0xff] }
 0x1c5   : > { %6622 = vst [vmem:[#allocation36_spill] sm:$0xff] %v5381_v8  ;;  %v2135_v57 = vadd.f32 0.0036580483, %v2134_v58  ;;  %v1213_v13 = vadd.f32 0.00028619796, %v1212_v24  ;;  %v1634_v33 = vmul.f32 %v3831_v26, %v5353_v40  ;;  %vm1638_vm12 = vweird.f32 %v5353_v40 }
 0x1c6   : > { %v5389_v34 = vmul.f32 0.70710677, %v5371_v6  ;;  %v2793_v51 = vpack.c.bf16 %v2754_v38, %v2751_v62  ;;  %v1644_v48 = vand.u32 2147483648, %v5353_v40  ;;  %v1743_v46 = vmul.f32 3.8918573e-05, %v6624_v60 }
 0x1c7   : > { %v1527_v29 = vmul.f32 %v1526_v16, %v6625_v37  ;;  %v1635_v56 = vsub.f32 1.0, %v1634_v33  ;;  %vm1639_vm13 = vweird.f32 %v3831_v26  ;;  %v1642_v31 = vand.u32 2147483647, %v5353_v40 }
 0x1c8   : > { %v5398_v25 = vmul.f32 %v2695_v0, %v6626_v59  ;;  %v1097_v58 = vadd.f32 0.05243302, %v1096_v52  ;;  %3073 = vmatmul.bf16.gmra.mxu0 %v2793_v51  ;;  %v1548_v61 = vadd.f32 0.112945676, %v1547_v32  ;;  %v1664_v42 = vadd.f32 0.001143296, %v1663_v18  ;;  %vm5408_vm14 = vmor %vm1638_vm12, %vm1639_vm13  ;;  %v617_v51 = vpop.f32.mrf.mxu3 }
 0x1c9   : > { %v2136_v12 = vmul.f32 %v2135_v57, %v5322_v1  ;;  %v2250_v63 = vmul.f32 %v5389_v34, %v5389_v34  ;;  %v5404_v55 = vadd.f32 %v644_v19, %v4841_v28  ;;  %v1636_v24 = vmul.f32 %v3831_v26, %v1635_v56 }
 0x1ca   : > { %v1645_v0 = vor.u32 1.1754944e-38, %v1644_v48  ;;  %v1549_v7 = vmul.f32 %v1548_v61, %v4784_v4  ;;  %v1665_v53 = vmul.f32 %v1664_v42, %v4899_v2  ;;  %v1744_v62 = vadd.f32 0.001143296, %v1743_v46 }
 0x1cb   : > { %v3464_v52 = vclamps-f32 %v1527_v29, 1.0  ;;  %v1637_v50 = vadd.f32 %v3831_v26, %v1636_v24  ;;  %vm1643_vm15 = vcmp.eq.f32.partialorder %v1642_v31, 8.507059e+37  ;;  %v1863_v38 = vmul.f32 3.8918573e-05, %v6629_v41 }
 0x1cc   : > { %v1214_v16 = vmul.f32 %v1213_v13, %v5345_v3  ;;  %v1550_v32 = vadd.f32 0.4994258, %v1549_v7  ;;  %v1666_v18 = vadd.f32 0.014752088, %v1665_v53  ;;  %v1745_v40 = vmul.f32 %v1744_v62, %v6624_v60 }
 0x1cd   : > { %v2137_v57 = vadd.f32 0.05243302, %v2136_v12  ;;  %v5417_v33 = vmin.f32 %v2250_v63, 16.0  ;;  %v1641_v19 = vsel %vm5408_vm14, %v3831_v26, %v1637_v50  ;;  %v1864_v48 = vadd.f32 0.001143296, %v1863_v38  ;;  %v6632_v38 = vld [vmem:[#allocation43_spill] sm:$0xff] }
 0x1ce   : > { %v5422_v46 = vmul.f32 0.70710677, %v5404_v55  ;;  %v1646_v37 = vsel %vm1643_vm15, %v1645_v0, %v1641_v19  ;;  %v1551_v29 = vmul.f32 %v1550_v32, %v4784_v4  ;;  %v1667_v13 = vmul.f32 %v1666_v18, %v4899_v2  ;;  %v6631_v0 = vld [vmem:[#allocation19_spill] sm:$0xff] }
 0x1cf   : > { %v1647_v56 = vmul.f32 %v1646_v37, %v5090_v23  ;;  %v2708_v31 = vadd.f32 1.0, %v3464_v52  ;;  %v1746_v59 = vadd.f32 0.014752088, %v1745_v40  ;;  %v1865_v61 = vmul.f32 %v1864_v48, %v6629_v41  ;;  %v646_v52 = vpop.f32.mrf.mxu2 }
 0x1d0   : > { %6630 = vst [vmem:[#allocation23_spill] sm:$0xff] %v5422_v46  ;;  %v2252_v42 = vmul.f32 2.1237322e-06, %v5417_v33  ;;  %v5430_v12 = vadd.f32 %v617_v51, %v4293_v17  ;;  %v5432_v26 = vadd.f32 1.0, %v1551_v29  ;;  %v1668_v63 = vadd.f32 0.112945676, %v1667_v13 }
 0x1d1   : > { %v3467_v24 = vclamps-f32 %v1647_v56, 1.0  ;;  %v1747_v5 = vmul.f32 %v1746_v59, %v6624_v60  ;;  %v1866_v4 = vadd.f32 0.014752088, %v1865_v61  ;;  %v1983_v7 = vmul.f32 3.8918573e-05, %v6631_v0 }
 0x1d2   : > { %v1098_v23 = vmul.f32 %v1097_v58, %v5274_v14  ;;  %v1215_v53 = vadd.f32 0.0036580483, %v1214_v16  ;;  %v1330_v62 = vmul.f32 %v5422_v46, %v5422_v46  ;;  %3832 = vrcp.f32 %v5432_v26  ;;  %v6634_v16 = vld [vmem:[#allocation47_spill] sm:$0xff] }
 0x1d3   : > { %v2711_v50 = vadd.f32 1.0, %v3467_v24  ;;  %v2756_v32 = vmul.f32 %v2708_v31, %v6632_v38  ;;  %v1669_v18 = vmul.f32 %v1668_v63, %v4899_v2  ;;  %v1748_v40 = vadd.f32 0.112945676, %v1747_v5 }
 0x1d4   : > { %v2138_v51 = vmul.f32 %v2137_v57, %v5322_v1  ;;  %v2253_v19 = vadd.f32 0.00028619796, %v2252_v42  ;;  %v5444_v48 = vmul.f32 0.70710677, %v5430_v12  ;;  %v1867_v58 = vmul.f32 %v1866_v4, %v6629_v41  ;;  %v3645_v57 = vld [vmem:[#allocation8 + $0x88] sm:$0xff] }
 0x1d5   : > { %v2759_v37 = vmul.f32 %v2711_v50, %v6634_v16  ;;  %v1670_v29 = vadd.f32 0.4994258, %v1669_v18  ;;  %v1749_v13 = vmul.f32 %v1748_v40, %v6624_v60  ;;  %v1984_v56 = vadd.f32 0.001143296, %v1983_v7  ;;  %3110 = vmatpush.bf16.msrb.mxu1 %v3645_v57 }
 0x1d6   : > { %6633 = vst [vmem:[#allocation26_spill] sm:$0xff] %v5444_v48  ;;  %v5450_v59 = vmul.f32 0.5, %v5281_v39  ;;  %v5452_v31 = vmin.f32 %v1330_v62, 16.0  ;;  %v5455_v61 = vadd.f32 %v646_v52, %v4841_v28  ;;  %v1868_v42 = vadd.f32 0.112945676, %v1867_v58  ;;  %v3644_v58 = vld [vmem:[#allocation8 + $0x80] sm:$0xff] }
 0x1d7   : > { %v1099_v63 = vadd.f32 0.18741608, %v1098_v23  ;;  %v1216_v24 = vmul.f32 %v1215_v53, %v5345_v3  ;;  %v2795_v5 = vpack.c.bf16 %v2759_v37, %v2756_v32  ;;  %v1671_v4 = vmul.f32 %v1670_v29, %v4899_v2 }
 0x1d8   : > { %6635 = vst [vmem:[#allocation34_spill] sm:$0xff] %v5450_v59  ;;  %v3833_v50 = vpop.eup %3832  ;;  %v2139_v38 = vadd.f32 0.18741608, %v2138_v51  ;;  %v2254_v7 = vmul.f32 %v2253_v19, %v5417_v33  ;;  %v2370_v39 = vmul.f32 %v5444_v48, %v5444_v48  ;;  %v1750_v62 = vadd.f32 0.4994258, %v1749_v13  ;;  %v620_v13 = vpop.f32.mrf.mxu3 }
 0x1d9   : > { %3029 = vmatmul.bf16.gmra.mxu3 %v2795_v5  ;;  %v1554_v52 = vmul.f32 %v3833_v50, %v5432_v26  ;;  %v5463_v18 = vadd.f32 1.0, %v1671_v4  ;;  %v1869_v23 = vmul.f32 %v1868_v42, %v6629_v41  ;;  %v1985_v53 = vmul.f32 %v1984_v56, %v6631_v0  ;;  %3111 = vmatpush.bf16.msrb.mxu1 %v3644_v58 }
 0x1da   : > { %v1332_v2 = vmul.f32 2.1237322e-06, %v5452_v31  ;;  %v5469_v32 = vmul.f32 0.70710677, %v5455_v61  ;;  %vm1558_vm0 = vweird.f32 %v5432_v26  ;;  %v1564_v40 = vand.u32 2147483648, %v5432_v26 }
 0x1db   : > { %v1555_v51 = vsub.f32 1.0, %v1554_v52  ;;  %vm1559_vm1 = vweird.f32 %v3833_v50  ;;  %v1562_v19 = vand.u32 2147483647, %v5432_v26  ;;  %3834 = vrcp.f32 %v5463_v18 }
 0x1dc   : > { %6636 = vst [vmem:[#allocation50_spill] sm:$0xff] %v5469_v32  ;;  %v1217_v16 = vadd.f32 0.05243302, %v1216_v24  ;;  %v2255_v37 = vadd.f32 0.0036580483, %v2254_v7  ;;  %v5475_v29 = vmin.f32 %v2370_v39, 16.0  ;;  %v1751_v56 = vmul.f32 %v1750_v62, %v6624_v60  ;;  %vm5485_vm2 = vmor %vm1558_vm0, %vm1559_vm1 }
 0x1dd   : > { %v5479_v57 = vadd.f32 %v620_v13, %v4293_v17  ;;  %v1556_v42 = vmul.f32 %v3833_v50, %v1555_v51  ;;  %v1870_v5 = vadd.f32 0.4994258, %v1869_v23  ;;  %v1986_v4 = vadd.f32 0.014752088, %v1985_v53 }
 0x1de   : > { %v1333_v52 = vadd.f32 0.00028619796, %v1332_v2  ;;  %v2372_v20 = vmul.f32 2.1237322e-06, %v5475_v29  ;;  %v1565_v7 = vor.u32 1.1754944e-38, %v1564_v40  ;;  %v5489_v39 = vadd.f32 1.0, %v1751_v56 }
 0x1df   : > { %v1100_v60 = vmul.f32 %v1099_v63, %v5274_v14  ;;  %v1450_v62 = vmul.f32 %v5469_v32, %v5469_v32  ;;  %v1557_v23 = vadd.f32 %v3833_v50, %v1556_v42  ;;  %vm1563_vm3 = vcmp.eq.f32.partialorder %v1562_v19, 8.507059e+37 }
 0x1e0   : > { %v2140_v53 = vmul.f32 %v2139_v38, %v5322_v1  ;;  %v1218_v2 = vmul.f32 %v1217_v16, %v5345_v3  ;;  %3836 = vrcp.f32 %v5489_v39  ;;  %v1871_v26 = vmul.f32 %v1870_v5, %v6629_v41  ;;  %v6640_v41 = vld [vmem:[#allocation33_spill] sm:$0xff] }
 0x1e1   : > { %v3835_v51 = vpop.eup %3834  ;;  %v2256_v40 = vmul.f32 %v2255_v37, %v5417_v33  ;;  %v5500_v58 = vmul.f32 0.70710677, %v5479_v57  ;;  %v1561_v63 = vsel %vm5485_vm2, %v3833_v50, %v1557_v23  ;;  %v1987_v13 = vmul.f32 %v1986_v4, %v6631_v0 }
 0x1e2   : > { %v1334_v19 = vmul.f32 %v1333_v52, %v5452_v31  ;;  %v2373_v38 = vadd.f32 0.00028619796, %v2372_v20  ;;  %v1566_v56 = vsel %vm1563_vm3, %v1565_v7, %v1561_v63  ;;  %v1674_v16 = vmul.f32 %v3835_v51, %v5463_v18 }
 0x1e3   : > { %6639 = vst [vmem:[#allocation55_spill] sm:$0xff] %v5500_v58  ;;  %v5507_v42 = vmin.f32 %v1450_v62, 16.0  ;;  %v1567_v5 = vmul.f32 %v1566_v56, %v6640_v41  ;;  %vm1678_vm4 = vweird.f32 %v5463_v18  ;;  %v1684_v37 = vand.u32 2147483648, %v5463_v18 }
 0x1e4   : > { %v1675_v59 = vsub.f32 1.0, %v1674_v16  ;;  %vm1679_vm5 = vweird.f32 %v3835_v51  ;;  %v1682_v50 = vand.u32 2147483647, %v5463_v18  ;;  %v5513_v24 = vadd.f32 1.0, %v1871_v26 }
 0x1e5   : > { %v5515_v4 = vadd.f32 1.1283791, %v1100_v60  ;;  %v2257_v20 = vadd.f32 0.05243302, %v2256_v40  ;;  %v2490_v52 = vmul.f32 %v5500_v58, %v5500_v58  ;;  %v1988_v7 = vadd.f32 0.112945676, %v1987_v13  ;;  %vm5526_vm6 = vmor %vm1678_vm4, %vm1679_vm5 }
 0x1e6   : > { %v3837_v62 = vpop.eup %3836  ;;  %v5519_v23 = vadd.f32 1.1283791, %v2140_v53  ;;  %v5521_v63 = vadd.f32 0.18741608, %v1218_v2  ;;  %v1676_v56 = vmul.f32 %v3835_v51, %v1675_v59  ;;  %3838 = vrcp.f32 %v5513_v24 }
 0x1e7   : > { %v1335_v16 = vadd.f32 0.0036580483, %v1334_v19  ;;  %v3465_v41 = vclamps-f32 %v1567_v5, 1.0  ;;  %v1685_v26 = vor.u32 1.1754944e-38, %v1684_v37  ;;  %v1754_v40 = vmul.f32 %v3837_v62, %v5489_v39 }
 0x1e8   : > { %v2374_v13 = vmul.f32 %v2373_v38, %v5475_v29  ;;  %v1452_v53 = vmul.f32 2.1237322e-06, %v5507_v42  ;;  %v1677_v2 = vadd.f32 %v3835_v51, %v1676_v56  ;;  %vm1683_vm7 = vcmp.eq.f32.partialorder %v1682_v50, 8.507059e+37 }
 0x1e9   : > { %v5534_v59 = vmul.f32 %v2257_v20, %v5417_v33  ;;  %v5536_v19 = vmin.f32 %v2490_v52, 16.0  ;;  %v1755_v5 = vsub.f32 1.0, %v1754_v40  ;;  %v1989_v18 = vmul.f32 %v1988_v7, %v6631_v0 }
 0x1ea   : > { %v1681_v35 = vsel %vm5526_vm6, %v3835_v51, %v1677_v2  ;;  %v1762_v37 = vand.u32 2147483647, %v5489_v39  ;;  %v1764_v11 = vand.u32 2147483648, %v5489_v39  ;;  %v1783_v38 = vmul.f32 3.8918573e-05, %v4935_v27 }
 0x1eb   : > { %v1686_v8 = vsel %vm1683_vm7, %v1685_v26, %v1681_v35  ;;  %v2709_v56 = vadd.f32 1.0, %v3465_v41  ;;  %v1756_v50 = vmul.f32 %v3837_v62, %v1755_v5  ;;  %vm1759_vm8 = vweird.f32 %v3837_v62  ;;  %v6643_v5 = vld [vmem:[#allocation44_spill] sm:$0xff] }
 0x1ec   : > { %v3839_v20 = vpop.eup %3838  ;;  %v1336_v52 = vmul.f32 %v1335_v16, %v5452_v31  ;;  %v2375_v22 = vadd.f32 0.0036580483, %v2374_v13  ;;  %v1453_v40 = vadd.f32 0.00028619796, %v1452_v53  ;;  %v1687_v7 = vmul.f32 %v1686_v8, %v5135_v36 }
 0x1ed   : > { %v2492_v60 = vmul.f32 2.1237322e-06, %v5536_v19  ;;  %v1757_v51 = vadd.f32 %v3837_v62, %v1756_v50  ;;  %vm1758_vm9 = vweird.f32 %v5489_v39  ;;  %v1874_v2 = vmul.f32 %v3839_v20, %v5513_v24  ;;  %v6644_v50 = vld [vmem:[#allocation20_spill] sm:$0xff] }
 0x1ee   : > { %v3468_v58 = vclamps-f32 %v1687_v7, 1.0  ;;  %vm1760_vm10 = vmor %vm1758_vm9, %vm1759_vm8  ;;  %v1765_v35 = vor.u32 1.1754944e-38, %v1764_v11  ;;  %v1784_v41 = vadd.f32 0.001143296, %v1783_v38  ;;  %v1990_v26 = vadd.f32 0.4994258, %v1989_v18 }
 0x1ef   : > { %v2757_v32 = vmul.f32 %v2709_v56, %v6643_v5  ;;  %v1761_v48 = vsel %vm1760_vm10, %v3837_v62, %v1757_v51  ;;  %vm1763_vm11 = vcmp.eq.f32.partialorder %v1762_v37, 8.507059e+37  ;;  %v1875_v16 = vsub.f32 1.0, %v1874_v2  ;;  %v6645_v18 = vld [vmem:[#allocation49_spill] sm:$0xff] }
 0x1f0   : > { %v2712_v13 = vadd.f32 1.0, %v3468_v58  ;;  %v1766_v53 = vsel %vm1763_vm11, %v1765_v35, %v1761_v48  ;;  %v1884_v36 = vand.u32 2147483648, %v5513_v24  ;;  %v1785_v8 = vmul.f32 %v1784_v41, %v4935_v27  ;;  %v6646_v48 = vld [vmem:[#allocation25_spill] sm:$0xff] }
 0x1f1   : > { %v1767_v39 = vmul.f32 %v1766_v53, %v6644_v50  ;;  %v1876_v46 = vmul.f32 %v3839_v20, %v1875_v16  ;;  %vm1879_vm12 = vweird.f32 %v3839_v20  ;;  %v1882_v7 = vand.u32 2147483647, %v5513_v24  ;;  %v6647_v53 = vld [vmem:[#allocation28_spill] sm:$0xff] }
 0x1f2   : > { %v2376_v11 = vmul.f32 %v2375_v22, %v5475_v29  ;;  %v2760_v38 = vmul.f32 %v2712_v13, %v6645_v18  ;;  %v1786_v56 = vadd.f32 0.014752088, %v1785_v8  ;;  %v1991_v62 = vmul.f32 %v1990_v26, %v6631_v0 }
 0x1f3   : > { %v2493_v37 = vadd.f32 0.00028619796, %v2492_v60  ;;  %v1877_v58 = vadd.f32 %v3839_v20, %v1876_v46  ;;  %vm1878_vm13 = vweird.f32 %v5513_v24  ;;  %v2103_v51 = vmul.f32 3.8918573e-05, %v6646_v48 }
 0x1f4   : > { %v2796_v2 = vpack.c.bf16 %v2760_v38, %v2757_v32  ;;  %vm1880_vm14 = vmor %vm1878_vm13, %vm1879_vm12  ;;  %v1885_v35 = vor.u32 1.1754944e-38, %v1884_v36  ;;  %v1787_v41 = vmul.f32 %v1786_v56, %v4935_v27  ;;  %v1903_v5 = vmul.f32 3.8918573e-05, %v5013_v15 }
 0x1f5   : > { %v1454_v22 = vmul.f32 %v1453_v40, %v5507_v42  ;;  %v3470_v16 = vclamps-f32 %v1767_v39, 1.0  ;;  %v1881_v13 = vsel %vm1880_vm14, %v3839_v20, %v1877_v58  ;;  %vm1883_vm15 = vcmp.eq.f32.partialorder %v1882_v7, 8.507059e+37 }
 0x1f6   : > { %3078 = vmatmul.bf16.gmra.mxu0 %v2796_v2  ;;  %v1886_v0 = vsel %vm1883_vm15, %v1885_v35, %v1881_v13  ;;  %v1788_v60 = vadd.f32 0.112945676, %v1787_v41  ;;  %v1904_v46 = vadd.f32 0.001143296, %v1903_v5  ;;  %v5562_v26 = vadd.f32 1.0, %v1991_v62 }
 0x1f7   : > { %v1220_v32 = vmul.f32 %v5521_v63, %v5345_v3  ;;  %v2494_v24 = vmul.f32 %v2493_v37, %v5536_v19  ;;  %v1887_v36 = vmul.f32 %v1886_v0, %v6647_v53  ;;  %v2104_v8 = vadd.f32 0.001143296, %v2103_v51  ;;  %v6649_v0 = vld [vmem:[#allocation18_spill] sm:$0xff] }
 0x1f8   : > { %v2259_v50 = vadd.f32 0.18741608, %v5534_v59  ;;  %v1789_v40 = vmul.f32 %v1788_v60, %v4935_v27  ;;  %v1905_v20 = vmul.f32 %v1904_v46, %v5013_v15  ;;  %3840 = vrcp.f32 %v5562_v26 }
 0x1f9   : > { %v1337_v39 = vadd.f32 0.05243302, %v1336_v52  ;;  %v2377_v7 = vadd.f32 0.05243302, %v2376_v11  ;;  %v3473_v18 = vclamps-f32 %v1887_v36, 1.0  ;;  %v2714_v38 = vadd.f32 1.0, %v3470_v16  ;;  %v649_v36 = vpop.f32.mrf.mxu2 }
 0x1fa   : > { %v1455_v56 = vadd.f32 0.0036580483, %v1454_v22  ;;  %v1790_v62 = vadd.f32 0.4994258, %v1789_v40  ;;  %v1906_v63 = vadd.f32 0.014752088, %v1905_v20  ;;  %v2105_v37 = vmul.f32 %v2104_v8, %v6646_v48 }
 0x1fb   : > { %v5575_v58 = vmul.f32 %v5377_v9, %v5153_v10  ;;  %v1221_v59 = vadd.f32 1.1283791, %v1220_v32  ;;  %v2495_v51 = vadd.f32 0.0036580483, %v2494_v24  ;;  %v2717_v2 = vadd.f32 1.0, %v3473_v18  ;;  %v6648_v16 = vld [vmem:[#allocation17_spill] sm:$0xff]  ;;  %v622_v18 = vpop.f32.mrf.mxu3 }
 0x1fc   : > { %v2260_v35 = vmul.f32 %v2259_v50, %v5417_v33  ;;  %v1791_v41 = vmul.f32 %v1790_v62, %v4935_v27  ;;  %v1907_v52 = vmul.f32 %v1906_v63, %v5013_v15  ;;  %v2106_v11 = vadd.f32 0.014752088, %v2105_v37 }
 0x1fd   : > { %v1338_v5 = vmul.f32 %v1337_v39, %v5452_v31  ;;  %v2378_v22 = vmul.f32 %v2377_v7, %v5475_v29  ;;  %v2762_v13 = vmul.f32 %v2714_v38, %v6648_v16  ;;  %v2765_v60 = vmul.f32 %v2717_v2, %v6649_v0  ;;  %v6650_v16 = vld [vmem:[#allocation27_spill] sm:$0xff] }
 0x1fe   : > { %v5584_v10 = vpop.eup %3840  ;;  %v1456_v9 = vmul.f32 %v1455_v56, %v5507_v42  ;;  %v5587_v46 = vadd.f32 1.0, %v1791_v41  ;;  %v1908_v32 = vadd.f32 0.112945676, %v1907_v52  ;;  %v2107_v27 = vmul.f32 %v2106_v11, %v6646_v48 }
 0x1ff   : > { %v5591_v24 = vmul.f32 0.5, %v5371_v6  ;;  %v2496_v53 = vmul.f32 %v2495_v51, %v5536_v19  ;;  %v2798_v8 = vpack.c.bf16 %v2765_v60, %v2762_v13  ;;  %v1994_v50 = vmul.f32 %v5584_v10, %v5562_v26 }
 0x200   : > { %v5598_v40 = vmul.f32 %v5515_v4, %v5240_v44  ;;  %v5602_v20 = vmul.f32 %v5519_v23, %v5271_v54  ;;  %v2261_v39 = vadd.f32 1.1283791, %v2260_v35  ;;  %3842 = vrcp.f32 %v5587_v46 }
 0x201   : > { %v5606_v6 = vmul.f32 %v1221_v59, %v5315_v30  ;;  %v1339_v7 = vadd.f32 0.18741608, %v1338_v5  ;;  %3034 = vmatmul.bf16.gmra.mxu3 %v2798_v8  ;;  %v1909_v38 = vmul.f32 %v1908_v32, %v5013_v15  ;;  %v2108_v56 = vadd.f32 0.112945676, %v2107_v27 }
 0x202   : > { %v2379_v62 = vadd.f32 0.18741608, %v2378_v22  ;;  %v1457_v63 = vadd.f32 0.05243302, %v1456_v9  ;;  %v5610_v44 = vadd.f32 %v649_v36, %v4841_v28  ;;  %v1995_v4 = vsub.f32 1.0, %v1994_v50 }
 0x203   : > { %v5613_v54 = vmul.f32 0.5, %v5404_v55  ;;  %v2497_v23 = vadd.f32 0.05243302, %v2496_v53  ;;  %v1910_v37 = vadd.f32 0.4994258, %v1909_v38  ;;  %v2109_v30 = vmul.f32 %v2108_v56, %v6646_v48 }
 0x204   : > { %v5617_v59 = vmul.f32 %v2261_v39, %v5389_v34  ;;  %v5620_v51 = vmul.f32 0.5, %v5430_v12  ;;  %v5623_v2 = vadd.f32 %v622_v18, %v4293_v17  ;;  %v2788_v35 = vpack.c.bf16 %v5398_v25, %v5359_v43 }
 0x205   : > { %v5628_v41 = vmul.f32 %v1339_v7, %v5452_v31  ;;  %v5631_v55 = vmul.f32 0.5, %v5455_v61  ;;  %v1911_v52 = vmul.f32 %v1910_v37, %v5013_v15  ;;  %v2110_v11 = vadd.f32 0.4994258, %v2109_v30 }
 0x206   : > { %v3843_v34 = vpop.eup %3842  ;;  %v5635_v5 = vmul.f32 %v2379_v62, %v5475_v29  ;;  %v1458_v12 = vmul.f32 %v1457_v63, %v5507_v42  ;;  %v5639_v17 = vmul.f32 0.70710677, %v5610_v44  ;;  %3112 = vmatmul.bf16.vlgmr.msrb.gmra.mxu1 %v2788_v35  ;;  %v1996_v43 = vmul.f32 %v5584_v10, %v1995_v4 }
 0x207   : > { %v2498_v25 = vmul.f32 %v2497_v23, %v5536_v19  ;;  %v1794_v61 = vmul.f32 %v3843_v34, %v5587_v46  ;;  %v1912_v22 = vadd.f32 1.0, %v1911_v52  ;;  %v2223_v15 = vmul.f32 3.8918573e-05, %v6650_v16 }
 0x208   : > { %v5646_v13 = vmul.f32 0.70710677, %v5623_v2  ;;  %vm1798_vm0 = vweird.f32 %v5587_v46  ;;  %v1804_v0 = vand.u32 2147483648, %v5587_v46  ;;  %v2111_v60 = vmul.f32 %v2110_v11, %v6646_v48 }
 0x209   : > { %v1795_v9 = vsub.f32 1.0, %v1794_v61  ;;  %vm1799_vm1 = vweird.f32 %v3843_v34  ;;  %v1802_v32 = vand.u32 2147483647, %v5587_v46  ;;  %3844 = vrcp.f32 %v1912_v22 }
 0x20a   : > { %v1570_v27 = vmul.f32 %v5639_v17, %v5639_v17  ;;  %v1997_v53 = vadd.f32 %v5584_v10, %v1996_v43  ;;  %vm1999_vm2 = vweird.f32 %v5584_v10  ;;  %v5656_v36 = vadd.f32 1.0, %v2111_v60  ;;  %vm5662_vm3 = vmor %vm1798_vm0, %vm1799_vm1 }
 0x20b   : > { %v1796_v8 = vmul.f32 %v3843_v34, %v1795_v9  ;;  %v2004_v50 = vand.u32 2147483648, %v5562_v26  ;;  %v2023_v39 = vmul.f32 3.8918573e-05, %v5189_v47  ;;  %v2224_v48 = vadd.f32 0.001143296, %v2223_v15 }
 0x20c   : > { %v1805_v18 = vor.u32 1.1754944e-38, %v1804_v0  ;;  %vm1998_vm4 = vweird.f32 %v5562_v26  ;;  %v2002_v38 = vand.u32 2147483647, %v5562_v26  ;;  %3846 = vrcp.f32 %v5656_v36  ;;  %v651_v26 = vpop.f32.mrf.mxu2 }
 0x20d   : > { %v5669_v56 = vadd.f32 0.18741608, %v1458_v12  ;;  %v2610_v62 = vmul.f32 %v5646_v13, %v5646_v13  ;;  %v1797_v63 = vadd.f32 %v3843_v34, %v1796_v8  ;;  %vm1803_vm5 = vcmp.eq.f32.partialorder %v1802_v32, 8.507059e+37  ;;  %vm5675_vm6 = vmor %vm1998_vm4, %vm1999_vm2 }
 0x20e   : > { %v5679_v4 = vadd.f32 0.18741608, %v2498_v25  ;;  %v5681_v23 = vmin.f32 %v1570_v27, 16.0  ;;  %v2001_v37 = vsel %vm5675_vm6, %v5584_v10, %v1997_v53  ;;  %v2024_v30 = vadd.f32 0.001143296, %v2023_v39 }
 0x20f   : > { %v3845_v35 = vpop.eup %3844  ;;  %v1801_v52 = vsel %vm5662_vm3, %v3843_v34, %v1797_v63  ;;  %v1922_v11 = vand.u32 2147483647, %v1912_v22  ;;  %v2005_v12 = vor.u32 1.1754944e-38, %v2004_v50  ;;  %v2225_v43 = vmul.f32 %v2224_v48, %v6650_v16 }
 0x210   : > { %v1806_v61 = vsel %vm1803_vm5, %v1805_v18, %v1801_v52  ;;  %v1914_v15 = vmul.f32 %v3845_v35, %v1912_v22  ;;  %v1924_v25 = vand.u32 2147483648, %v1912_v22  ;;  %vm2003_vm7 = vcmp.eq.f32.partialorder %v2002_v38, 8.507059e+37  ;;  %v6657_v18 = vld [vmem:[#allocation38_spill] sm:$0xff] }
 0x211   : > { %v5689_v0 = vmin.f32 %v2610_v62, 16.0  ;;  %v5692_v60 = vadd.f32 %v651_v26, %v4841_v28  ;;  %vm1918_vm8 = vweird.f32 %v1912_v22  ;;  %v2006_v10 = vsel %vm2003_vm7, %v2005_v12, %v2001_v37 }
 0x212   : > { %v3847_v9 = vpop.eup %3846  ;;  %v1807_v32 = vmul.f32 %v1806_v61, %v5143_v45  ;;  %v1915_v27 = vsub.f32 1.0, %v1914_v15  ;;  %vm1919_vm9 = vweird.f32 %v3845_v35  ;;  %v2025_v34 = vmul.f32 %v2024_v30, %v5189_v47 }
 0x213   : > { %v5697_v53 = vmul.f32 2.1237322e-06, %v5681_v23  ;;  %vm5699_vm10 = vcmp.eq.f32.partialorder %v1922_v11, 8.507059e+37  ;;  %v2114_v50 = vmul.f32 %v3847_v9, %v5656_v36  ;;  %v2226_v39 = vadd.f32 0.014752088, %v2225_v43  ;;  %vm5706_vm11 = vmor %vm1918_vm8, %vm1919_vm9 }
 0x214   : > { %v1916_v48 = vmul.f32 %v3845_v35, %v1915_v27  ;;  %v1925_v7 = vor.u32 1.1754944e-38, %v1924_v25  ;;  %v2007_v38 = vmul.f32 %v2006_v10, %v6657_v18  ;;  %v2026_v62 = vadd.f32 0.014752088, %v2025_v34 }
 0x215   : > { %v2115_v63 = vsub.f32 1.0, %v2114_v50  ;;  %vm2118_vm12 = vweird.f32 %v5656_v36  ;;  %v2124_v46 = vand.u32 2147483648, %v5656_v36  ;;  %v2143_v26 = vmul.f32 3.8918573e-05, %v5322_v1 }
 0x216   : > { %v3471_v37 = vclamps-f32 %v1807_v32, 1.0  ;;  %v1917_v30 = vadd.f32 %v3845_v35, %v1916_v48  ;;  %v2027_v52 = vmul.f32 %v2026_v62, %v5189_v47  ;;  %v1103_v11 = vmul.f32 3.8918573e-05, %v5274_v14 }
 0x217   : > { %v2116_v12 = vmul.f32 %v3847_v9, %v2115_v63  ;;  %vm2119_vm13 = vweird.f32 %v3847_v9  ;;  %v2122_v22 = vand.u32 2147483647, %v5656_v36  ;;  %v2144_v43 = vadd.f32 0.001143296, %v2143_v26 }
 0x218   : > { %v1921_v61 = vsel %vm5706_vm11, %v3845_v35, %v1917_v30  ;;  %v3476_v15 = vclamps-f32 %v2007_v38, 1.0  ;;  %v2028_v25 = vadd.f32 0.112945676, %v2027_v52  ;;  %v1104_v10 = vadd.f32 0.001143296, %v1103_v11  ;;  %vm2120_vm14 = vmor %vm2118_vm12, %vm2119_vm13  ;;  %v6660_v30 = vld [vmem:[#allocation42_spill] sm:$0xff] }
 0x219   : > { %v1926_v27 = vsel %vm5699_vm10, %v1925_v7, %v1921_v61  ;;  %v2117_v32 = vadd.f32 %v3847_v9, %v2116_v12  ;;  %v2125_v34 = vor.u32 1.1754944e-38, %v2124_v46  ;;  %v2145_v50 = vmul.f32 %v2144_v43, %v5322_v1  ;;  %v6661_v12 = vld [vmem:[#allocation53_spill] sm:$0xff] }
 0x21a   : > { %v1927_v48 = vmul.f32 %v1926_v27, %v5332_v21  ;;  %v2715_v18 = vadd.f32 1.0, %v3471_v37  ;;  %v2029_v62 = vmul.f32 %v2028_v25, %v5189_v47  ;;  %v1105_v35 = vmul.f32 %v1104_v10, %v5274_v14 }
 0x21b   : > { %v2121_v38 = vsel %vm2120_vm14, %v3847_v9, %v2117_v32  ;;  %vm2123_vm15 = vcmp.eq.f32.partialorder %v2122_v22, 8.507059e+37  ;;  %v2146_v45 = vadd.f32 0.014752088, %v2145_v50  ;;  %v1223_v8 = vmul.f32 3.8918573e-05, %v5345_v3 }
 0x21c   : > { %v2612_v7 = vmul.f32 2.1237322e-06, %v5689_v0  ;;  %v3474_v63 = vclamps-f32 %v1927_v48, 1.0  ;;  %v2126_v46 = vsel %vm2123_vm15, %v2125_v34, %v2121_v38  ;;  %v2030_v26 = vadd.f32 0.4994258, %v2029_v62  ;;  %v654_v48 = vpop.f32.mrf.mxu2 }
 0x21d   : > { %v2127_v21 = vmul.f32 %v2126_v46, %v6660_v30  ;;  %v2147_v37 = vmul.f32 %v2146_v45, %v5322_v1  ;;  %v1106_v36 = vadd.f32 0.014752088, %v1105_v35  ;;  %v2227_v52 = vmul.f32 %v2226_v39, %v6650_v16 }
 0x21e   : > { %v2718_v11 = vadd.f32 1.0, %v3474_v63  ;;  %v2763_v43 = vmul.f32 %v2715_v18, %v6661_v12  ;;  %v2031_v9 = vmul.f32 %v2030_v26, %v5189_v47  ;;  %v1224_v22 = vadd.f32 0.001143296, %v1223_v8  ;;  %v6662_v63 = vld [vmem:[#allocation22_spill] sm:$0xff]  ;;  %v6663_v26 = vld [vmem:[#allocation29_spill] sm:$0xff] }
 0x21f   : > { %v3479_v61 = vclamps-f32 %v2127_v21, 1.0  ;;  %v2720_v25 = vadd.f32 1.0, %v3476_v15  ;;  %v2148_v10 = vadd.f32 0.112945676, %v2147_v37  ;;  %v1107_v27 = vmul.f32 %v1106_v36, %v5274_v14 }
 0x220   : > { %v5735_v32 = vmul.f32 0.70710677, %v5692_v60  ;;  %v2766_v34 = vmul.f32 %v2718_v11, %v5146_v49  ;;  %v5738_v50 = vadd.f32 1.0, %v2031_v9  ;;  %v1225_v39 = vmul.f32 %v1224_v22, %v5345_v3 }
 0x221   : > { %v2723_v62 = vadd.f32 1.0, %v3479_v61  ;;  %v2149_v18 = vmul.f32 %v2148_v10, %v5322_v1  ;;  %v1108_v47 = vadd.f32 0.112945676, %v1107_v27  ;;  %v2228_v35 = vadd.f32 0.112945676, %v2227_v52 }
 0x222   : > { %v1460_v15 = vmul.f32 %v5669_v56, %v5507_v42  ;;  %v2500_v38 = vmul.f32 %v5679_v4, %v5536_v19  ;;  %v2799_v45 = vpack.c.bf16 %v2766_v34, %v2763_v43  ;;  %3848 = vrcp.f32 %v5738_v50 }
 0x223   : > { %v1573_v49 = vadd.f32 0.00028619796, %v5697_v53  ;;  %v2613_v8 = vadd.f32 0.00028619796, %v2612_v7  ;;  %v2768_v46 = vmul.f32 %v2720_v25, %v6662_v63  ;;  %v2771_v30 = vmul.f32 %v2723_v62, %v6663_v26 }
 0x224   : > { %3083 = vmatmul.bf16.gmra.mxu0 %v2799_v45  ;;  %v5751_v21 = vadd.f32 %v654_v48, %v4841_v28  ;;  %v2150_v37 = vadd.f32 0.4994258, %v2149_v18  ;;  %v1109_v56 = vmul.f32 %v1108_v47, %v5274_v14  ;;  %v1226_v36 = vadd.f32 0.014752088, %v1225_v39 }
 0x225   : > { %v5755_v4 = vmul.f32 0.5, %v5479_v57  ;;  %v1690_v52 = vmul.f32 %v5735_v32, %v5735_v32  ;;  %v2801_v53 = vpack.c.bf16 %v2771_v30, %v2768_v46  ;;  %v2229_v7 = vmul.f32 %v2228_v35, %v6650_v16  ;;  %v6665_v46 = vld [vmem:[#allocation26_spill] sm:$0xff] }
 0x226   : > { %v1341_v11 = vadd.f32 1.1283791, %v5628_v41  ;;  %v2151_v12 = vmul.f32 %v2150_v37, %v5322_v1  ;;  %v1110_v43 = vadd.f32 0.4994258, %v1109_v56  ;;  %v1227_v9 = vmul.f32 %v1226_v36, %v5345_v3  ;;  %v6666_v56 = vld [vmem:[#allocation50_spill] sm:$0xff] }
 0x227   : > { %v2381_v22 = vadd.f32 1.1283791, %v5635_v5  ;;  %v1461_v61 = vadd.f32 1.1283791, %v1460_v15  ;;  %v2501_v25 = vadd.f32 1.1283791, %v2500_v38  ;;  %v1574_v57 = vmul.f32 %v1573_v49, %v5681_v23  ;;  %3039 = vmatmul.bf16.gmra.mxu3 %v2801_v53  ;;  %v656_v53 = vpop.f32.mrf.mxu2 }
 0x228   : > { %v3849_v10 = vpop.eup %3848  ;;  %v2614_v27 = vmul.f32 %v2613_v8, %v5689_v0  ;;  %v5767_v34 = vmul.f32 0.70710677, %v5751_v21  ;;  %v5769_v39 = vadd.f32 1.0, %v2151_v12  ;;  %v1111_v1 = vmul.f32 %v1110_v43, %v5274_v14  ;;  %v6664_v38 = vld [vmem:[#allocation23_spill] sm:$0xff] }
 0x229   : > { %v5772_v41 = vmin.f32 %v1690_v52, 16.0  ;;  %v2034_v48 = vmul.f32 %v3849_v10, %v5738_v50  ;;  %v1228_v5 = vadd.f32 0.112945676, %v1227_v9  ;;  %v2230_v62 = vadd.f32 0.4994258, %v2229_v7  ;;  %v6670_v43 = vld [vmem:[#allocation55_spill] sm:$0xff] }
 0x22a   : > { %vm2038_vm0 = vweird.f32 %v5738_v50  ;;  %v2042_v18 = vand.u32 2147483647, %v5738_v50  ;;  %v2044_v47 = vand.u32 2147483648, %v5738_v50  ;;  %3850 = vrcp.f32 %v5769_v39 }
 0x22b   : > { %v2035_v35 = vsub.f32 1.0, %v2034_v48  ;;  %vm2039_vm1 = vweird.f32 %v3849_v10  ;;  %v5779_v15 = vadd.f32 1.0, %v1111_v1  ;;  %v1229_v14 = vmul.f32 %v1228_v5, %v5345_v3 }
 0x22c   : > { %v5783_v45 = vmul.f32 %v1341_v11, %v6664_v38  ;;  %v1575_v49 = vadd.f32 0.0036580483, %v1574_v57  ;;  %v2615_v8 = vadd.f32 0.0036580483, %v2614_v27  ;;  %v1810_v63 = vmul.f32 %v5767_v34, %v5767_v34  ;;  %vm5800_vm2 = vmor %vm2038_vm0, %vm2039_vm1 }
 0x22d   : > { %v5788_v26 = vmul.f32 %v2381_v22, %v6665_v46  ;;  %v2036_v30 = vmul.f32 %v3849_v10, %v2035_v35  ;;  %3852 = vrcp.f32 %v5779_v15  ;;  %v2231_v37 = vmul.f32 %v2230_v62, %v6650_v16 }
 0x22e   : > { %v5793_v36 = vmul.f32 %v1461_v61, %v6666_v56  ;;  %v5796_v52 = vmul.f32 0.5, %v5610_v44  ;;  %v2045_v11 = vor.u32 1.1754944e-38, %v2044_v47  ;;  %v1230_v12 = vadd.f32 0.4994258, %v1229_v14 }
 0x22f   : > { %v5805_v9 = vmul.f32 %v2501_v25, %v6670_v43  ;;  %v1692_v16 = vmul.f32 2.1237322e-06, %v5772_v41  ;;  %v2037_v22 = vadd.f32 %v3849_v10, %v2036_v30  ;;  %vm2043_vm3 = vcmp.eq.f32.partialorder %v2042_v18, 8.507059e+37 }
 0x230   : > { %6667 = vst [vmem:[#allocation35_spill] sm:$0xff] %v5796_v52  ;;  %v3851_v61 = vpop.eup %3850  ;;  %v1576_v44 = vmul.f32 %v1575_v49, %v5681_v23  ;;  %v2616_v57 = vmul.f32 %v2615_v8, %v5689_v0  ;;  %v5810_v27 = vmin.f32 %v1810_v63, 16.0  ;;  %v1231_v50 = vmul.f32 %v1230_v12, %v5345_v3 }
 0x231   : > { %v5814_v1 = vadd.f32 %v656_v53, %v4841_v28  ;;  %v2041_v25 = vsel %vm5800_vm2, %v3849_v10, %v2037_v22  ;;  %v2154_v48 = vmul.f32 %v3851_v61, %v5769_v39  ;;  %v5819_v5 = vadd.f32 1.0, %v2231_v37 }
 0x232   : > { %v2046_v62 = vsel %vm2043_vm3, %v2045_v11, %v2041_v25  ;;  %vm2158_vm4 = vweird.f32 %v5769_v39  ;;  %v2164_v18 = vand.u32 2147483648, %v5769_v39  ;;  %v5823_v47 = vadd.f32 1.0, %v1231_v50  ;;  %v6674_v11 = vld [vmem:[#allocation31_spill] sm:$0xff] }
 0x233   : > { %v3853_v35 = vpop.eup %3852  ;;  %v2047_v3 = vmul.f32 %v2046_v62, %v5575_v58  ;;  %v2155_v14 = vsub.f32 1.0, %v2154_v48  ;;  %vm2159_vm5 = vweird.f32 %v3851_v61  ;;  %v2162_v38 = vand.u32 2147483647, %v5769_v39 }
 0x234   : > { %v1693_v49 = vadd.f32 0.00028619796, %v1692_v16  ;;  %v1812_v10 = vmul.f32 2.1237322e-06, %v5810_v27  ;;  %v1114_v8 = vmul.f32 %v3853_v35, %v5779_v15  ;;  %3854 = vrcp.f32 %v5823_v47  ;;  %vm5835_vm6 = vmor %vm2158_vm4, %vm2159_vm5 }
 0x235   : > { %v1577_v63 = vadd.f32 0.05243302, %v1576_v44  ;;  %v2617_v46 = vadd.f32 0.05243302, %v2616_v57  ;;  %v5831_v30 = vmul.f32 0.70710677, %v5814_v1  ;;  %v2156_v37 = vmul.f32 %v3851_v61, %v2155_v14 }
 0x236   : > { %v3477_v56 = vclamps-f32 %v2047_v3, 1.0  ;;  %v2165_v53 = vor.u32 1.1754944e-38, %v2164_v18  ;;  %v1115_v7 = vsub.f32 1.0, %v1114_v8  ;;  %v2343_v12 = vmul.f32 3.8918573e-05, %v6674_v11 }
 0x237   : > { %6671 = vst [vmem:[#allocation40_spill] sm:$0xff] %v5831_v30  ;;  %v2157_v43 = vadd.f32 %v3851_v61, %v2156_v37  ;;  %vm2163_vm7 = vcmp.eq.f32.partialorder %v2162_v38, 8.507059e+37  ;;  %v1124_v16 = vand.u32 2147483648, %v5779_v15  ;;  %3856 = vrcp.f32 %v5819_v5 }
 0x238   : > { %v1813_v22 = vadd.f32 0.00028619796, %v1812_v10  ;;  %v1116_v44 = vmul.f32 %v3853_v35, %v1115_v7  ;;  %vm1119_vm8 = vweird.f32 %v3853_v35  ;;  %v1122_v57 = vand.u32 2147483647, %v5779_v15  ;;  %v6675_v7 = vld [vmem:[#allocation21_spill] sm:$0xff] }
 0x239   : > { %v1578_v39 = vmul.f32 %v1577_v63, %v5681_v23  ;;  %v1694_v50 = vmul.f32 %v1693_v49, %v5772_v41  ;;  %v2161_v25 = vsel %vm5835_vm6, %v3851_v61, %v2157_v43  ;;  %vm1118_vm9 = vweird.f32 %v5779_v15 }
 0x23a   : > { %v3855_v48 = vpop.eup %3854  ;;  %v2166_v62 = vsel %vm2163_vm7, %v2165_v53, %v2161_v25  ;;  %v2721_v18 = vadd.f32 1.0, %v3477_v56  ;;  %v1117_v3 = vadd.f32 %v3853_v35, %v1116_v44  ;;  %v2344_v14 = vadd.f32 0.001143296, %v2343_v12  ;;  %vm1120_vm10 = vmor %vm1118_vm9, %vm1119_vm8 }
 0x23b   : > { %v2618_v38 = vmul.f32 %v2617_v46, %v5689_v0  ;;  %v2167_v10 = vmul.f32 %v2166_v62, %v5602_v20  ;;  %v1125_v8 = vor.u32 1.1754944e-38, %v1124_v16  ;;  %v1234_v63 = vmul.f32 %v3855_v48, %v5823_v47 }
 0x23c   : > { %v1814_v49 = vmul.f32 %v1813_v22, %v5810_v27  ;;  %v1930_v61 = vmul.f32 %v5831_v30, %v5831_v30  ;;  %v1121_v37 = vsel %vm1120_vm10, %v3853_v35, %v1117_v3  ;;  %vm1123_vm11 = vcmp.eq.f32.partialorder %v1122_v57, 8.507059e+37  ;;  %v6676_v35 = vld [vmem:[#allocation37_spill] sm:$0xff] }
 0x23d   : > { %v5854_v15 = vpop.eup %3856  ;;  %v3480_v56 = vclamps-f32 %v2167_v10, 1.0  ;;  %v1126_v58 = vsel %vm1123_vm11, %v1125_v8, %v1121_v37  ;;  %v1235_v53 = vsub.f32 1.0, %v1234_v63  ;;  %v1242_v46 = vand.u32 2147483647, %v5823_v47 }
 0x23e   : > { %v2769_v20 = vmul.f32 %v2721_v18, %v6675_v7  ;;  %v1127_v12 = vmul.f32 %v1126_v58, %v5598_v40  ;;  %v1244_v43 = vand.u32 2147483648, %v5823_v47  ;;  %v2345_v16 = vmul.f32 %v2344_v14, %v6674_v11  ;;  %v6677_v18 = vld [vmem:[#allocation36_spill] sm:$0xff] }
 0x23f   : > { %v2724_v22 = vadd.f32 1.0, %v3480_v56  ;;  %v1236_v44 = vmul.f32 %v3855_v48, %v1235_v53  ;;  %vm1239_vm12 = vweird.f32 %v3855_v48  ;;  %v2463_v57 = vmul.f32 3.8918573e-05, %v6676_v35 }
 0x240   : > { %v1695_v25 = vadd.f32 0.0036580483, %v1694_v50  ;;  %v5862_v62 = vmin.f32 %v1930_v61, 16.0  ;;  %v2234_v3 = vmul.f32 %v5854_v15, %v5819_v5  ;;  %v2346_v10 = vadd.f32 0.014752088, %v2345_v16 }
 0x241   : > { %v1815_v8 = vadd.f32 0.0036580483, %v1814_v49  ;;  %v2772_v63 = vmul.f32 %v2724_v22, %v6677_v18  ;;  %v1237_v40 = vadd.f32 %v3855_v48, %v1236_v44  ;;  %vm1238_vm13 = vweird.f32 %v5823_v47 }
 0x242   : > { %v3454_v37 = vclamps-f32 %v1127_v12, 1.0  ;;  %vm1240_vm14 = vmor %vm1238_vm13, %vm1239_vm12  ;;  %v1245_v14 = vor.u32 1.1754944e-38, %v1244_v43  ;;  %v2347_v56 = vmul.f32 %v2346_v10, %v6674_v11  ;;  %v2464_v58 = vadd.f32 0.001143296, %v2463_v57  ;;  %v6678_v12 = vld [vmem:[#allocation46_spill] sm:$0xff] }
 0x243   : > { %v1579_v53 = vadd.f32 0.18741608, %v1578_v39  ;;  %v2802_v50 = vpack.c.bf16 %v2772_v63, %v2769_v20  ;;  %v1241_v61 = vsel %vm1240_vm14, %v3855_v48, %v1237_v40  ;;  %vm1243_vm15 = vcmp.eq.f32.partialorder %v1242_v46, 8.507059e+37 }
 0x244   : > { %v1696_v7 = vmul.f32 %v1695_v25, %v5772_v41  ;;  %v1246_v52 = vsel %vm1243_vm15, %v1245_v14, %v1241_v61  ;;  %v2235_v16 = vsub.f32 1.0, %v2234_v3  ;;  %v2348_v49 = vadd.f32 0.112945676, %v2347_v56  ;;  %v659_v14 = vpop.f32.mrf.mxu2  ;;  %v6679_v56 = vld [vmem:[#allocation24_spill] sm:$0xff] }
 0x245   : > { %v2619_v30 = vadd.f32 0.18741608, %v2618_v38  ;;  %3088 = vmatmul.bf16.gmra.mxu0 %v2802_v50  ;;  %v1247_v22 = vmul.f32 %v1246_v52, %v5606_v6  ;;  %v2465_v47 = vmul.f32 %v2464_v58, %v6676_v35  ;;  %v2583_v43 = vmul.f32 3.8918573e-05, %v6678_v12 }
 0x246   : > { %v1816_v44 = vmul.f32 %v1815_v8, %v5810_v27  ;;  %v1932_v39 = vmul.f32 2.1237322e-06, %v5862_v62  ;;  %v2698_v20 = vadd.f32 1.0, %v3454_v37  ;;  %v2349_v48 = vmul.f32 %v2348_v49, %v6674_v11 }
 0x247   : > { %v5877_v46 = vmul.f32 0.5, %v5623_v2  ;;  %v3457_v57 = vclamps-f32 %v1247_v22, 1.0  ;;  %v2466_v25 = vadd.f32 0.014752088, %v2465_v47  ;;  %v2584_v38 = vadd.f32 0.001143296, %v2583_v43 }
 0x248   : > { %v5880_v3 = vmul.f32 %v1579_v53, %v5681_v23  ;;  %v1697_v6 = vadd.f32 0.05243302, %v1696_v7  ;;  %v2236_v52 = vmul.f32 %v5854_v15, %v2235_v16  ;;  %v2350_v10 = vadd.f32 0.4994258, %v2349_v48  ;;  %v6680_v53 = vld [vmem:[#allocation34_spill] sm:$0xff] }
 0x249   : > { %v2701_v18 = vadd.f32 1.0, %v3457_v57  ;;  %v2263_v8 = vmul.f32 3.8918573e-05, %v5417_v33  ;;  %v2467_v63 = vmul.f32 %v2466_v25, %v6676_v35  ;;  %v2585_v40 = vmul.f32 %v2584_v38, %v6678_v12 }
 0x24a   : > { %v1817_v37 = vadd.f32 0.05243302, %v1816_v44  ;;  %v1933_v2 = vadd.f32 0.00028619796, %v1932_v39  ;;  %v2746_v58 = vmul.f32 %v2698_v20, %v6679_v56  ;;  %v2351_v50 = vmul.f32 %v2350_v10, %v6674_v11 }
 0x24b   : > { %v2749_v61 = vmul.f32 %v2701_v18, %v6680_v53  ;;  %v2264_v7 = vadd.f32 0.001143296, %v2263_v8  ;;  %v2468_v49 = vadd.f32 0.112945676, %v2467_v63  ;;  %v2586_v16 = vadd.f32 0.014752088, %v2585_v40 }
 0x24c   : > { %v2237_v22 = vadd.f32 %v5854_v15, %v2236_v52  ;;  %vm2239_vm0 = vweird.f32 %v5854_v15  ;;  %v2244_v47 = vand.u32 2147483648, %v5819_v5  ;;  %v5892_v43 = vadd.f32 1.0, %v2351_v50  ;;  %v6684_v52 = vld [vmem:[#allocation48_spill] sm:$0xff] }
 0x24d   : > { %v2791_v44 = vpack.c.bf16 %v2749_v61, %v2746_v58  ;;  %v2265_v39 = vmul.f32 %v2264_v7, %v5417_v33  ;;  %v2469_v20 = vmul.f32 %v2468_v49, %v6676_v35  ;;  %v2587_v11 = vmul.f32 %v2586_v16, %v6678_v12 }
 0x24e   : > { %v5898_v48 = vadd.f32 %v659_v14, %v4841_v28  ;;  %vm2238_vm1 = vweird.f32 %v5819_v5  ;;  %v2242_v57 = vand.u32 2147483647, %v5819_v5  ;;  %3858 = vrcp.f32 %v5892_v43 }
 0x24f   : > { %v5904_v25 = vmul.f32 %v2619_v30, %v5689_v0  ;;  %v1698_v38 = vmul.f32 %v1697_v6, %v5772_v41  ;;  %3117 = vmatmul.bf16.gmra.mxu1 %v2791_v44  ;;  %vm5907_vm2 = vmor %vm2238_vm1, %vm2239_vm0  ;;  %v2266_v10 = vadd.f32 0.014752088, %v2265_v39  ;;  %v2470_v18 = vadd.f32 0.4994258, %v2469_v20 }
 0x250   : > { %v1934_v8 = vmul.f32 %v1933_v2, %v5862_v62  ;;  %v2241_v5 = vsel %vm5907_vm2, %v5854_v15, %v2237_v22  ;;  %v2383_v63 = vmul.f32 3.8918573e-05, %v5475_v29  ;;  %v2588_v40 = vadd.f32 0.112945676, %v2587_v11  ;;  %v661_v22 = vpop.f32.mrf.mxu2 }
 0x251   : > { %v1818_v30 = vmul.f32 %v1817_v37, %v5810_v27  ;;  %v2245_v14 = vor.u32 1.1754944e-38, %v2244_v47  ;;  %v2267_v6 = vmul.f32 %v2266_v10, %v5417_v33  ;;  %v2471_v56 = vmul.f32 %v2470_v18, %v6676_v35 }
 0x252   : > { %v5920_v58 = vmul.f32 0.70710677, %v5898_v48  ;;  %vm2243_vm3 = vcmp.eq.f32.partialorder %v2242_v57, 8.507059e+37  ;;  %v2384_v50 = vadd.f32 0.001143296, %v2383_v63  ;;  %v2589_v2 = vmul.f32 %v2588_v40, %v6678_v12 }
 0x253   : > { %v2246_v53 = vsel %vm2243_vm3, %v2245_v14, %v2241_v5  ;;  %v2268_v61 = vadd.f32 0.112945676, %v2267_v6  ;;  %v1343_v15 = vmul.f32 3.8918573e-05, %v5452_v31  ;;  %v5924_v7 = vadd.f32 1.0, %v2471_v56 }
 0x254   : > { %6683 = vst [vmem:[#allocation15_spill] sm:$0xff] %v5920_v58  ;;  %v3859_v49 = vpop.eup %3858  ;;  %v1699_v37 = vadd.f32 0.18741608, %v1698_v38  ;;  %v1935_v16 = vadd.f32 0.0036580483, %v1934_v8  ;;  %v2385_v47 = vmul.f32 %v2384_v50, %v5475_v29  ;;  %v2050_v57 = vmul.f32 %v5920_v58, %v5920_v58 }
 0x255   : > { %v2590_v35 = vadd.f32 0.4994258, %v2589_v2  ;;  %v1819_v44 = vadd.f32 0.18741608, %v1818_v30  ;;  %v2354_v39 = vmul.f32 %v3859_v49, %v5892_v43  ;;  %v2269_v20 = vmul.f32 %v2268_v61, %v5417_v33 }
 0x256   : > { %v1344_v11 = vadd.f32 0.001143296, %v1343_v15  ;;  %v2247_v10 = vmul.f32 %v2246_v53, %v6684_v52  ;;  %v2386_v18 = vadd.f32 0.014752088, %v2385_v47  ;;  %3860 = vrcp.f32 %v5924_v7 }
 0x257   : > { %v5934_v38 = vadd.f32 %v661_v22, %v4841_v28  ;;  %v2355_v8 = vsub.f32 1.0, %v2354_v39  ;;  %v2270_v5 = vadd.f32 0.4994258, %v2269_v20  ;;  %v2362_v40 = vand.u32 2147483647, %v5892_v43 }
 0x258   : > { %v1345_v63 = vmul.f32 %v1344_v11, %v5452_v31  ;;  %v2364_v30 = vand.u32 2147483648, %v5892_v43  ;;  %v2387_v14 = vmul.f32 %v2386_v18, %v5475_v29  ;;  %v2591_v6 = vmul.f32 %v2590_v35, %v6678_v12 }
 0x259   : > { %v2356_v56 = vmul.f32 %v3859_v49, %v2355_v8  ;;  %vm2359_vm4 = vweird.f32 %v3859_v49  ;;  %v2271_v50 = vmul.f32 %v2270_v5, %v5417_v33  ;;  %v3482_v53 = vclamps-f32 %v2247_v10, 1.0 }
 0x25a   : > { %v1346_v2 = vadd.f32 0.014752088, %v1345_v63  ;;  %vm2358_vm5 = vweird.f32 %v5892_v43  ;;  %v2388_v61 = vadd.f32 0.112945676, %v2387_v14  ;;  %v5943_v15 = vadd.f32 1.0, %v2591_v6  ;;  %v6686_v63 = vld [vmem:[#allocation52_spill] sm:$0xff] }
 0x25b   : > { %v2357_v22 = vadd.f32 %v3859_v49, %v2356_v56  ;;  %v5945_v47 = vadd.f32 1.0, %v2271_v50  ;;  %v1463_v20 = vmul.f32 3.8918573e-05, %v5507_v42  ;;  %v1936_v12 = vmul.f32 %v1935_v16, %v5862_v62  ;;  %vm2360_vm6 = vmor %vm2358_vm5, %vm2359_vm4 }
 0x25c   : > { %v1347_v39 = vmul.f32 %v1346_v2, %v5452_v31  ;;  %v5949_v11 = vpop.eup %3860  ;;  %v2365_v33 = vor.u32 1.1754944e-38, %v2364_v30  ;;  %v2389_v35 = vmul.f32 %v2388_v61, %v5475_v29  ;;  %3862 = vrcp.f32 %v5943_v15 }
 0x25d   : > { %v5954_v43 = vmin.f32 %v2050_v57, 16.0  ;;  %v2361_v52 = vsel %vm2360_vm6, %v3859_v49, %v2357_v22  ;;  %vm2363_vm7 = vcmp.eq.f32.partialorder %v2362_v40, 8.507059e+37  ;;  %3864 = vrcp.f32 %v5945_v47 }
 0x25e   : > { %v5958_v10 = vmul.f32 0.70710677, %v5934_v38  ;;  %v2366_v18 = vsel %vm2363_vm7, %v2365_v33, %v2361_v52  ;;  %v2390_v8 = vadd.f32 0.4994258, %v2389_v35  ;;  %v1348_v5 = vadd.f32 0.112945676, %v1347_v39 }
 0x25f   : > { %v2367_v16 = vmul.f32 %v2366_v18, %v6686_v63  ;;  %v2726_v14 = vadd.f32 1.0, %v3482_v53  ;;  %v1464_v30 = vadd.f32 0.001143296, %v1463_v20  ;;  %v2474_v6 = vmul.f32 %v5949_v11, %v5924_v7  ;;  %v6688_v63 = vld [vmem:[#allocation41_spill] sm:$0xff] }
 0x260   : > { %6685 = vst [vmem:[#allocation32_spill] sm:$0xff] %v5958_v10  ;;  %v5964_v57 = vadd.f32 1.1283791, %v5880_v3  ;;  %v5967_v49 = vmul.f32 %v1699_v37, %v5772_v41  ;;  %v2391_v40 = vmul.f32 %v2390_v8, %v5475_v29  ;;  %v1349_v56 = vmul.f32 %v1348_v5, %v5452_v31 }
 0x261   : > { %v5971_v50 = vadd.f32 0.05243302, %v1936_v12  ;;  %v3485_v2 = vclamps-f32 %v2367_v16, 1.0  ;;  %v1465_v61 = vmul.f32 %v1464_v30, %v5507_v42  ;;  %v2475_v53 = vsub.f32 1.0, %v2474_v6  ;;  %v6687_v12 = vld [vmem:[#allocation39_spill] sm:$0xff] }
 0x262   : > { %v5974_v22 = vpop.eup %3862  ;;  %v5977_v39 = vmul.f32 %v1819_v44, %v5810_v27  ;;  %v2052_v3 = vmul.f32 2.1237322e-06, %v5954_v43  ;;  %v2392_v20 = vadd.f32 1.0, %v2391_v40  ;;  %v1350_v37 = vadd.f32 0.4994258, %v1349_v56  ;;  %v664_v44 = vpop.f32.mrf.mxu2 }
 0x263   : > { %v3865_v33 = vpop.eup %3864  ;;  %v2170_v29 = vmul.f32 %v5958_v10, %v5958_v10  ;;  %v2729_v35 = vadd.f32 1.0, %v3485_v2  ;;  %v2774_v52 = vmul.f32 %v2726_v14, %v6687_v12  ;;  %v1466_v18 = vadd.f32 0.014752088, %v1465_v61 }
 0x264   : > { %v2274_v8 = vmul.f32 %v3865_v33, %v5945_v47  ;;  %vm2278_vm8 = vweird.f32 %v5945_v47  ;;  %v2282_v5 = vand.u32 2147483647, %v5945_v47  ;;  %3866 = vrcp.f32 %v2392_v20 }
 0x265   : > { %v2777_v16 = vmul.f32 %v2729_v35, %v6688_v63  ;;  %v2284_v30 = vand.u32 2147483648, %v5945_v47  ;;  %v2476_v6 = vmul.f32 %v5949_v11, %v2475_v53  ;;  %v2594_v40 = vmul.f32 %v5974_v22, %v5943_v15 }
 0x266   : > { %v2275_v56 = vsub.f32 1.0, %v2274_v8  ;;  %vm2279_vm9 = vweird.f32 %v3865_v33  ;;  %v1351_v14 = vmul.f32 %v1350_v37, %v5452_v31  ;;  %v1467_v2 = vmul.f32 %v1466_v18, %v5507_v42 }
 0x267   : > { %v5993_v61 = vadd.f32 0.00028619796, %v2052_v3  ;;  %v5995_v12 = vmin.f32 %v2170_v29, 16.0  ;;  %v2804_v10 = vpack.c.bf16 %v2777_v16, %v2774_v52  ;;  %v5998_v35 = vadd.f32 %v664_v44, %v4841_v28  ;;  %vm6005_vm11 = vmor %vm2278_vm8, %vm2279_vm9 }
 0x268   : > { %v2276_v63 = vmul.f32 %v3865_v33, %v2275_v56  ;;  %v6000_v58 = vadd.f32 1.0, %v1351_v14  ;;  %v1468_v53 = vadd.f32 0.112945676, %v1467_v2  ;;  %vm2478_vm10 = vweird.f32 %v5924_v7 }
 0x269   : > { %3044 = vmatmul.bf16.gmra.mxu3 %v2804_v10  ;;  %v2285_v3 = vor.u32 1.1754944e-38, %v2284_v30  ;;  %v2477_v37 = vadd.f32 %v5949_v11, %v2476_v6  ;;  %vm2479_vm12 = vweird.f32 %v5949_v11  ;;  %v2484_v29 = vand.u32 2147483648, %v5924_v7 }
 0x26a   : > { %v3867_v52 = vpop.eup %3866  ;;  %v2277_v18 = vadd.f32 %v3865_v33, %v2276_v63  ;;  %vm2283_vm13 = vcmp.eq.f32.partialorder %v2282_v5, 8.507059e+37  ;;  %3868 = vrcp.f32 %v6000_v58  ;;  %v2595_v8 = vsub.f32 1.0, %v2594_v40  ;;  %vm6024_vm15 = vmor %vm2478_vm10, %vm2479_vm12 }
 0x26b   : > { %v2394_v10 = vmul.f32 %v3867_v52, %v2392_v20  ;;  %v2402_v44 = vand.u32 2147483647, %v2392_v20  ;;  %v6014_v47 = vmul.f32 0.70710677, %v5998_v35  ;;  %v2482_v16 = vand.u32 2147483647, %v5924_v7 }
 0x26c   : > { %v2281_v30 = vsel %vm6005_vm11, %v3865_v33, %v2277_v18  ;;  %vm2398_vm14 = vweird.f32 %v2392_v20  ;;  %v2404_v6 = vand.u32 2147483648, %v2392_v20  ;;  %v1469_v56 = vmul.f32 %v1468_v53, %v5507_v42 }
 0x26d   : > { %v2286_v40 = vsel %vm2283_vm13, %v2285_v3, %v2281_v30  ;;  %v2395_v14 = vsub.f32 1.0, %v2394_v10  ;;  %vm2399_vm0 = vweird.f32 %v3867_v52  ;;  %v2481_v2 = vsel %vm6024_vm15, %v5949_v11, %v2477_v37 }
 0x26e   : > { %v2287_v33 = vmul.f32 %v2286_v40, %v5617_v59  ;;  %v1470_v63 = vadd.f32 0.4994258, %v1469_v56  ;;  %v2485_v31 = vor.u32 1.1754944e-38, %v2484_v29  ;;  %v2596_v53 = vmul.f32 %v5974_v22, %v2595_v8  ;;  %vm6040_vm3 = vmor %vm2398_vm14, %vm2399_vm0 }
 0x26f   : > { %v2396_v18 = vmul.f32 %v3867_v52, %v2395_v14  ;;  %vm6033_vm1 = vcmp.eq.f32.partialorder %v2402_v44, 8.507059e+37  ;;  %v2290_v3 = vmul.f32 %v6014_v47, %v6014_v47  ;;  %vm2483_vm2 = vcmp.eq.f32.partialorder %v2482_v16, 8.507059e+37 }
 0x270   : > { %v3869_v10 = vpop.eup %3868  ;;  %v2405_v59 = vor.u32 1.1754944e-38, %v2404_v6  ;;  %v1471_v11 = vmul.f32 %v1470_v63, %v5507_v42  ;;  %v2486_v37 = vsel %vm2483_vm2, %v2485_v31, %v2481_v2  ;;  %vm2599_vm4 = vweird.f32 %v5974_v22  ;;  %v6697_v63 = vld [vmem:[#allocation54_spill] sm:$0xff] }
 0x271   : > { %v3483_v29 = vclamps-f32 %v2287_v33, 1.0  ;;  %v2397_v8 = vadd.f32 %v3867_v52, %v2396_v18  ;;  %v1354_v44 = vmul.f32 %v3869_v10, %v6000_v58  ;;  %v2597_v56 = vadd.f32 %v5974_v22, %v2596_v53  ;;  %v666_v33 = vpop.f32.mrf.mxu2 }
 0x272   : > { %v2172_v16 = vmul.f32 2.1237322e-06, %v5995_v12  ;;  %v6049_v5 = vadd.f32 1.0, %v1471_v11  ;;  %vm2598_vm5 = vweird.f32 %v5943_v15  ;;  %v2604_v20 = vand.u32 2147483648, %v5943_v15 }
 0x273   : > { %v2401_v42 = vsel %vm6040_vm3, %v3867_v52, %v2397_v8  ;;  %v6055_v6 = vmin.f32 %v2290_v3, 16.0  ;;  %v1355_v40 = vsub.f32 1.0, %v1354_v44  ;;  %v2602_v14 = vand.u32 2147483647, %v5943_v15  ;;  %vm6064_vm7 = vmor %vm2598_vm5, %vm2599_vm4 }
 0x274   : > { %v2406_v2 = vsel %vm6033_vm1, %v2405_v59, %v2401_v42  ;;  %vm1359_vm6 = vweird.f32 %v3869_v10  ;;  %3870 = vrcp.f32 %v6049_v5  ;;  %v2487_v31 = vmul.f32 %v2486_v37, %v6697_v63 }
 0x275   : > { %v2407_v52 = vmul.f32 %v2406_v2, %v5788_v26  ;;  %v2727_v18 = vadd.f32 1.0, %v3483_v29  ;;  %v1356_v3 = vmul.f32 %v3869_v10, %v1355_v40  ;;  %v2601_v15 = vsel %vm6064_vm7, %v5974_v22, %v2597_v56  ;;  %v6702_v40 = vld [vmem:[#allocation30_spill] sm:$0xff] }
 0x276   : > { %vm1358_vm8 = vweird.f32 %v6000_v58  ;;  %v1362_v7 = vand.u32 2147483647, %v6000_v58  ;;  %v1364_v30 = vand.u32 2147483648, %v6000_v58  ;;  %v2605_v59 = vor.u32 1.1754944e-38, %v2604_v20 }
 0x277   : > { %v3486_v11 = vclamps-f32 %v2407_v52, 1.0  ;;  %v1357_v37 = vadd.f32 %v3869_v10, %v1356_v3  ;;  %v6076_v8 = vadd.f32 %v666_v33, %v4841_v28  ;;  %vm2603_vm9 = vcmp.eq.f32.partialorder %v2602_v14, 8.507059e+37  ;;  %vm6082_vm10 = vmor %vm1358_vm8, %vm1359_vm6 }
 0x278   : > { %v2173_v26 = vadd.f32 0.00028619796, %v2172_v16  ;;  %v6079_v29 = vmul.f32 2.1237322e-06, %v6055_v6  ;;  %v3488_v44 = vclamps-f32 %v2487_v31, 1.0  ;;  %v2606_v56 = vsel %vm2603_vm9, %v2605_v59, %v2601_v15 }
 0x279   : > { %v2730_v42 = vadd.f32 1.0, %v3486_v11  ;;  %v2775_v58 = vmul.f32 %v2727_v18, %v5591_v24  ;;  %v1361_v20 = vsel %vm6082_vm10, %v3869_v10, %v1357_v37  ;;  %v2607_v2 = vmul.f32 %v2606_v56, %v6702_v40 }
 0x27a   : > { %v3871_v14 = vpop.eup %3870  ;;  %v1938_v16 = vmul.f32 %v5971_v50, %v5862_v62  ;;  %v1365_v33 = vor.u32 1.1754944e-38, %v1364_v30  ;;  %v2503_v63 = vmul.f32 3.8918573e-05, %v5536_v19  ;;  %v1583_v53 = vmul.f32 3.8918573e-05, %v5681_v23 }
 0x27b   : > { %v2778_v31 = vmul.f32 %v2730_v42, %v5620_v51  ;;  %vm1363_vm11 = vcmp.eq.f32.partialorder %v1362_v7, 8.507059e+37  ;;  %v1474_v52 = vmul.f32 %v3871_v14, %v6049_v5  ;;  %v6097_v24 = vmul.f32 0.70710677, %v6076_v8  ;;  %v6703_v42 = vld [vmem:[#allocation45_spill] sm:$0xff] }
 0x27c   : > { %v1366_v10 = vsel %vm1363_vm11, %v1365_v33, %v1361_v20  ;;  %v3491_v18 = vclamps-f32 %v2607_v2, 1.0  ;;  %v2732_v3 = vadd.f32 1.0, %v3488_v44  ;;  %v2504_v15 = vadd.f32 0.001143296, %v2503_v63  ;;  %v6704_v20 = vld [vmem:[#allocation51_spill] sm:$0xff] }
 0x27d   : > { %v2805_v59 = vpack.c.bf16 %v2778_v31, %v2775_v58  ;;  %v1475_v11 = vsub.f32 1.0, %v1474_v52  ;;  %vm1478_vm12 = vweird.f32 %v6049_v5  ;;  %v1482_v50 = vand.u32 2147483647, %v6049_v5 }
 0x27e   : > { %v1484_v30 = vand.u32 2147483648, %v6049_v5  ;;  %v2735_v37 = vadd.f32 1.0, %v3491_v18  ;;  %v2505_v51 = vmul.f32 %v2504_v15, %v5536_v19  ;;  %v1584_v7 = vadd.f32 0.001143296, %v1583_v53 }
 0x27f   : > { %3093 = vmatmul.bf16.gmra.mxu0 %v2805_v59  ;;  %v1367_v22 = vmul.f32 %v1366_v10, %v5783_v45  ;;  %v1476_v56 = vmul.f32 %v3871_v14, %v1475_v11  ;;  %vm1479_vm13 = vweird.f32 %v3871_v14  ;;  %v2623_v44 = vmul.f32 3.8918573e-05, %v5689_v0 }
 0x280   : > { %v2780_v58 = vmul.f32 %v2732_v3, %v6703_v42  ;;  %v2783_v40 = vmul.f32 %v2735_v37, %v6704_v20  ;;  %v2506_v2 = vadd.f32 0.014752088, %v2505_v51  ;;  %v1585_v33 = vmul.f32 %v1584_v7, %v5681_v23  ;;  %vm1480_vm15 = vmor %vm1478_vm12, %vm1479_vm13 }
 0x281   : > { %v1477_v63 = vadd.f32 %v3871_v14, %v1476_v56  ;;  %vm1483_vm14 = vcmp.eq.f32.partialorder %v1482_v50, 8.507059e+37  ;;  %v2624_v31 = vadd.f32 0.001143296, %v2623_v44  ;;  %v1703_v52 = vmul.f32 3.8918573e-05, %v5772_v41 }
 0x282   : > { %v1485_v45 = vor.u32 1.1754944e-38, %v1484_v30  ;;  %v2807_v53 = vpack.c.bf16 %v2783_v40, %v2780_v58  ;;  %v2507_v10 = vmul.f32 %v2506_v2, %v5536_v19  ;;  %v1586_v18 = vadd.f32 0.014752088, %v1585_v33 }
 0x283   : > { %v3460_v15 = vclamps-f32 %v1367_v22, 1.0  ;;  %v1481_v3 = vsel %vm1480_vm15, %v3871_v14, %v1477_v63  ;;  %v2625_v59 = vmul.f32 %v2624_v31, %v5689_v0  ;;  %v1704_v11 = vadd.f32 0.001143296, %v1703_v52 }
 0x284   : > { %v1486_v37 = vsel %vm1483_vm14, %v1485_v45, %v1481_v3  ;;  %v2410_v50 = vmul.f32 %v6097_v24, %v6097_v24  ;;  %3049 = vmatmul.bf16.gmra.mxu3 %v2807_v53  ;;  %v2508_v51 = vadd.f32 0.112945676, %v2507_v10  ;;  %v1587_v7 = vmul.f32 %v1586_v18, %v5681_v23 }
 0x285   : > { %v1939_v5 = vadd.f32 0.18741608, %v1938_v16  ;;  %v1487_v30 = vmul.f32 %v1486_v37, %v5793_v36  ;;  %v2626_v56 = vadd.f32 0.014752088, %v2625_v59  ;;  %v1705_v44 = vmul.f32 %v1704_v11, %v5772_v41 }
 0x286   : > { %v2054_v14 = vmul.f32 %v5993_v61, %v5954_v43  ;;  %v2174_v22 = vmul.f32 %v2173_v26, %v5995_v12  ;;  %v2509_v42 = vmul.f32 %v2508_v51, %v5536_v19  ;;  %v1588_v58 = vadd.f32 0.112945676, %v1587_v7 }
 0x287   : > { %v3463_v20 = vclamps-f32 %v1487_v30, 1.0  ;;  %v2704_v40 = vadd.f32 1.0, %v3460_v15  ;;  %v2627_v2 = vmul.f32 %v2626_v56, %v5689_v0  ;;  %v1706_v33 = vadd.f32 0.014752088, %v1705_v44 }
 0x288   : > { %v2293_v16 = vadd.f32 0.00028619796, %v6079_v29  ;;  %v6124_v63 = vmin.f32 %v2410_v50, 16.0  ;;  %v2510_v36 = vadd.f32 0.4994258, %v2509_v42  ;;  %v1589_v31 = vmul.f32 %v1588_v58, %v5681_v23 }
 0x289   : > { %v2707_v52 = vadd.f32 1.0, %v3463_v20  ;;  %v2628_v45 = vadd.f32 0.112945676, %v2627_v2  ;;  %v1707_v61 = vmul.f32 %v1706_v33, %v5772_v41  ;;  %v1823_v26 = vmul.f32 3.8918573e-05, %v5810_v27 }
 0x28a   : > { %v2055_v53 = vadd.f32 0.0036580483, %v2054_v14  ;;  %v2175_v10 = vadd.f32 0.0036580483, %v2174_v22  ;;  %v2511_v18 = vmul.f32 %v2510_v36, %v5536_v19  ;;  %v1590_v15 = vadd.f32 0.4994258, %v1589_v31 }
 0x28b   : > { %v2752_v3 = vmul.f32 %v2704_v40, %v5613_v54  ;;  %v2755_v29 = vmul.f32 %v2707_v52, %v5631_v55  ;;  %v2629_v59 = vmul.f32 %v2628_v45, %v5689_v0  ;;  %v1708_v11 = vadd.f32 0.112945676, %v1707_v61 }
 0x28c   : > { %v2294_v37 = vmul.f32 %v2293_v16, %v6055_v6  ;;  %v2412_v50 = vmul.f32 2.1237322e-06, %v6124_v63  ;;  %v2512_v51 = vadd.f32 1.0, %v2511_v18  ;;  %v1591_v7 = vmul.f32 %v1590_v15, %v5681_v23 }
 0x28d   : > { %v2794_v30 = vpack.c.bf16 %v2755_v29, %v2752_v3  ;;  %v2630_v56 = vadd.f32 0.4994258, %v2629_v59  ;;  %v1709_v44 = vmul.f32 %v1708_v11, %v5772_v41  ;;  %v1824_v19 = vadd.f32 0.001143296, %v1823_v26  ;;  %v669_v11 = vpop.f32.mrf.mxu2 }
 0x28e   : > { %v2621_v14 = vadd.f32 1.1283791, %v5904_v25  ;;  %v1701_v54 = vadd.f32 1.1283791, %v5967_v49  ;;  %v2056_v55 = vmul.f32 %v2055_v53, %v5954_v43  ;;  %3872 = vrcp.f32 %v2512_v51 }
 0x28f   : > { %v6141_v22 = vmul.f32 0.5, %v5692_v60  ;;  %v2176_v42 = vmul.f32 %v2175_v10, %v5995_v12  ;;  %3122 = vmatmul.bf16.gmra.mxu1 %v2794_v30  ;;  %v2631_v23 = vmul.f32 %v2630_v56, %v5689_v0  ;;  %v6145_v58 = vadd.f32 1.0, %v1591_v7 }
 0x290   : > { %v6149_v20 = vmul.f32 %v5964_v57, %v5639_v17  ;;  %v2295_v25 = vadd.f32 0.0036580483, %v2294_v37  ;;  %v2413_v40 = vadd.f32 0.00028619796, %v2412_v50  ;;  %v1710_v49 = vadd.f32 0.4994258, %v1709_v44 }
 0x291   : > { %v1821_v2 = vadd.f32 1.1283791, %v5977_v39  ;;  %v1940_v33 = vmul.f32 %v1939_v5, %v5862_v62  ;;  %v6153_v60 = vadd.f32 1.0, %v2631_v23  ;;  %v1825_v16 = vmul.f32 %v1824_v19, %v5810_v27 }
 0x292   : > { %v6157_v36 = vmul.f32 %v2621_v14, %v5646_v13  ;;  %v6160_v0 = vmul.f32 %v1701_v54, %v5735_v32  ;;  %v2057_v31 = vadd.f32 0.05243302, %v2056_v55  ;;  %3874 = vrcp.f32 %v6145_v58 }
 0x293   : > { %v6164_v17 = vmul.f32 0.5, %v5751_v21  ;;  %v6167_v57 = vmul.f32 0.5, %v5814_v1  ;;  %v2177_v39 = vadd.f32 0.05243302, %v2176_v42  ;;  %3876 = vrcp.f32 %v6153_v60 }
 0x294   : > { %v3873_v5 = vpop.eup %3872  ;;  %v2296_v52 = vmul.f32 %v2295_v25, %v6055_v6  ;;  %v2414_v13 = vmul.f32 %v2413_v40, %v6124_v63  ;;  %v2522_v45 = vand.u32 2147483647, %v2512_v51  ;;  %v1711_v32 = vmul.f32 %v1710_v49, %v5772_v41 }
 0x295   : > { %v6174_v61 = vmul.f32 %v1821_v2, %v5767_v34  ;;  %v6176_v26 = vadd.f32 1.1283791, %v1940_v33  ;;  %v2514_v21 = vmul.f32 %v3873_v5, %v2512_v51  ;;  %v1826_v53 = vadd.f32 0.014752088, %v1825_v16 }
 0x296   : > { %v6179_v1 = vmul.f32 0.5, %v5898_v48  ;;  %v6182_v10 = vmul.f32 %v2057_v31, %v5954_v43  ;;  %v2524_v18 = vand.u32 2147483648, %v2512_v51  ;;  %v6184_v15 = vadd.f32 1.0, %v1711_v32 }
 0x297   : > { %v6187_v3 = vmul.f32 %v2177_v39, %v5995_v12  ;;  %v2515_v41 = vsub.f32 1.0, %v2514_v21  ;;  %vm2518_vm0 = vweird.f32 %v2512_v51  ;;  %vm2519_vm1 = vweird.f32 %v3873_v5 }
 0x298   : > { %v3875_v34 = vpop.eup %3874  ;;  %v6189_v29 = vadd.f32 0.05243302, %v2296_v52  ;;  %v2415_v59 = vadd.f32 0.0036580483, %v2414_v13  ;;  %vm6191_vm2 = vcmp.eq.f32.partialorder %v2522_v45, 8.507059e+37  ;;  %3878 = vrcp.f32 %v6184_v15  ;;  %vm6199_vm3 = vmor %vm2518_vm0, %vm2519_vm1 }
 0x299   : > { %v3877_v48 = vpop.eup %3876  ;;  %v2516_v37 = vmul.f32 %v3873_v5, %v2515_v41  ;;  %v1594_v50 = vmul.f32 %v3875_v34, %v6145_v58  ;;  %v1827_v7 = vmul.f32 %v1826_v53, %v5810_v27  ;;  %v1943_v30 = vmul.f32 3.8918573e-05, %v5862_v62 }
 0x29a   : > { %v2525_v56 = vor.u32 1.1754944e-38, %v2524_v18  ;;  %v2634_v44 = vmul.f32 %v3877_v48, %v6153_v60  ;;  %v1602_v19 = vand.u32 2147483647, %v6145_v58  ;;  %v1604_v14 = vand.u32 2147483648, %v6145_v58 }
 0x29b   : > { %v2517_v54 = vadd.f32 %v3873_v5, %v2516_v37  ;;  %vm2638_vm4 = vweird.f32 %v6153_v60  ;;  %v2644_v55 = vand.u32 2147483648, %v6153_v60  ;;  %v1595_v42 = vsub.f32 1.0, %v1594_v50 }
 0x29c   : > { %v2635_v23 = vsub.f32 1.0, %v2634_v44  ;;  %vm2639_vm5 = vweird.f32 %v3877_v48  ;;  %v2642_v25 = vand.u32 2147483647, %v6153_v60  ;;  %vm1599_vm6 = vweird.f32 %v3875_v34 }
 0x29d   : > { %v2521_v40 = vsel %vm6199_vm3, %v3873_v5, %v2517_v54  ;;  %v1596_v49 = vmul.f32 %v3875_v34, %v1595_v42  ;;  %v1828_v2 = vadd.f32 0.112945676, %v1827_v7  ;;  %v1944_v33 = vadd.f32 0.001143296, %v1943_v30  ;;  %vm6221_vm9 = vmor %vm2638_vm4, %vm2639_vm5 }
 0x29e   : > { %v3879_v16 = vpop.eup %3878  ;;  %v2526_v31 = vsel %vm6191_vm2, %v2525_v56, %v2521_v40  ;;  %v2636_v39 = vmul.f32 %v3877_v48, %v2635_v23  ;;  %vm1598_vm7 = vweird.f32 %v6145_v58  ;;  %vm6214_vm8 = vcmp.eq.f32.partialorder %v1602_v19, 8.507059e+37 }
 0x29f   : > { %v2527_v13 = vmul.f32 %v2526_v31, %v5805_v9  ;;  %v2645_v45 = vor.u32 1.1754944e-38, %v2644_v55  ;;  %v1597_v32 = vadd.f32 %v3875_v34, %v1596_v49  ;;  %v1714_v21 = vmul.f32 %v3879_v16, %v6184_v15  ;;  %vm1600_vm11 = vmor %vm1598_vm7, %vm1599_vm6 }
 0x2a0   : > { %v2637_v53 = vadd.f32 %v3877_v48, %v2636_v39  ;;  %vm2643_vm10 = vcmp.eq.f32.partialorder %v2642_v25, 8.507059e+37  ;;  %v1605_v58 = vor.u32 1.1754944e-38, %v1604_v14  ;;  %v1829_v18 = vmul.f32 %v1828_v2, %v5810_v27 }
 0x2a1   : > { %v3489_v41 = vclamps-f32 %v2527_v13, 1.0  ;;  %v1601_v9 = vsel %vm1600_vm11, %v3875_v34, %v1597_v32  ;;  %v1715_v37 = vsub.f32 1.0, %v1714_v21  ;;  %v1945_v60 = vmul.f32 %v1944_v33, %v5862_v62 }
 0x2a2   : > { %v2641_v50 = vsel %vm6221_vm9, %v3877_v48, %v2637_v53  ;;  %v1606_v7 = vsel %vm6214_vm8, %v1605_v58, %v1601_v9  ;;  %v1722_v30 = vand.u32 2147483647, %v6184_v15  ;;  %v1724_v51 = vand.u32 2147483648, %v6184_v15 }
 0x2a3   : > { %v2646_v56 = vsel %vm2643_vm10, %v2645_v45, %v2641_v50  ;;  %v1607_v44 = vmul.f32 %v1606_v7, %v6149_v20  ;;  %v1716_v19 = vmul.f32 %v3879_v16, %v1715_v37  ;;  %vm1719_vm12 = vweird.f32 %v3879_v16  ;;  %v6714_v7 = vld [vmem:[#allocation35_spill] sm:$0xff] }
 0x2a4   : > { %v2647_v34 = vmul.f32 %v2646_v56, %v6157_v36  ;;  %v2733_v14 = vadd.f32 1.0, %v3489_v41  ;;  %v6238_v54 = vadd.f32 %v669_v11, %v4841_v28  ;;  %v1830_v55 = vadd.f32 0.4994258, %v1829_v18 }
 0x2a5   : > { %v2416_v48 = vmul.f32 %v2415_v59, %v6124_v63  ;;  %v1717_v42 = vadd.f32 %v3879_v16, %v1716_v19  ;;  %vm1718_vm13 = vweird.f32 %v6184_v15  ;;  %v1946_v23 = vadd.f32 0.014752088, %v1945_v60  ;;  %v671_v60 = vpop.f32.mrf.mxu2 }
 0x2a6   : > { %v3492_v25 = vclamps-f32 %v2647_v34, 1.0  ;;  %vm1720_vm14 = vmor %vm1718_vm13, %vm1719_vm12  ;;  %vm1723_vm15 = vcmp.eq.f32.partialorder %v1722_v30, 8.507059e+37  ;;  %v1725_v40 = vor.u32 1.1754944e-38, %v1724_v51  ;;  %v1831_v20 = vmul.f32 %v1830_v55, %v5810_v27 }
 0x2a7   : > { %v3466_v49 = vclamps-f32 %v1607_v44, 1.0  ;;  %v1721_v2 = vsel %vm1720_vm14, %v3879_v16, %v1717_v42  ;;  %v1947_v36 = vmul.f32 %v1946_v23, %v5862_v62  ;;  %v2063_v33 = vmul.f32 3.8918573e-05, %v5954_v43 }
 0x2a8   : > { %v2736_v31 = vadd.f32 1.0, %v3492_v25  ;;  %v2781_v39 = vmul.f32 %v2733_v14, %v5755_v4  ;;  %v6247_v59 = vmul.f32 0.70710677, %v6238_v54  ;;  %v1726_v15 = vsel %vm1723_vm15, %v1725_v40, %v1721_v2  ;;  %v6713_v4 = vld [vmem:[#allocation40_spill] sm:$0xff] }
 0x2a9   : > { %v2059_v52 = vadd.f32 0.18741608, %v6182_v10  ;;  %v1727_v13 = vmul.f32 %v1726_v15, %v6160_v0  ;;  %v6251_v5 = vadd.f32 1.0, %v1831_v20  ;;  %v1948_v27 = vadd.f32 0.112945676, %v1947_v36 }
 0x2aa   : > { %v2179_v16 = vadd.f32 0.18741608, %v6187_v3  ;;  %v2298_v45 = vmul.f32 %v6189_v29, %v6055_v6  ;;  %v2784_v32 = vmul.f32 %v2736_v31, %v5877_v46  ;;  %v2064_v21 = vadd.f32 0.001143296, %v2063_v33 }
 0x2ab   : > { %v6259_v53 = vmul.f32 %v6176_v26, %v6713_v4  ;;  %v3469_v58 = vclamps-f32 %v1727_v13, 1.0  ;;  %v2710_v18 = vadd.f32 1.0, %v3466_v49  ;;  %3880 = vrcp.f32 %v6251_v5 }
 0x2ac   : > { %v6263_v0 = vmul.f32 0.5, %v5934_v38  ;;  %v2417_v10 = vadd.f32 0.05243302, %v2416_v48  ;;  %v2808_v41 = vpack.c.bf16 %v2784_v32, %v2781_v39  ;;  %v2530_v3 = vmul.f32 %v6247_v59, %v6247_v59 }
 0x2ad   : > { %v2060_v29 = vmul.f32 %v2059_v52, %v5954_v43  ;;  %v2713_v46 = vadd.f32 1.0, %v3469_v58  ;;  %v1949_v11 = vmul.f32 %v1948_v27, %v5862_v62  ;;  %v2065_v26 = vmul.f32 %v2064_v21, %v5954_v43 }
 0x2ae   : > { %v2180_v9 = vmul.f32 %v2179_v16, %v5995_v12  ;;  %v2299_v37 = vadd.f32 0.18741608, %v2298_v45  ;;  %3098 = vmatmul.bf16.gmra.mxu0 %v2808_v41  ;;  %v2183_v38 = vmul.f32 3.8918573e-05, %v5995_v12  ;;  %v2303_v50 = vmul.f32 3.8918573e-05, %v6055_v6 }
 0x2af   : > { %v2758_v30 = vmul.f32 %v2710_v18, %v6714_v7  ;;  %v2761_v51 = vmul.f32 %v2713_v46, %v6141_v22  ;;  %v1950_v56 = vadd.f32 0.4994258, %v1949_v11  ;;  %v2066_v44 = vadd.f32 0.014752088, %v2065_v26  ;;  %v6715_v7 = vld [vmem:[#allocation15_spill] sm:$0xff] }
 0x2b0   : > { %v2418_v19 = vmul.f32 %v2417_v10, %v6124_v63  ;;  %v6276_v34 = vmin.f32 %v2530_v3, 16.0  ;;  %v2184_v14 = vadd.f32 0.001143296, %v2183_v38  ;;  %v2304_v55 = vadd.f32 0.001143296, %v2303_v50 }
 0x2b1   : > { %v3881_v48 = vpop.eup %3880  ;;  %v2797_v42 = vpack.c.bf16 %v2761_v51, %v2758_v30  ;;  %v6279_v23 = vadd.f32 %v671_v60, %v4841_v28  ;;  %v1951_v25 = vmul.f32 %v1950_v56, %v5862_v62  ;;  %v2067_v40 = vmul.f32 %v2066_v44, %v5954_v43 }
 0x2b2   : > { %v2061_v20 = vadd.f32 1.1283791, %v2060_v29  ;;  %v6283_v49 = vadd.f32 1.1283791, %v2180_v9  ;;  %v1834_v22 = vmul.f32 %v3881_v48, %v6251_v5  ;;  %v2185_v2 = vmul.f32 %v2184_v14, %v5995_v12 }
 0x2b3   : > { %3127 = vmatmul.bf16.gmra.mxu1 %v2797_v42  ;;  %v6287_v36 = vadd.f32 1.0, %v1951_v25  ;;  %v2068_v33 = vadd.f32 0.112945676, %v2067_v40  ;;  %v2305_v31 = vmul.f32 %v2304_v55, %v6055_v6  ;;  %v2423_v28 = vmul.f32 3.8918573e-05, %v6124_v63 }
 0x2b4   : > { %v2300_v39 = vmul.f32 %v2299_v37, %v6055_v6  ;;  %v2419_v62 = vadd.f32 0.18741608, %v2418_v19  ;;  %v1835_v15 = vsub.f32 1.0, %v1834_v22  ;;  %v2186_v52 = vadd.f32 0.014752088, %v2185_v2 }
 0x2b5   : > { %v2532_v13 = vmul.f32 2.1237322e-06, %v6276_v34  ;;  %v6294_v27 = vmul.f32 0.70710677, %v6279_v23  ;;  %v1844_v16 = vand.u32 2147483648, %v6251_v5  ;;  %3882 = vrcp.f32 %v6287_v36 }
 0x2b6   : > { %v1836_v45 = vmul.f32 %v3881_v48, %v1835_v15  ;;  %vm1839_vm0 = vweird.f32 %v3881_v48  ;;  %v2069_v32 = vmul.f32 %v2068_v33, %v5954_v43  ;;  %v2187_v21 = vmul.f32 %v2186_v52, %v5995_v12 }
 0x2b7   : > { %vm1838_vm1 = vweird.f32 %v6251_v5  ;;  %v1842_v4 = vand.u32 2147483647, %v6251_v5  ;;  %v2306_v58 = vadd.f32 0.014752088, %v2305_v31  ;;  %v2424_v18 = vadd.f32 0.001143296, %v2423_v28 }
 0x2b8   : > { %v1837_v10 = vadd.f32 %v3881_v48, %v1836_v45  ;;  %v2070_v41 = vadd.f32 0.4994258, %v2069_v32  ;;  %v2188_v3 = vadd.f32 0.112945676, %v2187_v21  ;;  %v2543_v29 = vmul.f32 3.8918573e-05, %v6276_v34  ;;  %vm1840_vm2 = vmor %vm1838_vm1, %vm1839_vm0 }
 0x2b9   : > { %v2533_v46 = vadd.f32 0.00028619796, %v2532_v13  ;;  %v1845_v11 = vor.u32 1.1754944e-38, %v1844_v16  ;;  %v2307_v26 = vmul.f32 %v2306_v58, %v6055_v6  ;;  %v2425_v9 = vmul.f32 %v2424_v18, %v6124_v63 }
 0x2ba   : > { %v1841_v37 = vsel %vm1840_vm2, %v3881_v48, %v1837_v10  ;;  %v2071_v60 = vmul.f32 %v2070_v41, %v5954_v43  ;;  %v2189_v38 = vmul.f32 %v2188_v3, %v5995_v12  ;;  %v2544_v5 = vadd.f32 0.001143296, %v2543_v29 }
 0x2bb   : > { %v3883_v50 = vpop.eup %3882  ;;  %v6308_v30 = vmul.f32 %v2061_v20, %v6715_v7  ;;  %vm1843_vm3 = vcmp.eq.f32.partialorder %v1842_v4, 8.507059e+37  ;;  %v2308_v51 = vadd.f32 0.112945676, %v2307_v26  ;;  %v2426_v56 = vadd.f32 0.014752088, %v2425_v9 }
 0x2bc   : > { %v2650_v44 = vmul.f32 %v6294_v27, %v6294_v27  ;;  %v1846_v19 = vsel %vm1843_vm3, %v1845_v11, %v1841_v37  ;;  %v1954_v14 = vmul.f32 %v3883_v50, %v6287_v36  ;;  %v6313_v55 = vadd.f32 1.0, %v2071_v60 }
 0x2bd   : > { %v2190_v48 = vadd.f32 0.4994258, %v2189_v38  ;;  %v2309_v43 = vmul.f32 %v2308_v51, %v6055_v6  ;;  %v2427_v42 = vmul.f32 %v2426_v56, %v6124_v63  ;;  %v2545_v25 = vmul.f32 %v2544_v5, %v6276_v34 }
 0x2be   : > { %v6318_v40 = vadd.f32 1.1283791, %v2300_v39  ;;  %v1955_v20 = vsub.f32 1.0, %v1954_v14  ;;  %v1962_v22 = vand.u32 2147483647, %v6287_v36  ;;  %3884 = vrcp.f32 %v6313_v55 }
 0x2bf   : > { %v1847_v2 = vmul.f32 %v1846_v19, %v6174_v61  ;;  %v1964_v33 = vand.u32 2147483648, %v6287_v36  ;;  %v2191_v31 = vmul.f32 %v2190_v48, %v5995_v12  ;;  %v2310_v28 = vadd.f32 0.4994258, %v2309_v43 }
 0x2c0   : > { %v1956_v15 = vmul.f32 %v3883_v50, %v1955_v20  ;;  %vm1959_vm4 = vweird.f32 %v3883_v50  ;;  %v2428_v52 = vadd.f32 0.112945676, %v2427_v42  ;;  %v2546_v13 = vadd.f32 0.014752088, %v2545_v25 }
 0x2c1   : > { %v2420_v16 = vmul.f32 %v2419_v62, %v6124_v63  ;;  %v2534_v39 = vmul.f32 %v2533_v46, %v6276_v34  ;;  %v6327_v45 = vmin.f32 %v2650_v44, 16.0  ;;  %v6329_v32 = vadd.f32 1.0, %v2191_v31 }
 0x2c2   : > { %v1957_v21 = vadd.f32 %v3883_v50, %v1956_v15  ;;  %vm1958_vm5 = vweird.f32 %v6287_v36  ;;  %v2311_v61 = vmul.f32 %v2310_v28, %v6055_v6  ;;  %v2429_v12 = vmul.f32 %v2428_v52, %v6124_v63 }
 0x2c3   : > { %v3472_v4 = vclamps-f32 %v1847_v2, 1.0  ;;  %vm1960_vm6 = vmor %vm1958_vm5, %vm1959_vm4  ;;  %vm1963_vm7 = vcmp.eq.f32.partialorder %v1962_v22, 8.507059e+37  ;;  %v1965_v58 = vor.u32 1.1754944e-38, %v1964_v33  ;;  %3886 = vrcp.f32 %v6329_v32 }
 0x2c4   : > { %v3885_v62 = vpop.eup %3884  ;;  %v1961_v18 = vsel %vm1960_vm6, %v3883_v50, %v1957_v21  ;;  %v6335_v10 = vadd.f32 1.0, %v2311_v61  ;;  %v2430_v41 = vadd.f32 0.4994258, %v2429_v12  ;;  %v2547_v3 = vmul.f32 %v2546_v13, %v6276_v34  ;;  %v6716_v50 = vld [vmem:[#allocation32_spill] sm:$0xff] }
 0x2c5   : > { %v2421_v29 = vadd.f32 1.1283791, %v2420_v16  ;;  %v2652_v36 = vmul.f32 2.1237322e-06, %v6327_v45  ;;  %v1966_v46 = vsel %vm1963_vm7, %v1965_v58, %v1961_v18  ;;  %v2074_v6 = vmul.f32 %v3885_v62, %v6313_v55 }
 0x2c6   : > { %v2535_v11 = vadd.f32 0.0036580483, %v2534_v39  ;;  %v1967_v26 = vmul.f32 %v1966_v46, %v6259_v53  ;;  %v2082_v9 = vand.u32 2147483647, %v6313_v55  ;;  %3888 = vrcp.f32 %v6335_v10 }
 0x2c7   : > { %v2716_v37 = vadd.f32 1.0, %v3472_v4  ;;  %v2075_v60 = vsub.f32 1.0, %v2074_v6  ;;  %v2084_v38 = vand.u32 2147483648, %v6313_v55  ;;  %v2431_v5 = vmul.f32 %v2430_v41, %v6124_v63 }
 0x2c8   : > { %v2182_v7 = vmul.f32 %v6283_v49, %v6716_v50  ;;  %v3475_v51 = vclamps-f32 %v1967_v26, 1.0  ;;  %v2548_v56 = vadd.f32 0.112945676, %v2547_v3  ;;  %v2663_v44 = vmul.f32 3.8918573e-05, %v6327_v45 }
 0x2c9   : > { %v3887_v19 = vpop.eup %3886  ;;  %v2653_v14 = vadd.f32 0.00028619796, %v2652_v36  ;;  %v2076_v53 = vmul.f32 %v3885_v62, %v2075_v60  ;;  %vm2078_vm8 = vweird.f32 %v6313_v55  ;;  %vm2079_vm9 = vweird.f32 %v3885_v62 }
 0x2ca   : > { %v2719_v48 = vadd.f32 1.0, %v3475_v51  ;;  %vm6349_vm10 = vcmp.eq.f32.partialorder %v2082_v9, 8.507059e+37  ;;  %v2194_v63 = vmul.f32 %v3887_v19, %v6329_v32  ;;  %v6354_v42 = vadd.f32 1.0, %v2431_v5  ;;  %vm2080_vm11 = vmor %vm2078_vm8, %vm2079_vm9 }
 0x2cb   : > { %v2764_v49 = vmul.f32 %v2716_v37, %v6164_v17  ;;  %v2077_v25 = vadd.f32 %v3885_v62, %v2076_v53  ;;  %v2085_v20 = vor.u32 1.1754944e-38, %v2084_v38  ;;  %v2549_v22 = vmul.f32 %v2548_v56, %v6276_v34 }
 0x2cc   : > { %v6358_v2 = vpop.eup %3888  ;;  %v2767_v55 = vmul.f32 %v2719_v48, %v6167_v57  ;;  %v2195_v33 = vsub.f32 1.0, %v2194_v63  ;;  %3890 = vrcp.f32 %v6354_v42  ;;  %v2664_v31 = vadd.f32 0.001143296, %v2663_v44 }
 0x2cd   : > { %v2081_v28 = vsel %vm2080_vm11, %v3885_v62, %v2077_v25  ;;  %v2202_v15 = vand.u32 2147483647, %v6329_v32  ;;  %v2204_v52 = vand.u32 2147483648, %v6329_v32  ;;  %v2314_v17 = vmul.f32 %v6358_v2, %v6335_v10  ;;  %v3064_v25 = vpop.f32.mrf.mxu0 }
 0x2ce   : > { %v2800_v13 = vpack.c.bf16 %v2767_v55, %v2764_v49  ;;  %v2086_v16 = vsel %vm6349_vm10, %v2085_v20, %v2081_v28  ;;  %v2196_v39 = vmul.f32 %v3887_v19, %v2195_v33  ;;  %vm2199_vm12 = vweird.f32 %v3887_v19 }
 0x2cf   : > { %v2654_v57 = vmul.f32 %v2653_v14, %v6327_v45  ;;  %v2087_v21 = vmul.f32 %v2086_v16, %v6308_v30  ;;  %v2315_v61 = vsub.f32 1.0, %v2314_v17  ;;  %v2550_v12 = vadd.f32 0.4994258, %v2549_v22 }
 0x2d0   : > { %v2422_v4 = vmul.f32 %v2421_v29, %v6097_v24  ;;  %3132 = vmatmul.bf16.gmra.mxu1 %v2800_v13  ;;  %v2197_v58 = vadd.f32 %v3887_v19, %v2196_v39  ;;  %vm2198_vm13 = vweird.f32 %v6329_v32  ;;  %v2665_v62 = vmul.f32 %v2664_v31, %v6327_v45  ;;  %v3015_v29 = vpop.f32.mrf.mxu3 }
 0x2d1   : > { %v2536_v18 = vmul.f32 %v2535_v11, %v6276_v34  ;;  %vm2200_vm14 = vmor %vm2198_vm13, %vm2199_vm12  ;;  %v2205_v41 = vor.u32 1.1754944e-38, %v2204_v52  ;;  %v2316_v3 = vmul.f32 %v6358_v2, %v2315_v61  ;;  %v2551_v36 = vmul.f32 %v2550_v12, %v6276_v34 }
 0x2d2   : > { %v3891_v46 = vpop.eup %3890  ;;  %v3478_v30 = vclamps-f32 %v2087_v21, 1.0  ;;  %v2201_v6 = vsel %vm2200_vm14, %v3887_v19, %v2197_v58  ;;  %vm2203_vm15 = vcmp.eq.f32.partialorder %v2202_v15, 8.507059e+37  ;;  %v2666_v26 = vadd.f32 0.014752088, %v2665_v62  ;;  %v6410_v62 = vld [vmem:[%s6490_s4] ss:$0 sm:$0xff] }
 0x2d3   : > { %v2655_v24 = vadd.f32 0.0036580483, %v2654_v57  ;;  %v2206_v9 = vsel %vm2203_vm15, %v2205_v41, %v2201_v6  ;;  %vm2319_vm0 = vweird.f32 %v6358_v2  ;;  %v2434_v32 = vmul.f32 %v3891_v46, %v6354_v42 }
 0x2d4   : > { %v2207_v37 = vmul.f32 %v2206_v9, %v2182_v7  ;;  %v2317_v11 = vadd.f32 %v6358_v2, %v2316_v3  ;;  %v6379_v60 = vadd.f32 1.0, %v2551_v36  ;;  %v2667_v38 = vmul.f32 %v2666_v26, %v6327_v45  ;;  %v3113_v36 = vpop.f32.mrf.mxu1 }
 0x2d5   : > { %vm2318_vm1 = vweird.f32 %v6335_v10  ;;  %v2322_v5 = vand.u32 2147483647, %v6335_v10  ;;  %v2324_v50 = vand.u32 2147483648, %v6335_v10  ;;  %v2435_v51 = vsub.f32 1.0, %v2434_v32  ;;  %v3066_v6 = vpop.f32.mrf.mxu0 }
 0x2d6   : > { %v3481_v56 = vclamps-f32 %v2207_v37, 1.0  ;;  %v2722_v44 = vadd.f32 1.0, %v3478_v30  ;;  %v2444_v19 = vand.u32 2147483648, %v6354_v42  ;;  %3892 = vrcp.f32 %v6379_v60  ;;  %vm6389_vm2 = vmor %vm2318_vm1, %vm2319_vm0 }
 0x2d7   : > { %v2537_v7 = vadd.f32 0.05243302, %v2536_v18  ;;  %v2436_v53 = vmul.f32 %v3891_v46, %v2435_v51  ;;  %vm2439_vm3 = vweird.f32 %v3891_v46  ;;  %v2442_v48 = vand.u32 2147483647, %v6354_v42 }
 0x2d8   : > { %v2656_v10 = vmul.f32 %v2655_v24, %v6327_v45  ;;  %v2725_v43 = vadd.f32 1.0, %v3481_v56  ;;  %v2321_v63 = vsel %vm6389_vm2, %v6358_v2, %v2317_v11  ;;  %v2668_v49 = vadd.f32 0.112945676, %v2667_v38 }
 0x2d9   : > { %vm2323_vm4 = vcmp.eq.f32.partialorder %v2322_v5, 8.507059e+37  ;;  %v2325_v20 = vor.u32 1.1754944e-38, %v2324_v50  ;;  %v2437_v22 = vadd.f32 %v3891_v46, %v2436_v53  ;;  %vm2438_vm5 = vweird.f32 %v6354_v42 }
 0x2da   : > { %v2770_v55 = vmul.f32 %v2722_v44, %v6179_v1  ;;  %v2773_v33 = vmul.f32 %v2725_v43, %v6263_v0  ;;  %vm2440_vm6 = vmor %vm2438_vm5, %vm2439_vm3  ;;  %v2445_v31 = vor.u32 1.1754944e-38, %v2444_v19  ;;  %v2669_v28 = vmul.f32 %v2668_v49, %v6327_v45  ;;  %v3017_v1 = vpop.f32.mrf.mxu3 }
 0x2db   : > { %v2538_v15 = vmul.f32 %v2537_v7, %v6276_v34  ;;  %v2326_v52 = vsel %vm2323_vm4, %v2325_v20, %v2321_v63  ;;  %v2441_v17 = vsel %vm2440_vm6, %v3891_v46, %v2437_v22  ;;  %vm2443_vm7 = vcmp.eq.f32.partialorder %v2442_v48, 8.507059e+37 }
 0x2dc   : > { %v3893_v2 = vpop.eup %3892  ;;  %v2302_v13 = vmul.f32 %v6318_v40, %v6014_v47  ;;  %v2803_v16 = vpack.c.bf16 %v2773_v33, %v2770_v55  ;;  %v2446_v39 = vsel %vm2443_vm7, %v2445_v31, %v2441_v17  ;;  %v2670_v42 = vadd.f32 0.4994258, %v2669_v28 }
 0x2dd   : > { %v2657_v57 = vadd.f32 0.05243302, %v2656_v10  ;;  %v2447_v21 = vmul.f32 %v2446_v39, %v2422_v4  ;;  %v2554_v0 = vmul.f32 %v3893_v2, %v6379_v60  ;;  %v2539_v58 = vadd.f32 0.18741608, %v2538_v15 }
 0x2de   : > { %v2327_v61 = vmul.f32 %v2326_v52, %v2302_v13  ;;  %v2671_v12 = vmul.f32 %v2670_v42, %v6327_v45  ;;  %v3016_v30 = vadd.f32 %v6410_v62, %v3015_v29  ;;  %v3018_v26 = vadd.f32 %v6410_v62, %v3017_v1 }
 0x2df   : > { %v2555_v18 = vsub.f32 1.0, %v2554_v0  ;;  %v3487_v47 = vclamps-f32 %v2447_v21, 1.0  ;;  %v2658_v41 = vmul.f32 %v2657_v57, %v6327_v45  ;;  %v2540_v46 = vmul.f32 %v2539_v58, %v6276_v34 }
 0x2e0   : > { %3137 = vmatmul.bf16.gmra.mxu1 %v2803_v16  ;;  %v2672_v40 = vadd.f32 1.0, %v2671_v12  ;;  %v3484_v4 = vclamps-f32 %v2327_v61, 1.0  ;;  %vm2559_vm8 = vweird.f32 %v3893_v2  ;;  %v2564_v37 = vand.u32 2147483648, %v6379_v60 }
 0x2e1   : > { %v2556_v3 = vmul.f32 %v3893_v2, %v2555_v18  ;;  %v2731_v24 = vadd.f32 1.0, %v3487_v47  ;;  %v2659_v32 = vadd.f32 0.18741608, %v2658_v41  ;;  %v715_v11 = vmul.f32 0.5, %v6076_v8  ;;  %v3115_v8 = vpop.f32.mrf.mxu1 }
 0x2e2   : > { %3894 = vrcp.f32 %v2672_v40  ;;  %v2728_v38 = vadd.f32 1.0, %v3484_v4  ;;  %vm2558_vm9 = vweird.f32 %v6379_v60  ;;  %v2562_v5 = vand.u32 2147483647, %v6379_v60  ;;  %v3020_v29 = vpop.f32.mrf.mxu3 }
 0x2e3   : > { %v2557_v9 = vadd.f32 %v3893_v2, %v2556_v3  ;;  %v712_v34 = vmul.f32 0.5, %v5998_v35  ;;  %v2541_v50 = vadd.f32 1.1283791, %v2540_v46  ;;  %vm2560_vm10 = vmor %vm2558_vm9, %vm2559_vm8  ;;  %v2779_v56 = vmul.f32 %v2731_v24, %v715_v11 }
 0x2e4   : > { %v3065_v19 = vadd.f32 %v3064_v25, %v3016_v30  ;;  %v3067_v7 = vadd.f32 %v3066_v6, %v3018_v26  ;;  %v2660_v14 = vmul.f32 %v2659_v32, %v6327_v45  ;;  %v2565_v53 = vor.u32 1.1754944e-38, %v2564_v37  ;;  %v3069_v25 = vpop.f32.mrf.mxu0 }
 0x2e5   : > { %v2561_v44 = vsel %vm2560_vm10, %v3893_v2, %v2557_v9  ;;  %v2776_v10 = vmul.f32 %v2728_v38, %v712_v34  ;;  %vm2563_vm11 = vcmp.eq.f32.partialorder %v2562_v5, 8.507059e+37  ;;  %v2542_v49 = vmul.f32 %v2541_v50, %v6247_v59 }
 0x2e6   : > { %v3114_v43 = vadd.f32 %v3113_v36, %v3065_v19  ;;  %v3116_v60 = vadd.f32 %v3115_v8, %v3067_v7  ;;  %v2566_v63 = vsel %vm2563_vm11, %v2565_v53, %v2561_v44  ;;  %v2684_v22 = vand.u32 2147483648, %v2672_v40 }
 0x2e7   : > { %v2806_v20 = vpack.c.bf16 %v2779_v56, %v2776_v10  ;;  %v2661_v33 = vadd.f32 1.1283791, %v2660_v14  ;;  %v2682_v45 = vand.u32 2147483647, %v2672_v40  ;;  %v2567_v28 = vmul.f32 %v2566_v63, %v2542_v49 }
 0x2e8   : > { %v3895_v51 = vpop.eup %3894  ;;  %v3656_v55 = vpack.c.bf16 %v3116_v60, %v3114_v43  ;;  %vm2678_vm13 = vweird.f32 %v2672_v40  ;;  %v2685_v52 = vor.u32 1.1754944e-38, %v2684_v22  ;;  %v3021_v57 = vadd.f32 %v6410_v62, %v3020_v29 }
 0x2e9   : > { %v2674_v48 = vmul.f32 %v3895_v51, %v2672_v40  ;;  %vm2679_vm12 = vweird.f32 %v3895_v51  ;;  %v2662_v59 = vmul.f32 %v2661_v33, %v6294_v27  ;;  %vm2683_vm15 = vcmp.eq.f32.partialorder %v2682_v45, 8.507059e+37  ;;  %v3118_v13 = vpop.f32.mrf.mxu1 }
 0x2ea   : > { %3657 = vst [vmem:[%s6425_s28] sm:$0xff] %v3656_v55   ;;  %vm2680_vm14 = vmor %vm2678_vm13, %vm2679_vm12  ;;  %v3022_v17 = vpop.f32.mrf.mxu3  ;;  %v3490_v16 = vclamps-f32 %v2567_v28, 1.0  ;;  %v721_v61 = vmul.f32 0.5, %v6279_v23  ;;  %v718_v27 = vmul.f32 0.5, %v6238_v54  ;;  %v3070_v18 = vadd.f32 %v3069_v25, %v3021_v57 }
 0x2eb   : > { %v2675_v35 = vsub.f32 1.0, %v2674_v48  ;;  %v3023_v1 = vadd.f32 %v6410_v62, %v3022_v17 }
 0x2ec   : > { %v2734_v0 = vadd.f32 1.0, %v3490_v16  ;;  %v3071_v12 = vpop.f32.mrf.mxu0  ;;  %v3119_v36 = vadd.f32 %v3118_v13, %v3070_v18 }
 0x2ed   : > { %v2676_v31 = vmul.f32 %v3895_v51, %v2675_v35  ;;  %v3072_v47 = vadd.f32 %v3071_v12, %v3023_v1 }
 0x2ee   : > { %v2782_v3 = vmul.f32 %v2734_v0, %v718_v27 }
 0x2ef   : > { %v2677_v15 = vadd.f32 %v3895_v51, %v2676_v31 }
 0x2f0   : > { %3142 = vmatmul.bf16.gmra.mxu1 %v2806_v20 }
 0x2f1   : > { %v2681_v2 = vsel %vm2680_vm14, %v3895_v51, %v2677_v15  ;;  %v3120_v41 = vpop.f32.mrf.mxu1 }
 0x2f2   : > { %v2686_v39 = vsel %vm2683_vm15, %v2685_v52, %v2681_v2  ;;  %v3121_v4 = vadd.f32 %v3120_v41, %v3072_v47  ;;  %v3025_v6 = vpop.f32.mrf.mxu3 }
 0x2f3   : > { %v2687_v42 = vmul.f32 %v2686_v39, %v2662_v59  ;;  %v3026_v9 = vadd.f32 %v6410_v62, %v3025_v6 }
 0x2f4   : > { %v3661_v30 = vpack.c.bf16 %v3121_v4, %v3119_v36  ;;  %v3074_v26 = vpop.f32.mrf.mxu0 }
 0x2f5   : > { %v3493_v21 = vclamps-f32 %v2687_v42, 1.0  ;;  %v3075_v37 = vadd.f32 %v3074_v26, %v3026_v9 }
 0x2f6   : > { %3693 = vst [vmem:[%s6425_s28 + $0x8] sm:$0xff] %v3661_v30  }
 0x2f7   : > { %v2737_v58 = vadd.f32 1.0, %v3493_v21 }
 0x2f9   : > { %v2785_v40 = vmul.f32 %v2737_v58, %v721_v61 }
 0x2fa   : > { %v3027_v24 = vpop.f32.mrf.mxu3 }
 0x2fb   : > { %v2809_v46 = vpack.c.bf16 %v2785_v40, %v2782_v3  ;;  %v3028_v54 = vadd.f32 %v6410_v62, %v3027_v24 }
 0x2fc   : > { %v3076_v32 = vpop.f32.mrf.mxu0 }
 0x2fd   : > { %v3077_v11 = vadd.f32 %v3076_v32, %v3028_v54 }
 0x300   : > { %3147 = vmatmul.bf16.gmra.mxu1 %v2809_v46 }
 0x302   : > { %v3030_v29 = vpop.f32.mrf.mxu3 }
 0x303   : > { %v3031_v19 = vadd.f32 %v6410_v62, %v3030_v29 }
 0x304   : > { %v3079_v51 = vpop.f32.mrf.mxu0 }
 0x305   : > { %v3080_v48 = vadd.f32 %v3079_v51, %v3031_v19 }
 0x30a   : > { %v3032_v56 = vpop.f32.mrf.mxu3 }
 0x30b   : > { %v3033_v14 = vadd.f32 %v6410_v62, %v3032_v56 }
 0x30c   : > { %v3123_v23 = vpop.f32.mrf.mxu1  ;;  %v3081_v7 = vpop.f32.mrf.mxu0 }
 0x30d   : > { %v3124_v5 = vadd.f32 %v3123_v23, %v3075_v37  ;;  %v3082_v8 = vadd.f32 %v3081_v7, %v3033_v14 }
 0x312   : > { %v3035_v53 = vpop.f32.mrf.mxu3 }
 0x313   : > { %v3036_v33 = vadd.f32 %v6410_v62, %v3035_v53 }
 0x314   : > { %v3125_v38 = vpop.f32.mrf.mxu1  ;;  %v3084_v35 = vpop.f32.mrf.mxu0 }
 0x315   : > { %v3126_v34 = vadd.f32 %v3125_v38, %v3077_v11  ;;  %v3085_v45 = vadd.f32 %v3084_v35, %v3036_v33 }
 0x317   : > { %v3666_v50 = vpack.c.bf16 %v3126_v34, %v3124_v5 }
 0x319   : > { %3694 = vst [vmem:[%s6425_s28 + $0x10] sm:$0xff] %v3666_v50  }
 0x31a   : > { %v3037_v49 = vpop.f32.mrf.mxu3 }
 0x31b   : > { %v3038_v25 = vadd.f32 %v6410_v62, %v3037_v49 }
 0x31c   : > { %v3086_v20 = vpop.f32.mrf.mxu0 }
 0x31d   : > { %v3087_v28 = vadd.f32 %v3086_v20, %v3038_v25 }
 0x322   : > { %v3040_v22 = vpop.f32.mrf.mxu3 }
 0x323   : > { %v3041_v42 = vadd.f32 %v6410_v62, %v3040_v22 }
 0x324   : > { %v3089_v31 = vpop.f32.mrf.mxu0 }
 0x325   : > { %v3090_v1 = vadd.f32 %v3089_v31, %v3041_v42 }
 0x32a   : > { %v3042_v15 = vpop.f32.mrf.mxu3 }
 0x32b   : > { %v3043_v57 = vadd.f32 %v6410_v62, %v3042_v15 }
 0x32c   : > { %v3091_v13 = vpop.f32.mrf.mxu0 }
 0x32d   : > { %v3092_v21 = vadd.f32 %v3091_v13, %v3043_v57 }
 0x330   : > { %v3128_v44 = vpop.f32.mrf.mxu1 }
 0x331   : > { %v3129_v43 = vadd.f32 %v3128_v44, %v3080_v48 }
 0x332   : > { %v3045_v39 = vpop.f32.mrf.mxu3 }
 0x333   : > { %v3046_v41 = vadd.f32 %v6410_v62, %v3045_v39 }
 0x334   : > { %v3094_v0 = vpop.f32.mrf.mxu0 }
 0x335   : > { %v3095_v4 = vadd.f32 %v3094_v0, %v3046_v41 }
 0x338   : > { %v3130_v10 = vpop.f32.mrf.mxu1 }
 0x339   : > { %v3131_v60 = vadd.f32 %v3130_v10, %v3082_v8 }
 0x33a   : > { %v3047_v18 = vpop.f32.mrf.mxu3 }
 0x33b   : > { %v3671_v63 = vpack.c.bf16 %v3131_v60, %v3129_v43  ;;  %v3048_v3 = vadd.f32 %v6410_v62, %v3047_v18 }
 0x33c   : > { %v3096_v40 = vpop.f32.mrf.mxu0 }
 0x33d   : > { %3695 = vst [vmem:[%s6425_s28 + $0x18] sm:$0xff] %v3671_v63   ;;  %v3097_v46 = vadd.f32 %v3096_v40, %v3048_v3 }
 0x342   : > { %v3050_v36 = vpop.f32.mrf.mxu3 }
 0x343   : > { %v3051_v32 = vadd.f32 %v6410_v62, %v3050_v36 }
 0x344   : > { %v3099_v23 = vpop.f32.mrf.mxu0 }
 0x345   : > { %v3100_v38 = vadd.f32 %v3099_v23, %v3051_v32 }
 0x34a   : > { %v3052_v9 = vpop.f32.mrf.mxu3 }
 0x34b   : > { %v3053_v37 = vadd.f32 %v6410_v62, %v3052_v9 }
 0x34c   : > { %v3101_v11 = vpop.f32.mrf.mxu0 }
 0x34d   : > { %v3133_v55 = vpop.f32.mrf.mxu1  ;;  %v3102_v5 = vadd.f32 %v3101_v11, %v3053_v37 }
 0x34e   : > { %v3134_v59 = vadd.f32 %v3133_v55, %v3085_v45 }
 0x355   : > { %v3135_v52 = vpop.f32.mrf.mxu1 }
 0x356   : > { %v3136_v17 = vadd.f32 %v3135_v52, %v3087_v28 }
 0x358   : > { %v3676_v2 = vpack.c.bf16 %v3136_v17, %v3134_v59 }
 0x35a   : > { %3696 = vst [vmem:[%s6425_s28 + $0x20] sm:$0xff] %v3676_v2  }
 0x35d   : > { %v3138_v16 = vpop.f32.mrf.mxu1 }
 0x35e   : > { %v3139_v12 = vadd.f32 %v3138_v16, %v3090_v1 }
 0x365   : > { %v3140_v61 = vpop.f32.mrf.mxu1 }
 0x366   : > { %v3141_v58 = vadd.f32 %v3140_v61, %v3092_v21 }
 0x368   : > { %v3681_v27 = vpack.c.bf16 %v3141_v58, %v3139_v12 }
 0x36a   : > { %3697 = vst [vmem:[%s6425_s28 + $0x28] sm:$0xff] %v3681_v27  }
 0x36d   : > { %v3143_v47 = vpop.f32.mrf.mxu1 }
 0x36e   : > { %v3144_v6 = vadd.f32 %v3143_v47, %v3095_v4 }
 0x375   : > { %v3145_v30 = vpop.f32.mrf.mxu1 }
 0x376   : > { %v3146_v26 = vadd.f32 %v3145_v30, %v3097_v46 }
 0x378   : > { %v3686_v24 = vpack.c.bf16 %v3146_v26, %v3144_v6 }
 0x37a   : > { %3698 = vst [vmem:[%s6425_s28 + $0x30] sm:$0xff] %v3686_v24  }
 0x37d   : > { %v3148_v54 = vpop.f32.mrf.mxu1 }
 0x37e   : > { %v3149_v50 = vadd.f32 %v3148_v54, %v3100_v38 }
 0x385   : > { %v3150_v34 = vpop.f32.mrf.mxu1 }
 0x386   : > { %v3151_v29 = vadd.f32 %v3150_v34, %v3102_v5 }
 0x388   : > { %v3691_v51 = vpack.c.bf16 %v3151_v29, %v3149_v50 }
 0x38a   : > { %3699 = vst [vmem:[%s6425_s28 + $0x38] sm:$0xff] %v3691_v51  }
 0x38b   : > { %4043 = shalt.err (!%p4040_p10)
}
 0x38c   : > { %s4099_s17 = smov 64   ;;  %s4100_s29 = smov 4  }
 0x38d   : > { %3730 = dma.vmem_to_hbm [thread:$0]  (%p4216_p3), %s3199_s13, 1024, %s3201_s12, %s3186_s22, %s4099_s17, %s4099_s17, %s4100_s29  }
 0x38e PF: > { %s3215_s28 = sand.u32 1, %s4078_s18   ;;  %p6721_p12 = scmp.ge.s32.totalorder %s4090_s21, 2 }
 0x38f   : > { %s3216_s16 = scalar_lea.sflag [#allocation4], %s3215_s28 }
 0x390   : > { %p3747_p13 = pnand %p6721_p12, %p4166_p6 }
 0x392   : > { %p3748_p0 = pneg %p3747_p13 }
 0x394   : > { %4073 = dma.done.wait (%p3748_p0), %s3216_s16, 1024  }
 0x395   : > { %4075 = vsyncadd (%p3748_p0), %s3216_s16, 4294966272  ;;  %p20_p5 = scmp.ge.s32.totalorder %s4203_s30, 4   ;;  %s6722_s18 = smov %s4082_s19 }
 0x396   : > { %s6723_s19 = smov %s4086_s20  ;;  %s6724_s20 = smov %s4212_s9 }
 0x397   : > { %s6725_s21 = smov %s4203_s30  ;;  %22 = sbr.rel (!%p20_p5) target bundleno = 7 (0x7), region = 97 }
 0x39c   :  { %3222 = vsyncpa [#allocation3], 1 }
 0x39d   :  { %3224 = vsyncpa [#allocation3 + $0x1], 1 }
 0x39e   :  { %3225 = vsyncpa [#allocation6], 1 }
 0x39f   :  { %3226 = vsyncpa [#allocation9], 1 }
 0x3a0   :  { %3227 = vsyncpa [#allocation4], 1 }
 0x3a1   :  { %3229 = vsyncpa [#allocation4 + $0x1], 1 }

</bundles_post_ra>
